<compile_context>
chip_gen: v5e
topology: v5e:2x2
jax: 0.10.0
libtpu: 0.0.40
codegen_flags: <defaults>
</compile_context>

<pallas_src>
import jax
import jax.numpy as jnp
from jax.experimental import pallas as pl
from jax.experimental.pallas import tpu as pltpu  # noqa: F401  (TPU backend)


# ----------------------------------------------------------------------------
# Fully-fused AE forward kernel (single pallas_call, no grid).
# ----------------------------------------------------------------------------
def make_ae_kernel(num_layers, T, B, input_dim, enc_H):
    """Input refs (in order):
         x2d (T*B, input_dim)
         encoder layer l: wi (Din_l, 3*enc_H), wh (enc_H, 3*enc_H), b (2, 3*enc_H)
         lin_w (enc_H, input_dim), lin_b (1, input_dim)
         decoder layer l: wi (Din_l, 3*input_dim), wh (input_dim, 3*input_dim), b (2, 3*input_dim)
       Output refs:
         enc_out (T*B, enc_H), enc_hidden (num_layers*B, enc_H), dec_out (T*B, input_dim)
    """

    def run_gru(seq, prefs, out_ref, hid_ref, H):
        # seq: (T*B, Din) value.  Each layer writes its full sequence into
        # out_ref (resident VMEM) and the next layer reads it back.
        for l in range(num_layers):
            wi = prefs[3 * l][...]            # (Din_l, 3H)
            wh = prefs[3 * l + 1][...]        # (H, 3H)
            b = prefs[3 * l + 2][...]         # (2, 3H)
            bi = b[0:1, :]                                       # input bias
            bh = jnp.broadcast_to(b[1:2, :], (B, 3 * H))         # hoisted bcast

            # Hoisted input projection: one fused GEMM over all T timesteps.
            xg = jnp.dot(seq, wi, preferred_element_type=jnp.float32) + bi

            h = jnp.zeros((B, H), jnp.float32)   # h0 = 0 (PyTorch default)
            for t in range(T):                   # static unroll: T small, fixed
                xg_t = xg[t * B:(t + 1) * B, :]
                hg = jnp.dot(h, wh, preferred_element_type=jnp.float32) + bh
                r = jax.nn.sigmoid(xg_t[:, :H] + hg[:, :H])
                z = jax.nn.sigmoid(xg_t[:, H:2 * H] + hg[:, H:2 * H])
                n = jnp.tanh(xg_t[:, 2 * H:] + r * hg[:, 2 * H:])
                h = (1.0 - z) * n + z * h
                out_ref[t * B:(t + 1) * B, :] = h
            if hid_ref is not None:
                hid_ref[l * B:(l + 1) * B, :] = h   # final hidden, once per layer
            seq = out_ref[...]                      # next layer's input sequence
        return seq

    def kernel(*refs):
        it = iter(refs)
        x_ref = next(it)
        enc_p = [next(it) for _ in range(3 * num_layers)]
        lin_w_ref = next(it)
        lin_b_ref = next(it)
        dec_p = [next(it) for _ in range(3 * num_layers)]
        enc_out_ref = next(it)
        enc_hid_ref = next(it)
        dec_out_ref = next(it)

        # EncoderRNN
        enc_seq = run_gru(x_ref[...], enc_p, enc_out_ref, enc_hid_ref, enc_H)
        # DecoderRNN.linear1 (fused into the same kernel)
        trans = (jnp.dot(enc_seq, lin_w_ref[...],
                         preferred_element_type=jnp.float32) + lin_b_ref[...])
        # DecoderRNN.rnn (hidden state not returned by the module's forward)
        run_gru(trans, dec_p, dec_out_ref, None, input_dim)

    return kernel


def ae_forward(x, params):
    """x: (T, B, input_dim). Returns ((enc_out, enc_hidden), dec_out)."""
    T, B, Din = x.shape
    L = len(params["enc"])
    enc_H = params["enc"][0]["wh"].shape[0]

    flat = [x.reshape(T * B, Din)]
    for p in params["enc"]:
        flat += [p["wi"], p["wh"], p["b"]]
    flat += [params["lin_w"], params["lin_b"]]
    for p in params["dec"]:
        flat += [p["wi"], p["wh"], p["b"]]

    kernel = make_ae_kernel(L, T, B, Din, enc_H)
    enc_out2d, enc_hid2d, dec_out2d = pl.pallas_call(
        kernel,
        out_shape=(jax.ShapeDtypeStruct((T * B, enc_H), jnp.float32),
                   jax.ShapeDtypeStruct((L * B, enc_H), jnp.float32),
                   jax.ShapeDtypeStruct((T * B, Din), jnp.float32)),
    )(*flat)

    enc_out = enc_out2d.reshape(T, B, enc_H)
    enc_hidden = enc_hid2d.reshape(L, B, enc_H)
    dec_out = dec_out2d.reshape(T, B, Din)
    return (enc_out, enc_hidden), dec_out


# ----------------------------------------------------------------------------
# Deterministic parameter init (PyTorch-style uniform(-1/sqrt(H), 1/sqrt(H)))
# Weights stored transposed + gate-concatenated: wi (Din,3H), wh (H,3H),
# b (2,3H) with row 0 = bias_ih [bir|biz|bin], row 1 = bias_hh [bhr|bhz|bhn].
# ----------------------------------------------------------------------------
def _uniform(key, shape, bound):
    return jax.random.uniform(key, shape, jnp.float32, -bound, bound)


def init_gru_params(key, num_layers, in_dim, hidden):
    bound = 1.0 / float(hidden) ** 0.5
    layers = []
    for l in range(num_layers):
        d_in = in_dim if l == 0 else hidden
        k1, k2, k3 = jax.random.split(jax.random.fold_in(key, l), 3)
        layers.append({
            "wi": _uniform(k1, (d_in, 3 * hidden), bound),
            "wh": _uniform(k2, (hidden, 3 * hidden), bound),
            "b": _uniform(k3, (2, 3 * hidden), bound),
        })
    return layers


def init_ae_params(key, decoder_dim, input_dim, enc_latent_dim, num_layers):
    k_enc, k_dec, k_lw, k_lb = jax.random.split(key, 4)
    lin_bound = 1.0 / float(decoder_dim) ** 0.5
    return {
        # EncoderRNN: GRU(input_dim -> enc_latent_dim, num_layers)
        "enc": init_gru_params(k_enc, num_layers, input_dim, enc_latent_dim),
        # DecoderRNN.linear1: Linear(decoder_dim -> input_dim) (stored transposed)
        "lin_w": _uniform(k_lw, (decoder_dim, input_dim), lin_bound),
        "lin_b": _uniform(k_lb, (1, input_dim), lin_bound),
        # DecoderRNN.rnn: GRU(input_dim -> input_dim, num_layers)
        "dec": init_gru_params(k_dec, num_layers, input_dim, input_dim),
    }


# ----------------------------------------------------------------------------
# Pure-JAX reference (lax.scan) for a correctness check.
# ----------------------------------------------------------------------------
def _gru_layer_ref(x, p):
    B = x.shape[1]
    H = p["wh"].shape[0]
    bi = p["b"][0:1]
    bh = p["b"][1:2]

    def step(h, xt):
        xg = xt @ p["wi"] + bi
        hg = h @ p["wh"] + bh
        r = jax.nn.sigmoid(xg[:, :H] + hg[:, :H])
        z = jax.nn.sigmoid(xg[:, H:2 * H] + hg[:, H:2 * H])
        n = jnp.tanh(xg[:, 2 * H:] + r * hg[:, 2 * H:])
        h_new = (1.0 - z) * n + z * h
        return h_new, h_new

    hN, outs = jax.lax.scan(step, jnp.zeros((B, H), jnp.float32), x)
    return outs, hN


def _gru_ref(x, layer_params):
    hs, out = [], x
    for p in layer_params:
        out, hN = _gru_layer_ref(out, p)
        hs.append(hN)
    return out, jnp.stack(hs, axis=0)


def ae_forward_ref(x, params):
    enc_out, enc_hidden = _gru_ref(x, params["enc"])
    trans = enc_out @ params["lin_w"] + params["lin_b"]
    dec_out, _ = _gru_ref(trans, params["dec"])
    return (enc_out, enc_hidden), dec_out


# ----------------------------------------------------------------------------
if __name__ == "__main__":
    # Small shapes consistent with the module.  Note: decoder.linear1 is
    # Linear(decoder_dim, input_dim) applied to the encoder output (feature
    # size enc_latent_dim), so decoder_dim must equal enc_latent_dim.
    # B chosen as a multiple of 8 for sublane-aligned per-step slices.
    T, B = 8, 8
    input_dim = 16
    enc_latent_dim = 32
    decoder_dim = enc_latent_dim     # required by the PyTorch forward
    dec_latent_dim = 32              # stored by DecoderRNN but unused in forward
    num_layers = 2

    key = jax.random.PRNGKey(0)
    k_x, k_p = jax.random.split(key)
    x = jax.random.normal(k_x, (T, B, input_dim), jnp.float32)
    params = init_ae_params(k_p, decoder_dim, input_dim, enc_latent_dim,
                            num_layers)

    fwd = jax.jit(ae_forward)
    (enc_out, enc_hidden), dec_out = jax.block_until_ready(fwd(x, params))

    # sanity: shapes match PyTorch semantics
    assert enc_out.shape == (T, B, enc_latent_dim)
    assert enc_hidden.shape == (num_layers, B, enc_latent_dim)
    assert dec_out.shape == (T, B, input_dim)

    # numerical check against a pure-JAX reference
    (ref_eo, ref_eh), ref_do = ae_forward_ref(x, params)
    assert jnp.allclose(enc_out, ref_eo, atol=2e-4), "encoder out mismatch"
    assert jnp.allclose(enc_hidden, ref_eh, atol=2e-4), "encoder hidden mismatch"
    assert jnp.allclose(dec_out, ref_do, atol=2e-4), "decoder out mismatch"

    print("KERNEL_OK")
</pallas_src>

<mosaic_0001>
module attributes {stable_mosaic.version = 11 : i64} {
  func.func @kernel(%arg0: memref<64x16xf32, #tpu.memory_space<vmem>>, %arg1: memref<16x96xf32, #tpu.memory_space<vmem>>, %arg2: memref<32x96xf32, #tpu.memory_space<vmem>>, %arg3: memref<2x96xf32, #tpu.memory_space<vmem>>, %arg4: memref<32x96xf32, #tpu.memory_space<vmem>>, %arg5: memref<32x96xf32, #tpu.memory_space<vmem>>, %arg6: memref<2x96xf32, #tpu.memory_space<vmem>>, %arg7: memref<32x16xf32, #tpu.memory_space<vmem>>, %arg8: memref<1x16xf32, #tpu.memory_space<vmem>>, %arg9: memref<16x48xf32, #tpu.memory_space<vmem>>, %arg10: memref<16x48xf32, #tpu.memory_space<vmem>>, %arg11: memref<2x48xf32, #tpu.memory_space<vmem>>, %arg12: memref<16x48xf32, #tpu.memory_space<vmem>>, %arg13: memref<16x48xf32, #tpu.memory_space<vmem>>, %arg14: memref<2x48xf32, #tpu.memory_space<vmem>>, %arg15: memref<64x32xf32, #tpu.memory_space<vmem>>, %arg16: memref<16x32xf32, #tpu.memory_space<vmem>>, %arg17: memref<64x16xf32, #tpu.memory_space<vmem>>) attributes {dimension_semantics = [], scalar_prefetch = 0 : i64, scratch_operands = 0 : i64, tpu.core_type = #tpu.core_type<tc>} {
    %c0 = arith.constant 0 : index
    %c0_0 = arith.constant 0 : index
    %0 = vector.load %arg0[%c0, %c0_0] : memref<64x16xf32, #tpu.memory_space<vmem>>, vector<64x16xf32>
    %c0_1 = arith.constant 0 : index
    %c0_2 = arith.constant 0 : index
    %1 = vector.load %arg1[%c0_1, %c0_2] : memref<16x96xf32, #tpu.memory_space<vmem>>, vector<16x96xf32>
    %c0_3 = arith.constant 0 : index
    %c0_4 = arith.constant 0 : index
    %2 = vector.load %arg2[%c0_3, %c0_4] : memref<32x96xf32, #tpu.memory_space<vmem>>, vector<32x96xf32>
    %c0_5 = arith.constant 0 : index
    %c0_6 = arith.constant 0 : index
    %3 = vector.load %arg3[%c0_5, %c0_6] : memref<2x96xf32, #tpu.memory_space<vmem>>, vector<2x96xf32>
    %4 = vector.extract_strided_slice %3 {offsets = [0, 0], sizes = [1, 96], strides = [1, 1]} : vector<2x96xf32> to vector<1x96xf32>
    %5 = vector.extract_strided_slice %3 {offsets = [1, 0], sizes = [1, 96], strides = [1, 1]} : vector<2x96xf32> to vector<1x96xf32>
    %6 = vector.shape_cast %5 : vector<1x96xf32> to vector<1x96xf32>
    %7 = vector.broadcast %6 : vector<1x96xf32> to vector<8x96xf32>
    %cst = arith.constant dense<0.000000e+00> : vector<64x96xf32>
    %8 = tpu.matmul %0, %1, %cst {dimension_numbers = #tpu.dot_dimension_numbers<[1], [0], [0], [1], [0, 0, 1, 1], [], []>} : vector<64x16xf32>, vector<16x96xf32>, vector<64x96xf32> -> vector<64x96xf32>
    %9 = vector.broadcast %4 : vector<1x96xf32> to vector<64x96xf32>
    %10 = arith.addf %8, %9 : vector<64x96xf32>
    %cst_7 = arith.constant 0.000000e+00 : f32
    %11 = vector.broadcast %cst_7 : f32 to vector<8x32xf32>
    %12 = vector.extract_strided_slice %10 {offsets = [0, 0], sizes = [8, 96], strides = [1, 1]} : vector<64x96xf32> to vector<8x96xf32>
    %cst_8 = arith.constant dense<0.000000e+00> : vector<8x96xf32>
    %13 = tpu.matmul %11, %2, %cst_8 {dimension_numbers = #tpu.dot_dimension_numbers<[1], [0], [0], [1], [0, 0, 1, 1], [], []>} : vector<8x32xf32>, vector<32x96xf32>, vector<8x96xf32> -> vector<8x96xf32>
    %14 = arith.addf %13, %7 : vector<8x96xf32>
    %15 = vector.extract_strided_slice %12 {offsets = [0, 0], sizes = [8, 32], strides = [1, 1]} : vector<8x96xf32> to vector<8x32xf32>
    %16 = vector.extract_strided_slice %14 {offsets = [0, 0], sizes = [8, 32], strides = [1, 1]} : vector<8x96xf32> to vector<8x32xf32>
    %17 = arith.addf %15, %16 : vector<8x32xf32>
    %18 = arith.negf %17 : vector<8x32xf32>
    %19 = math.exp %18 : vector<8x32xf32>
    %cst_9 = arith.constant 1.000000e+00 : f32
    %20 = vector.broadcast %cst_9 : f32 to vector<8x32xf32>
    %21 = arith.addf %20, %19 : vector<8x32xf32>
    %22 = arith.divf %20, %21 : vector<8x32xf32>
    %23 = vector.extract_strided_slice %12 {offsets = [0, 32], sizes = [8, 32], strides = [1, 1]} : vector<8x96xf32> to vector<8x32xf32>
    %24 = vector.extract_strided_slice %14 {offsets = [0, 32], sizes = [8, 32], strides = [1, 1]} : vector<8x96xf32> to vector<8x32xf32>
    %25 = arith.addf %23, %24 : vector<8x32xf32>
    %26 = arith.negf %25 : vector<8x32xf32>
    %27 = math.exp %26 : vector<8x32xf32>
    %cst_10 = arith.constant 1.000000e+00 : f32
    %28 = vector.broadcast %cst_10 : f32 to vector<8x32xf32>
    %29 = arith.addf %28, %27 : vector<8x32xf32>
    %30 = arith.divf %28, %29 : vector<8x32xf32>
    %31 = vector.extract_strided_slice %12 {offsets = [0, 64], sizes = [8, 32], strides = [1, 1]} : vector<8x96xf32> to vector<8x32xf32>
    %32 = vector.extract_strided_slice %14 {offsets = [0, 64], sizes = [8, 32], strides = [1, 1]} : vector<8x96xf32> to vector<8x32xf32>
    %33 = arith.mulf %22, %32 : vector<8x32xf32>
    %34 = arith.addf %31, %33 : vector<8x32xf32>
    %35 = math.tanh %34 : vector<8x32xf32>
    %cst_11 = arith.constant 1.000000e+00 : f32
    %36 = vector.broadcast %cst_11 : f32 to vector<8x32xf32>
    %37 = arith.subf %36, %30 : vector<8x32xf32>
    %38 = arith.mulf %37, %35 : vector<8x32xf32>
    %39 = arith.mulf %30, %11 : vector<8x32xf32>
    %40 = arith.addf %38, %39 : vector<8x32xf32>
    %c0_12 = arith.constant 0 : index
    %c0_13 = arith.constant 0 : index
    %41 = vector.load %arg15[%c0_12, %c0_13] : memref<64x32xf32, #tpu.memory_space<vmem>>, vector<8x32xf32>
    tpu.vector_store %arg15[%c0_12, %c0_13], %40 {strides = array<i32>} : memref<64x32xf32, #tpu.memory_space<vmem>>, vector<8x32xf32>,
    %42 = vector.extract_strided_slice %10 {offsets = [8, 0], sizes = [8, 96], strides = [1, 1]} : vector<64x96xf32> to vector<8x96xf32>
    %cst_14 = arith.constant dense<0.000000e+00> : vector<8x96xf32>
    %43 = tpu.matmul %40, %2, %cst_14 {dimension_numbers = #tpu.dot_dimension_numbers<[1], [0], [0], [1], [0, 0, 1, 1], [], []>} : vector<8x32xf32>, vector<32x96xf32>, vector<8x96xf32> -> vector<8x96xf32>
    %44 = arith.addf %43, %7 : vector<8x96xf32>
    %45 = vector.extract_strided_slice %42 {offsets = [0, 0], sizes = [8, 32], strides = [1, 1]} : vector<8x96xf32> to vector<8x32xf32>
    %46 = vector.extract_strided_slice %44 {offsets = [0, 0], sizes = [8, 32], strides = [1, 1]} : vector<8x96xf32> to vector<8x32xf32>
    %47 = arith.addf %45, %46 : vector<8x32xf32>
    %48 = arith.negf %47 : vector<8x32xf32>
    %49 = math.exp %48 : vector<8x32xf32>
    %cst_15 = arith.constant 1.000000e+00 : f32
    %50 = vector.broadcast %cst_15 : f32 to vector<8x32xf32>
    %51 = arith.addf %50, %49 : vector<8x32xf32>
    %52 = arith.divf %50, %51 : vector<8x32xf32>
    %53 = vector.extract_strided_slice %42 {offsets = [0, 32], sizes = [8, 32], strides = [1, 1]} : vector<8x96xf32> to vector<8x32xf32>
    %54 = vector.extract_strided_slice %44 {offsets = [0, 32], sizes = [8, 32], strides = [1, 1]} : vector<8x96xf32> to vector<8x32xf32>
    %55 = arith.addf %53, %54 : vector<8x32xf32>
    %56 = arith.negf %55 : vector<8x32xf32>
    %57 = math.exp %56 : vector<8x32xf32>
    %cst_16 = arith.constant 1.000000e+00 : f32
    %58 = vector.broadcast %cst_16 : f32 to vector<8x32xf32>
    %59 = arith.addf %58, %57 : vector<8x32xf32>
    %60 = arith.divf %58, %59 : vector<8x32xf32>
    %61 = vector.extract_strided_slice %42 {offsets = [0, 64], sizes = [8, 32], strides = [1, 1]} : vector<8x96xf32> to vector<8x32xf32>
    %62 = vector.extract_strided_slice %44 {offsets = [0, 64], sizes = [8, 32], strides = [1, 1]} : vector<8x96xf32> to vector<8x32xf32>
    %63 = arith.mulf %52, %62 : vector<8x32xf32>
    %64 = arith.addf %61, %63 : vector<8x32xf32>
    %65 = math.tanh %64 : vector<8x32xf32>
    %cst_17 = arith.constant 1.000000e+00 : f32
    %66 = vector.broadcast %cst_17 : f32 to vector<8x32xf32>
    %67 = arith.subf %66, %60 : vector<8x32xf32>
    %68 = arith.mulf %67, %65 : vector<8x32xf32>
    %69 = arith.mulf %60, %40 : vector<8x32xf32>
    %70 = arith.addf %68, %69 : vector<8x32xf32>
    %c8 = arith.constant 8 : index
    %c0_18 = arith.constant 0 : index
    %71 = vector.load %arg15[%c8, %c0_18] : memref<64x32xf32, #tpu.memory_space<vmem>>, vector<8x32xf32>
    tpu.vector_store %arg15[%c8, %c0_18], %70 {strides = array<i32>} : memref<64x32xf32, #tpu.memory_space<vmem>>, vector<8x32xf32>,
    %72 = vector.extract_strided_slice %10 {offsets = [16, 0], sizes = [8, 96], strides = [1, 1]} : vector<64x96xf32> to vector<8x96xf32>
    %cst_19 = arith.constant dense<0.000000e+00> : vector<8x96xf32>
    %73 = tpu.matmul %70, %2, %cst_19 {dimension_numbers = #tpu.dot_dimension_numbers<[1], [0], [0], [1], [0, 0, 1, 1], [], []>} : vector<8x32xf32>, vector<32x96xf32>, vector<8x96xf32> -> vector<8x96xf32>
    %74 = arith.addf %73, %7 : vector<8x96xf32>
    %75 = vector.extract_strided_slice %72 {offsets = [0, 0], sizes = [8, 32], strides = [1, 1]} : vector<8x96xf32> to vector<8x32xf32>
    %76 = vector.extract_strided_slice %74 {offsets = [0, 0], sizes = [8, 32], strides = [1, 1]} : vector<8x96xf32> to vector<8x32xf32>
    %77 = arith.addf %75, %76 : vector<8x32xf32>
    %78 = arith.negf %77 : vector<8x32xf32>
    %79 = math.exp %78 : vector<8x32xf32>
    %cst_20 = arith.constant 1.000000e+00 : f32
    %80 = vector.broadcast %cst_20 : f32 to vector<8x32xf32>
    %81 = arith.addf %80, %79 : vector<8x32xf32>
    %82 = arith.divf %80, %81 : vector<8x32xf32>
    %83 = vector.extract_strided_slice %72 {offsets = [0, 32], sizes = [8, 32], strides = [1, 1]} : vector<8x96xf32> to vector<8x32xf32>
    %84 = vector.extract_strided_slice %74 {offsets = [0, 32], sizes = [8, 32], strides = [1, 1]} : vector<8x96xf32> to vector<8x32xf32>
    %85 = arith.addf %83, %84 : vector<8x32xf32>
    %86 = arith.negf %85 : vector<8x32xf32>
    %87 = math.exp %86 : vector<8x32xf32>
    %cst_21 = arith.constant 1.000000e+00 : f32
    %88 = vector.broadcast %cst_21 : f32 to vector<8x32xf32>
    %89 = arith.addf %88, %87 : vector<8x32xf32>
    %90 = arith.divf %88, %89 : vector<8x32xf32>
    %91 = vector.extract_strided_slice %72 {offsets = [0, 64], sizes = [8, 32], strides = [1, 1]} : vector<8x96xf32> to vector<8x32xf32>
    %92 = vector.extract_strided_slice %74 {offsets = [0, 64], sizes = [8, 32], strides = [1, 1]} : vector<8x96xf32> to vector<8x32xf32>
    %93 = arith.mulf %82, %92 : vector<8x32xf32>
    %94 = arith.addf %91, %93 : vector<8x32xf32>
    %95 = math.tanh %94 : vector<8x32xf32>
    %cst_22 = arith.constant 1.000000e+00 : f32
    %96 = vector.broadcast %cst_22 : f32 to vector<8x32xf32>
    %97 = arith.subf %96, %90 : vector<8x32xf32>
    %98 = arith.mulf %97, %95 : vector<8x32xf32>
    %99 = arith.mulf %90, %70 : vector<8x32xf32>
    %100 = arith.addf %98, %99 : vector<8x32xf32>
    %c16 = arith.constant 16 : index
    %c0_23 = arith.constant 0 : index
    %101 = vector.load %arg15[%c16, %c0_23] : memref<64x32xf32, #tpu.memory_space<vmem>>, vector<8x32xf32>
    tpu.vector_store %arg15[%c16, %c0_23], %100 {strides = array<i32>} : memref<64x32xf32, #tpu.memory_space<vmem>>, vector<8x32xf32>,
    %102 = vector.extract_strided_slice %10 {offsets = [24, 0], sizes = [8, 96], strides = [1, 1]} : vector<64x96xf32> to vector<8x96xf32>
    %cst_24 = arith.constant dense<0.000000e+00> : vector<8x96xf32>
    %103 = tpu.matmul %100, %2, %cst_24 {dimension_numbers = #tpu.dot_dimension_numbers<[1], [0], [0], [1], [0, 0, 1, 1], [], []>} : vector<8x32xf32>, vector<32x96xf32>, vector<8x96xf32> -> vector<8x96xf32>
    %104 = arith.addf %103, %7 : vector<8x96xf32>
    %105 = vector.extract_strided_slice %102 {offsets = [0, 0], sizes = [8, 32], strides = [1, 1]} : vector<8x96xf32> to vector<8x32xf32>
    %106 = vector.extract_strided_slice %104 {offsets = [0, 0], sizes = [8, 32], strides = [1, 1]} : vector<8x96xf32> to vector<8x32xf32>
    %107 = arith.addf %105, %106 : vector<8x32xf32>
    %108 = arith.negf %107 : vector<8x32xf32>
    %109 = math.exp %108 : vector<8x32xf32>
    %cst_25 = arith.constant 1.000000e+00 : f32
    %110 = vector.broadcast %cst_25 : f32 to vector<8x32xf32>
    %111 = arith.addf %110, %109 : vector<8x32xf32>
    %112 = arith.divf %110, %111 : vector<8x32xf32>
    %113 = vector.extract_strided_slice %102 {offsets = [0, 32], sizes = [8, 32], strides = [1, 1]} : vector<8x96xf32> to vector<8x32xf32>
    %114 = vector.extract_strided_slice %104 {offsets = [0, 32], sizes = [8, 32], strides = [1, 1]} : vector<8x96xf32> to vector<8x32xf32>
    %115 = arith.addf %113, %114 : vector<8x32xf32>
    %116 = arith.negf %115 : vector<8x32xf32>
    %117 = math.exp %116 : vector<8x32xf32>
    %cst_26 = arith.constant 1.000000e+00 : f32
    %118 = vector.broadcast %cst_26 : f32 to vector<8x32xf32>
    %119 = arith.addf %118, %117 : vector<8x32xf32>
    %120 = arith.divf %118, %119 : vector<8x32xf32>
    %121 = vector.extract_strided_slice %102 {offsets = [0, 64], sizes = [8, 32], strides = [1, 1]} : vector<8x96xf32> to vector<8x32xf32>
    %122 = vector.extract_strided_slice %104 {offsets = [0, 64], sizes = [8, 32], strides = [1, 1]} : vector<8x96xf32> to vector<8x32xf32>
    %123 = arith.mulf %112, %122 : vector<8x32xf32>
    %124 = arith.addf %121, %123 : vector<8x32xf32>
    %125 = math.tanh %124 : vector<8x32xf32>
    %cst_27 = arith.constant 1.000000e+00 : f32
    %126 = vector.broadcast %cst_27 : f32 to vector<8x32xf32>
    %127 = arith.subf %126, %120 : vector<8x32xf32>
    %128 = arith.mulf %127, %125 : vector<8x32xf32>
    %129 = arith.mulf %120, %100 : vector<8x32xf32>
    %130 = arith.addf %128, %129 : vector<8x32xf32>
    %c24 = arith.constant 24 : index
    %c0_28 = arith.constant 0 : index
    %131 = vector.load %arg15[%c24, %c0_28] : memref<64x32xf32, #tpu.memory_space<vmem>>, vector<8x32xf32>
    tpu.vector_store %arg15[%c24, %c0_28], %130 {strides = array<i32>} : memref<64x32xf32, #tpu.memory_space<vmem>>, vector<8x32xf32>,
    %132 = vector.extract_strided_slice %10 {offsets = [32, 0], sizes = [8, 96], strides = [1, 1]} : vector<64x96xf32> to vector<8x96xf32>
    %cst_29 = arith.constant dense<0.000000e+00> : vector<8x96xf32>
    %133 = tpu.matmul %130, %2, %cst_29 {dimension_numbers = #tpu.dot_dimension_numbers<[1], [0], [0], [1], [0, 0, 1, 1], [], []>} : vector<8x32xf32>, vector<32x96xf32>, vector<8x96xf32> -> vector<8x96xf32>
    %134 = arith.addf %133, %7 : vector<8x96xf32>
    %135 = vector.extract_strided_slice %132 {offsets = [0, 0], sizes = [8, 32], strides = [1, 1]} : vector<8x96xf32> to vector<8x32xf32>
    %136 = vector.extract_strided_slice %134 {offsets = [0, 0], sizes = [8, 32], strides = [1, 1]} : vector<8x96xf32> to vector<8x32xf32>
    %137 = arith.addf %135, %136 : vector<8x32xf32>
    %138 = arith.negf %137 : vector<8x32xf32>
    %139 = math.exp %138 : vector<8x32xf32>
    %cst_30 = arith.constant 1.000000e+00 : f32
    %140 = vector.broadcast %cst_30 : f32 to vector<8x32xf32>
    %141 = arith.addf %140, %139 : vector<8x32xf32>
    %142 = arith.divf %140, %141 : vector<8x32xf32>
    %143 = vector.extract_strided_slice %132 {offsets = [0, 32], sizes = [8, 32], strides = [1, 1]} : vector<8x96xf32> to vector<8x32xf32>
    %144 = vector.extract_strided_slice %134 {offsets = [0, 32], sizes = [8, 32], strides = [1, 1]} : vector<8x96xf32> to vector<8x32xf32>
    %145 = arith.addf %143, %144 : vector<8x32xf32>
    %146 = arith.negf %145 : vector<8x32xf32>
    %147 = math.exp %146 : vector<8x32xf32>
    %cst_31 = arith.constant 1.000000e+00 : f32
    %148 = vector.broadcast %cst_31 : f32 to vector<8x32xf32>
    %149 = arith.addf %148, %147 : vector<8x32xf32>
    %150 = arith.divf %148, %149 : vector<8x32xf32>
    %151 = vector.extract_strided_slice %132 {offsets = [0, 64], sizes = [8, 32], strides = [1, 1]} : vector<8x96xf32> to vector<8x32xf32>
    %152 = vector.extract_strided_slice %134 {offsets = [0, 64], sizes = [8, 32], strides = [1, 1]} : vector<8x96xf32> to vector<8x32xf32>
    %153 = arith.mulf %142, %152 : vector<8x32xf32>
    %154 = arith.addf %151, %153 : vector<8x32xf32>
    %155 = math.tanh %154 : vector<8x32xf32>
    %cst_32 = arith.constant 1.000000e+00 : f32
    %156 = vector.broadcast %cst_32 : f32 to vector<8x32xf32>
    %157 = arith.subf %156, %150 : vector<8x32xf32>
    %158 = arith.mulf %157, %155 : vector<8x32xf32>
    %159 = arith.mulf %150, %130 : vector<8x32xf32>
    %160 = arith.addf %158, %159 : vector<8x32xf32>
    %c32 = arith.constant 32 : index
    %c0_33 = arith.constant 0 : index
    %161 = vector.load %arg15[%c32, %c0_33] : memref<64x32xf32, #tpu.memory_space<vmem>>, vector<8x32xf32>
    tpu.vector_store %arg15[%c32, %c0_33], %160 {strides = array<i32>} : memref<64x32xf32, #tpu.memory_space<vmem>>, vector<8x32xf32>,
    %162 = vector.extract_strided_slice %10 {offsets = [40, 0], sizes = [8, 96], strides = [1, 1]} : vector<64x96xf32> to vector<8x96xf32>
    %cst_34 = arith.constant dense<0.000000e+00> : vector<8x96xf32>
    %163 = tpu.matmul %160, %2, %cst_34 {dimension_numbers = #tpu.dot_dimension_numbers<[1], [0], [0], [1], [0, 0, 1, 1], [], []>} : vector<8x32xf32>, vector<32x96xf32>, vector<8x96xf32> -> vector<8x96xf32>
    %164 = arith.addf %163, %7 : vector<8x96xf32>
    %165 = vector.extract_strided_slice %162 {offsets = [0, 0], sizes = [8, 32], strides = [1, 1]} : vector<8x96xf32> to vector<8x32xf32>
    %166 = vector.extract_strided_slice %164 {offsets = [0, 0], sizes = [8, 32], strides = [1, 1]} : vector<8x96xf32> to vector<8x32xf32>
    %167 = arith.addf %165, %166 : vector<8x32xf32>
    %168 = arith.negf %167 : vector<8x32xf32>
    %169 = math.exp %168 : vector<8x32xf32>
    %cst_35 = arith.constant 1.000000e+00 : f32
    %170 = vector.broadcast %cst_35 : f32 to vector<8x32xf32>
    %171 = arith.addf %170, %169 : vector<8x32xf32>
    %172 = arith.divf %170, %171 : vector<8x32xf32>
    %173 = vector.extract_strided_slice %162 {offsets = [0, 32], sizes = [8, 32], strides = [1, 1]} : vector<8x96xf32> to vector<8x32xf32>
    %174 = vector.extract_strided_slice %164 {offsets = [0, 32], sizes = [8, 32], strides = [1, 1]} : vector<8x96xf32> to vector<8x32xf32>
    %175 = arith.addf %173, %174 : vector<8x32xf32>
    %176 = arith.negf %175 : vector<8x32xf32>
    %177 = math.exp %176 : vector<8x32xf32>
    %cst_36 = arith.constant 1.000000e+00 : f32
    %178 = vector.broadcast %cst_36 : f32 to vector<8x32xf32>
    %179 = arith.addf %178, %177 : vector<8x32xf32>
    %180 = arith.divf %178, %179 : vector<8x32xf32>
    %181 = vector.extract_strided_slice %162 {offsets = [0, 64], sizes = [8, 32], strides = [1, 1]} : vector<8x96xf32> to vector<8x32xf32>
    %182 = vector.extract_strided_slice %164 {offsets = [0, 64], sizes = [8, 32], strides = [1, 1]} : vector<8x96xf32> to vector<8x32xf32>
    %183 = arith.mulf %172, %182 : vector<8x32xf32>
    %184 = arith.addf %181, %183 : vector<8x32xf32>
    %185 = math.tanh %184 : vector<8x32xf32>
    %cst_37 = arith.constant 1.000000e+00 : f32
    %186 = vector.broadcast %cst_37 : f32 to vector<8x32xf32>
    %187 = arith.subf %186, %180 : vector<8x32xf32>
    %188 = arith.mulf %187, %185 : vector<8x32xf32>
    %189 = arith.mulf %180, %160 : vector<8x32xf32>
    %190 = arith.addf %188, %189 : vector<8x32xf32>
    %c40 = arith.constant 40 : index
    %c0_38 = arith.constant 0 : index
    %191 = vector.load %arg15[%c40, %c0_38] : memref<64x32xf32, #tpu.memory_space<vmem>>, vector<8x32xf32>
    tpu.vector_store %arg15[%c40, %c0_38], %190 {strides = array<i32>} : memref<64x32xf32, #tpu.memory_space<vmem>>, vector<8x32xf32>,
    %192 = vector.extract_strided_slice %10 {offsets = [48, 0], sizes = [8, 96], strides = [1, 1]} : vector<64x96xf32> to vector<8x96xf32>
    %cst_39 = arith.constant dense<0.000000e+00> : vector<8x96xf32>
    %193 = tpu.matmul %190, %2, %cst_39 {dimension_numbers = #tpu.dot_dimension_numbers<[1], [0], [0], [1], [0, 0, 1, 1], [], []>} : vector<8x32xf32>, vector<32x96xf32>, vector<8x96xf32> -> vector<8x96xf32>
    %194 = arith.addf %193, %7 : vector<8x96xf32>
    %195 = vector.extract_strided_slice %192 {offsets = [0, 0], sizes = [8, 32], strides = [1, 1]} : vector<8x96xf32> to vector<8x32xf32>
    %196 = vector.extract_strided_slice %194 {offsets = [0, 0], sizes = [8, 32], strides = [1, 1]} : vector<8x96xf32> to vector<8x32xf32>
    %197 = arith.addf %195, %196 : vector<8x32xf32>
    %198 = arith.negf %197 : vector<8x32xf32>
    %199 = math.exp %198 : vector<8x32xf32>
    %cst_40 = arith.constant 1.000000e+00 : f32
    %200 = vector.broadcast %cst_40 : f32 to vector<8x32xf32>
    %201 = arith.addf %200, %199 : vector<8x32xf32>
    %202 = arith.divf %200, %201 : vector<8x32xf32>
    %203 = vector.extract_strided_slice %192 {offsets = [0, 32], sizes = [8, 32], strides = [1, 1]} : vector<8x96xf32> to vector<8x32xf32>
    %204 = vector.extract_strided_slice %194 {offsets = [0, 32], sizes = [8, 32], strides = [1, 1]} : vector<8x96xf32> to vector<8x32xf32>
    %205 = arith.addf %203, %204 : vector<8x32xf32>
    %206 = arith.negf %205 : vector<8x32xf32>
    %207 = math.exp %206 : vector<8x32xf32>
    %cst_41 = arith.constant 1.000000e+00 : f32
    %208 = vector.broadcast %cst_41 : f32 to vector<8x32xf32>
    %209 = arith.addf %208, %207 : vector<8x32xf32>
    %210 = arith.divf %208, %209 : vector<8x32xf32>
    %211 = vector.extract_strided_slice %192 {offsets = [0, 64], sizes = [8, 32], strides = [1, 1]} : vector<8x96xf32> to vector<8x32xf32>
    %212 = vector.extract_strided_slice %194 {offsets = [0, 64], sizes = [8, 32], strides = [1, 1]} : vector<8x96xf32> to vector<8x32xf32>
    %213 = arith.mulf %202, %212 : vector<8x32xf32>
    %214 = arith.addf %211, %213 : vector<8x32xf32>
    %215 = math.tanh %214 : vector<8x32xf32>
    %cst_42 = arith.constant 1.000000e+00 : f32
    %216 = vector.broadcast %cst_42 : f32 to vector<8x32xf32>
    %217 = arith.subf %216, %210 : vector<8x32xf32>
    %218 = arith.mulf %217, %215 : vector<8x32xf32>
    %219 = arith.mulf %210, %190 : vector<8x32xf32>
    %220 = arith.addf %218, %219 : vector<8x32xf32>
    %c48 = arith.constant 48 : index
    %c0_43 = arith.constant 0 : index
    %221 = vector.load %arg15[%c48, %c0_43] : memref<64x32xf32, #tpu.memory_space<vmem>>, vector<8x32xf32>
    tpu.vector_store %arg15[%c48, %c0_43], %220 {strides = array<i32>} : memref<64x32xf32, #tpu.memory_space<vmem>>, vector<8x32xf32>,
    %222 = vector.extract_strided_slice %10 {offsets = [56, 0], sizes = [8, 96], strides = [1, 1]} : vector<64x96xf32> to vector<8x96xf32>
    %cst_44 = arith.constant dense<0.000000e+00> : vector<8x96xf32>
    %223 = tpu.matmul %220, %2, %cst_44 {dimension_numbers = #tpu.dot_dimension_numbers<[1], [0], [0], [1], [0, 0, 1, 1], [], []>} : vector<8x32xf32>, vector<32x96xf32>, vector<8x96xf32> -> vector<8x96xf32>
    %224 = arith.addf %223, %7 : vector<8x96xf32>
    %225 = vector.extract_strided_slice %222 {offsets = [0, 0], sizes = [8, 32], strides = [1, 1]} : vector<8x96xf32> to vector<8x32xf32>
    %226 = vector.extract_strided_slice %224 {offsets = [0, 0], sizes = [8, 32], strides = [1, 1]} : vector<8x96xf32> to vector<8x32xf32>
    %227 = arith.addf %225, %226 : vector<8x32xf32>
    %228 = arith.negf %227 : vector<8x32xf32>
    %229 = math.exp %228 : vector<8x32xf32>
    %cst_45 = arith.constant 1.000000e+00 : f32
    %230 = vector.broadcast %cst_45 : f32 to vector<8x32xf32>
    %231 = arith.addf %230, %229 : vector<8x32xf32>
    %232 = arith.divf %230, %231 : vector<8x32xf32>
    %233 = vector.extract_strided_slice %222 {offsets = [0, 32], sizes = [8, 32], strides = [1, 1]} : vector<8x96xf32> to vector<8x32xf32>
    %234 = vector.extract_strided_slice %224 {offsets = [0, 32], sizes = [8, 32], strides = [1, 1]} : vector<8x96xf32> to vector<8x32xf32>
    %235 = arith.addf %233, %234 : vector<8x32xf32>
    %236 = arith.negf %235 : vector<8x32xf32>
    %237 = math.exp %236 : vector<8x32xf32>
    %cst_46 = arith.constant 1.000000e+00 : f32
    %238 = vector.broadcast %cst_46 : f32 to vector<8x32xf32>
    %239 = arith.addf %238, %237 : vector<8x32xf32>
    %240 = arith.divf %238, %239 : vector<8x32xf32>
    %241 = vector.extract_strided_slice %222 {offsets = [0, 64], sizes = [8, 32], strides = [1, 1]} : vector<8x96xf32> to vector<8x32xf32>
    %242 = vector.extract_strided_slice %224 {offsets = [0, 64], sizes = [8, 32], strides = [1, 1]} : vector<8x96xf32> to vector<8x32xf32>
    %243 = arith.mulf %232, %242 : vector<8x32xf32>
    %244 = arith.addf %241, %243 : vector<8x32xf32>
    %245 = math.tanh %244 : vector<8x32xf32>
    %cst_47 = arith.constant 1.000000e+00 : f32
    %246 = vector.broadcast %cst_47 : f32 to vector<8x32xf32>
    %247 = arith.subf %246, %240 : vector<8x32xf32>
    %248 = arith.mulf %247, %245 : vector<8x32xf32>
    %249 = arith.mulf %240, %220 : vector<8x32xf32>
    %250 = arith.addf %248, %249 : vector<8x32xf32>
    %c56 = arith.constant 56 : index
    %c0_48 = arith.constant 0 : index
    %251 = vector.load %arg15[%c56, %c0_48] : memref<64x32xf32, #tpu.memory_space<vmem>>, vector<8x32xf32>
    tpu.vector_store %arg15[%c56, %c0_48], %250 {strides = array<i32>} : memref<64x32xf32, #tpu.memory_space<vmem>>, vector<8x32xf32>,
    %c0_49 = arith.constant 0 : index
    %c0_50 = arith.constant 0 : index
    %252 = vector.load %arg16[%c0_49, %c0_50] : memref<16x32xf32, #tpu.memory_space<vmem>>, vector<8x32xf32>
    tpu.vector_store %arg16[%c0_49, %c0_50], %250 {strides = array<i32>} : memref<16x32xf32, #tpu.memory_space<vmem>>, vector<8x32xf32>,
    %c0_51 = arith.constant 0 : index
    %c0_52 = arith.constant 0 : index
    %253 = vector.load %arg15[%c0_51, %c0_52] : memref<64x32xf32, #tpu.memory_space<vmem>>, vector<64x32xf32>
    %c0_53 = arith.constant 0 : index
    %c0_54 = arith.constant 0 : index
    %254 = vector.load %arg4[%c0_53, %c0_54] : memref<32x96xf32, #tpu.memory_space<vmem>>, vector<32x96xf32>
    %c0_55 = arith.constant 0 : index
    %c0_56 = arith.constant 0 : index
    %255 = vector.load %arg5[%c0_55, %c0_56] : memref<32x96xf32, #tpu.memory_space<vmem>>, vector<32x96xf32>
    %c0_57 = arith.constant 0 : index
    %c0_58 = arith.constant 0 : index
    %256 = vector.load %arg6[%c0_57, %c0_58] : memref<2x96xf32, #tpu.memory_space<vmem>>, vector<2x96xf32>
    %257 = vector.extract_strided_slice %256 {offsets = [0, 0], sizes = [1, 96], strides = [1, 1]} : vector<2x96xf32> to vector<1x96xf32>
    %258 = vector.extract_strided_slice %256 {offsets = [1, 0], sizes = [1, 96], strides = [1, 1]} : vector<2x96xf32> to vector<1x96xf32>
    %259 = vector.shape_cast %258 : vector<1x96xf32> to vector<1x96xf32>
    %260 = vector.broadcast %259 : vector<1x96xf32> to vector<8x96xf32>
    %cst_59 = arith.constant dense<0.000000e+00> : vector<64x96xf32>
    %261 = tpu.matmul %253, %254, %cst_59 {dimension_numbers = #tpu.dot_dimension_numbers<[1], [0], [0], [1], [0, 0, 1, 1], [], []>} : vector<64x32xf32>, vector<32x96xf32>, vector<64x96xf32> -> vector<64x96xf32>
    %262 = vector.broadcast %257 : vector<1x96xf32> to vector<64x96xf32>
    %263 = arith.addf %261, %262 : vector<64x96xf32>
    %cst_60 = arith.constant 0.000000e+00 : f32
    %264 = vector.broadcast %cst_60 : f32 to vector<8x32xf32>
    %265 = vector.extract_strided_slice %263 {offsets = [0, 0], sizes = [8, 96], strides = [1, 1]} : vector<64x96xf32> to vector<8x96xf32>
    %cst_61 = arith.constant dense<0.000000e+00> : vector<8x96xf32>
    %266 = tpu.matmul %264, %255, %cst_61 {dimension_numbers = #tpu.dot_dimension_numbers<[1], [0], [0], [1], [0, 0, 1, 1], [], []>} : vector<8x32xf32>, vector<32x96xf32>, vector<8x96xf32> -> vector<8x96xf32>
    %267 = arith.addf %266, %260 : vector<8x96xf32>
    %268 = vector.extract_strided_slice %265 {offsets = [0, 0], sizes = [8, 32], strides = [1, 1]} : vector<8x96xf32> to vector<8x32xf32>
    %269 = vector.extract_strided_slice %267 {offsets = [0, 0], sizes = [8, 32], strides = [1, 1]} : vector<8x96xf32> to vector<8x32xf32>
    %270 = arith.addf %268, %269 : vector<8x32xf32>
    %271 = arith.negf %270 : vector<8x32xf32>
    %272 = math.exp %271 : vector<8x32xf32>
    %cst_62 = arith.constant 1.000000e+00 : f32
    %273 = vector.broadcast %cst_62 : f32 to vector<8x32xf32>
    %274 = arith.addf %273, %272 : vector<8x32xf32>
    %275 = arith.divf %273, %274 : vector<8x32xf32>
    %276 = vector.extract_strided_slice %265 {offsets = [0, 32], sizes = [8, 32], strides = [1, 1]} : vector<8x96xf32> to vector<8x32xf32>
    %277 = vector.extract_strided_slice %267 {offsets = [0, 32], sizes = [8, 32], strides = [1, 1]} : vector<8x96xf32> to vector<8x32xf32>
    %278 = arith.addf %276, %277 : vector<8x32xf32>
    %279 = arith.negf %278 : vector<8x32xf32>
    %280 = math.exp %279 : vector<8x32xf32>
    %cst_63 = arith.constant 1.000000e+00 : f32
    %281 = vector.broadcast %cst_63 : f32 to vector<8x32xf32>
    %282 = arith.addf %281, %280 : vector<8x32xf32>
    %283 = arith.divf %281, %282 : vector<8x32xf32>
    %284 = vector.extract_strided_slice %265 {offsets = [0, 64], sizes = [8, 32], strides = [1, 1]} : vector<8x96xf32> to vector<8x32xf32>
    %285 = vector.extract_strided_slice %267 {offsets = [0, 64], sizes = [8, 32], strides = [1, 1]} : vector<8x96xf32> to vector<8x32xf32>
    %286 = arith.mulf %275, %285 : vector<8x32xf32>
    %287 = arith.addf %284, %286 : vector<8x32xf32>
    %288 = math.tanh %287 : vector<8x32xf32>
    %cst_64 = arith.constant 1.000000e+00 : f32
    %289 = vector.broadcast %cst_64 : f32 to vector<8x32xf32>
    %290 = arith.subf %289, %283 : vector<8x32xf32>
    %291 = arith.mulf %290, %288 : vector<8x32xf32>
    %292 = arith.mulf %283, %264 : vector<8x32xf32>
    %293 = arith.addf %291, %292 : vector<8x32xf32>
    %c0_65 = arith.constant 0 : index
    %c0_66 = arith.constant 0 : index
    %294 = vector.load %arg15[%c0_65, %c0_66] : memref<64x32xf32, #tpu.memory_space<vmem>>, vector<8x32xf32>
    tpu.vector_store %arg15[%c0_65, %c0_66], %293 {strides = array<i32>} : memref<64x32xf32, #tpu.memory_space<vmem>>, vector<8x32xf32>,
    %295 = vector.extract_strided_slice %263 {offsets = [8, 0], sizes = [8, 96], strides = [1, 1]} : vector<64x96xf32> to vector<8x96xf32>
    %cst_67 = arith.constant dense<0.000000e+00> : vector<8x96xf32>
    %296 = tpu.matmul %293, %255, %cst_67 {dimension_numbers = #tpu.dot_dimension_numbers<[1], [0], [0], [1], [0, 0, 1, 1], [], []>} : vector<8x32xf32>, vector<32x96xf32>, vector<8x96xf32> -> vector<8x96xf32>
    %297 = arith.addf %296, %260 : vector<8x96xf32>
    %298 = vector.extract_strided_slice %295 {offsets = [0, 0], sizes = [8, 32], strides = [1, 1]} : vector<8x96xf32> to vector<8x32xf32>
    %299 = vector.extract_strided_slice %297 {offsets = [0, 0], sizes = [8, 32], strides = [1, 1]} : vector<8x96xf32> to vector<8x32xf32>
    %300 = arith.addf %298, %299 : vector<8x32xf32>
    %301 = arith.negf %300 : vector<8x32xf32>
    %302 = math.exp %301 : vector<8x32xf32>
    %cst_68 = arith.constant 1.000000e+00 : f32
    %303 = vector.broadcast %cst_68 : f32 to vector<8x32xf32>
    %304 = arith.addf %303, %302 : vector<8x32xf32>
    %305 = arith.divf %303, %304 : vector<8x32xf32>
    %306 = vector.extract_strided_slice %295 {offsets = [0, 32], sizes = [8, 32], strides = [1, 1]} : vector<8x96xf32> to vector<8x32xf32>
    %307 = vector.extract_strided_slice %297 {offsets = [0, 32], sizes = [8, 32], strides = [1, 1]} : vector<8x96xf32> to vector<8x32xf32>
    %308 = arith.addf %306, %307 : vector<8x32xf32>
    %309 = arith.negf %308 : vector<8x32xf32>
    %310 = math.exp %309 : vector<8x32xf32>
    %cst_69 = arith.constant 1.000000e+00 : f32
    %311 = vector.broadcast %cst_69 : f32 to vector<8x32xf32>
    %312 = arith.addf %311, %310 : vector<8x32xf32>
    %313 = arith.divf %311, %312 : vector<8x32xf32>
    %314 = vector.extract_strided_slice %295 {offsets = [0, 64], sizes = [8, 32], strides = [1, 1]} : vector<8x96xf32> to vector<8x32xf32>
    %315 = vector.extract_strided_slice %297 {offsets = [0, 64], sizes = [8, 32], strides = [1, 1]} : vector<8x96xf32> to vector<8x32xf32>
    %316 = arith.mulf %305, %315 : vector<8x32xf32>
    %317 = arith.addf %314, %316 : vector<8x32xf32>
    %318 = math.tanh %317 : vector<8x32xf32>
    %cst_70 = arith.constant 1.000000e+00 : f32
    %319 = vector.broadcast %cst_70 : f32 to vector<8x32xf32>
    %320 = arith.subf %319, %313 : vector<8x32xf32>
    %321 = arith.mulf %320, %318 : vector<8x32xf32>
    %322 = arith.mulf %313, %293 : vector<8x32xf32>
    %323 = arith.addf %321, %322 : vector<8x32xf32>
    %c8_71 = arith.constant 8 : index
    %c0_72 = arith.constant 0 : index
    %324 = vector.load %arg15[%c8_71, %c0_72] : memref<64x32xf32, #tpu.memory_space<vmem>>, vector<8x32xf32>
    tpu.vector_store %arg15[%c8_71, %c0_72], %323 {strides = array<i32>} : memref<64x32xf32, #tpu.memory_space<vmem>>, vector<8x32xf32>,
    %325 = vector.extract_strided_slice %263 {offsets = [16, 0], sizes = [8, 96], strides = [1, 1]} : vector<64x96xf32> to vector<8x96xf32>
    %cst_73 = arith.constant dense<0.000000e+00> : vector<8x96xf32>
    %326 = tpu.matmul %323, %255, %cst_73 {dimension_numbers = #tpu.dot_dimension_numbers<[1], [0], [0], [1], [0, 0, 1, 1], [], []>} : vector<8x32xf32>, vector<32x96xf32>, vector<8x96xf32> -> vector<8x96xf32>
    %327 = arith.addf %326, %260 : vector<8x96xf32>
    %328 = vector.extract_strided_slice %325 {offsets = [0, 0], sizes = [8, 32], strides = [1, 1]} : vector<8x96xf32> to vector<8x32xf32>
    %329 = vector.extract_strided_slice %327 {offsets = [0, 0], sizes = [8, 32], strides = [1, 1]} : vector<8x96xf32> to vector<8x32xf32>
    %330 = arith.addf %328, %329 : vector<8x32xf32>
    %331 = arith.negf %330 : vector<8x32xf32>
    %332 = math.exp %331 : vector<8x32xf32>
    %cst_74 = arith.constant 1.000000e+00 : f32
    %333 = vector.broadcast %cst_74 : f32 to vector<8x32xf32>
    %334 = arith.addf %333, %332 : vector<8x32xf32>
    %335 = arith.divf %333, %334 : vector<8x32xf32>
    %336 = vector.extract_strided_slice %325 {offsets = [0, 32], sizes = [8, 32], strides = [1, 1]} : vector<8x96xf32> to vector<8x32xf32>
    %337 = vector.extract_strided_slice %327 {offsets = [0, 32], sizes = [8, 32], strides = [1, 1]} : vector<8x96xf32> to vector<8x32xf32>
    %338 = arith.addf %336, %337 : vector<8x32xf32>
    %339 = arith.negf %338 : vector<8x32xf32>
    %340 = math.exp %339 : vector<8x32xf32>
    %cst_75 = arith.constant 1.000000e+00 : f32
    %341 = vector.broadcast %cst_75 : f32 to vector<8x32xf32>
    %342 = arith.addf %341, %340 : vector<8x32xf32>
    %343 = arith.divf %341, %342 : vector<8x32xf32>
    %344 = vector.extract_strided_slice %325 {offsets = [0, 64], sizes = [8, 32], strides = [1, 1]} : vector<8x96xf32> to vector<8x32xf32>
    %345 = vector.extract_strided_slice %327 {offsets = [0, 64], sizes = [8, 32], strides = [1, 1]} : vector<8x96xf32> to vector<8x32xf32>
    %346 = arith.mulf %335, %345 : vector<8x32xf32>
    %347 = arith.addf %344, %346 : vector<8x32xf32>
    %348 = math.tanh %347 : vector<8x32xf32>
    %cst_76 = arith.constant 1.000000e+00 : f32
    %349 = vector.broadcast %cst_76 : f32 to vector<8x32xf32>
    %350 = arith.subf %349, %343 : vector<8x32xf32>
    %351 = arith.mulf %350, %348 : vector<8x32xf32>
    %352 = arith.mulf %343, %323 : vector<8x32xf32>
    %353 = arith.addf %351, %352 : vector<8x32xf32>
    %c16_77 = arith.constant 16 : index
    %c0_78 = arith.constant 0 : index
    %354 = vector.load %arg15[%c16_77, %c0_78] : memref<64x32xf32, #tpu.memory_space<vmem>>, vector<8x32xf32>
    tpu.vector_store %arg15[%c16_77, %c0_78], %353 {strides = array<i32>} : memref<64x32xf32, #tpu.memory_space<vmem>>, vector<8x32xf32>,
    %355 = vector.extract_strided_slice %263 {offsets = [24, 0], sizes = [8, 96], strides = [1, 1]} : vector<64x96xf32> to vector<8x96xf32>
    %cst_79 = arith.constant dense<0.000000e+00> : vector<8x96xf32>
    %356 = tpu.matmul %353, %255, %cst_79 {dimension_numbers = #tpu.dot_dimension_numbers<[1], [0], [0], [1], [0, 0, 1, 1], [], []>} : vector<8x32xf32>, vector<32x96xf32>, vector<8x96xf32> -> vector<8x96xf32>
    %357 = arith.addf %356, %260 : vector<8x96xf32>
    %358 = vector.extract_strided_slice %355 {offsets = [0, 0], sizes = [8, 32], strides = [1, 1]} : vector<8x96xf32> to vector<8x32xf32>
    %359 = vector.extract_strided_slice %357 {offsets = [0, 0], sizes = [8, 32], strides = [1, 1]} : vector<8x96xf32> to vector<8x32xf32>
    %360 = arith.addf %358, %359 : vector<8x32xf32>
    %361 = arith.negf %360 : vector<8x32xf32>
    %362 = math.exp %361 : vector<8x32xf32>
    %cst_80 = arith.constant 1.000000e+00 : f32
    %363 = vector.broadcast %cst_80 : f32 to vector<8x32xf32>
    %364 = arith.addf %363, %362 : vector<8x32xf32>
    %365 = arith.divf %363, %364 : vector<8x32xf32>
    %366 = vector.extract_strided_slice %355 {offsets = [0, 32], sizes = [8, 32], strides = [1, 1]} : vector<8x96xf32> to vector<8x32xf32>
    %367 = vector.extract_strided_slice %357 {offsets = [0, 32], sizes = [8, 32], strides = [1, 1]} : vector<8x96xf32> to vector<8x32xf32>
    %368 = arith.addf %366, %367 : vector<8x32xf32>
    %369 = arith.negf %368 : vector<8x32xf32>
    %370 = math.exp %369 : vector<8x32xf32>
    %cst_81 = arith.constant 1.000000e+00 : f32
    %371 = vector.broadcast %cst_81 : f32 to vector<8x32xf32>
    %372 = arith.addf %371, %370 : vector<8x32xf32>
    %373 = arith.divf %371, %372 : vector<8x32xf32>
    %374 = vector.extract_strided_slice %355 {offsets = [0, 64], sizes = [8, 32], strides = [1, 1]} : vector<8x96xf32> to vector<8x32xf32>
    %375 = vector.extract_strided_slice %357 {offsets = [0, 64], sizes = [8, 32], strides = [1, 1]} : vector<8x96xf32> to vector<8x32xf32>
    %376 = arith.mulf %365, %375 : vector<8x32xf32>
    %377 = arith.addf %374, %376 : vector<8x32xf32>
    %378 = math.tanh %377 : vector<8x32xf32>
    %cst_82 = arith.constant 1.000000e+00 : f32
    %379 = vector.broadcast %cst_82 : f32 to vector<8x32xf32>
    %380 = arith.subf %379, %373 : vector<8x32xf32>
    %381 = arith.mulf %380, %378 : vector<8x32xf32>
    %382 = arith.mulf %373, %353 : vector<8x32xf32>
    %383 = arith.addf %381, %382 : vector<8x32xf32>
    %c24_83 = arith.constant 24 : index
    %c0_84 = arith.constant 0 : index
    %384 = vector.load %arg15[%c24_83, %c0_84] : memref<64x32xf32, #tpu.memory_space<vmem>>, vector<8x32xf32>
    tpu.vector_store %arg15[%c24_83, %c0_84], %383 {strides = array<i32>} : memref<64x32xf32, #tpu.memory_space<vmem>>, vector<8x32xf32>,
    %385 = vector.extract_strided_slice %263 {offsets = [32, 0], sizes = [8, 96], strides = [1, 1]} : vector<64x96xf32> to vector<8x96xf32>
    %cst_85 = arith.constant dense<0.000000e+00> : vector<8x96xf32>
    %386 = tpu.matmul %383, %255, %cst_85 {dimension_numbers = #tpu.dot_dimension_numbers<[1], [0], [0], [1], [0, 0, 1, 1], [], []>} : vector<8x32xf32>, vector<32x96xf32>, vector<8x96xf32> -> vector<8x96xf32>
    %387 = arith.addf %386, %260 : vector<8x96xf32>
    %388 = vector.extract_strided_slice %385 {offsets = [0, 0], sizes = [8, 32], strides = [1, 1]} : vector<8x96xf32> to vector<8x32xf32>
    %389 = vector.extract_strided_slice %387 {offsets = [0, 0], sizes = [8, 32], strides = [1, 1]} : vector<8x96xf32> to vector<8x32xf32>
    %390 = arith.addf %388, %389 : vector<8x32xf32>
    %391 = arith.negf %390 : vector<8x32xf32>
    %392 = math.exp %391 : vector<8x32xf32>
    %cst_86 = arith.constant 1.000000e+00 : f32
    %393 = vector.broadcast %cst_86 : f32 to vector<8x32xf32>
    %394 = arith.addf %393, %392 : vector<8x32xf32>
    %395 = arith.divf %393, %394 : vector<8x32xf32>
    %396 = vector.extract_strided_slice %385 {offsets = [0, 32], sizes = [8, 32], strides = [1, 1]} : vector<8x96xf32> to vector<8x32xf32>
    %397 = vector.extract_strided_slice %387 {offsets = [0, 32], sizes = [8, 32], strides = [1, 1]} : vector<8x96xf32> to vector<8x32xf32>
    %398 = arith.addf %396, %397 : vector<8x32xf32>
    %399 = arith.negf %398 : vector<8x32xf32>
    %400 = math.exp %399 : vector<8x32xf32>
    %cst_87 = arith.constant 1.000000e+00 : f32
    %401 = vector.broadcast %cst_87 : f32 to vector<8x32xf32>
    %402 = arith.addf %401, %400 : vector<8x32xf32>
    %403 = arith.divf %401, %402 : vector<8x32xf32>
    %404 = vector.extract_strided_slice %385 {offsets = [0, 64], sizes = [8, 32], strides = [1, 1]} : vector<8x96xf32> to vector<8x32xf32>
    %405 = vector.extract_strided_slice %387 {offsets = [0, 64], sizes = [8, 32], strides = [1, 1]} : vector<8x96xf32> to vector<8x32xf32>
    %406 = arith.mulf %395, %405 : vector<8x32xf32>
    %407 = arith.addf %404, %406 : vector<8x32xf32>
    %408 = math.tanh %407 : vector<8x32xf32>
    %cst_88 = arith.constant 1.000000e+00 : f32
    %409 = vector.broadcast %cst_88 : f32 to vector<8x32xf32>
    %410 = arith.subf %409, %403 : vector<8x32xf32>
    %411 = arith.mulf %410, %408 : vector<8x32xf32>
    %412 = arith.mulf %403, %383 : vector<8x32xf32>
    %413 = arith.addf %411, %412 : vector<8x32xf32>
    %c32_89 = arith.constant 32 : index
    %c0_90 = arith.constant 0 : index
    %414 = vector.load %arg15[%c32_89, %c0_90] : memref<64x32xf32, #tpu.memory_space<vmem>>, vector<8x32xf32>
    tpu.vector_store %arg15[%c32_89, %c0_90], %413 {strides = array<i32>} : memref<64x32xf32, #tpu.memory_space<vmem>>, vector<8x32xf32>,
    %415 = vector.extract_strided_slice %263 {offsets = [40, 0], sizes = [8, 96], strides = [1, 1]} : vector<64x96xf32> to vector<8x96xf32>
    %cst_91 = arith.constant dense<0.000000e+00> : vector<8x96xf32>
    %416 = tpu.matmul %413, %255, %cst_91 {dimension_numbers = #tpu.dot_dimension_numbers<[1], [0], [0], [1], [0, 0, 1, 1], [], []>} : vector<8x32xf32>, vector<32x96xf32>, vector<8x96xf32> -> vector<8x96xf32>
    %417 = arith.addf %416, %260 : vector<8x96xf32>
    %418 = vector.extract_strided_slice %415 {offsets = [0, 0], sizes = [8, 32], strides = [1, 1]} : vector<8x96xf32> to vector<8x32xf32>
    %419 = vector.extract_strided_slice %417 {offsets = [0, 0], sizes = [8, 32], strides = [1, 1]} : vector<8x96xf32> to vector<8x32xf32>
    %420 = arith.addf %418, %419 : vector<8x32xf32>
    %421 = arith.negf %420 : vector<8x32xf32>
    %422 = math.exp %421 : vector<8x32xf32>
    %cst_92 = arith.constant 1.000000e+00 : f32
    %423 = vector.broadcast %cst_92 : f32 to vector<8x32xf32>
    %424 = arith.addf %423, %422 : vector<8x32xf32>
    %425 = arith.divf %423, %424 : vector<8x32xf32>
    %426 = vector.extract_strided_slice %415 {offsets = [0, 32], sizes = [8, 32], strides = [1, 1]} : vector<8x96xf32> to vector<8x32xf32>
    %427 = vector.extract_strided_slice %417 {offsets = [0, 32], sizes = [8, 32], strides = [1, 1]} : vector<8x96xf32> to vector<8x32xf32>
    %428 = arith.addf %426, %427 : vector<8x32xf32>
    %429 = arith.negf %428 : vector<8x32xf32>
    %430 = math.exp %429 : vector<8x32xf32>
    %cst_93 = arith.constant 1.000000e+00 : f32
    %431 = vector.broadcast %cst_93 : f32 to vector<8x32xf32>
    %432 = arith.addf %431, %430 : vector<8x32xf32>
    %433 = arith.divf %431, %432 : vector<8x32xf32>
    %434 = vector.extract_strided_slice %415 {offsets = [0, 64], sizes = [8, 32], strides = [1, 1]} : vector<8x96xf32> to vector<8x32xf32>
    %435 = vector.extract_strided_slice %417 {offsets = [0, 64], sizes = [8, 32], strides = [1, 1]} : vector<8x96xf32> to vector<8x32xf32>
    %436 = arith.mulf %425, %435 : vector<8x32xf32>
    %437 = arith.addf %434, %436 : vector<8x32xf32>
    %438 = math.tanh %437 : vector<8x32xf32>
    %cst_94 = arith.constant 1.000000e+00 : f32
    %439 = vector.broadcast %cst_94 : f32 to vector<8x32xf32>
    %440 = arith.subf %439, %433 : vector<8x32xf32>
    %441 = arith.mulf %440, %438 : vector<8x32xf32>
    %442 = arith.mulf %433, %413 : vector<8x32xf32>
    %443 = arith.addf %441, %442 : vector<8x32xf32>
    %c40_95 = arith.constant 40 : index
    %c0_96 = arith.constant 0 : index
    %444 = vector.load %arg15[%c40_95, %c0_96] : memref<64x32xf32, #tpu.memory_space<vmem>>, vector<8x32xf32>
    tpu.vector_store %arg15[%c40_95, %c0_96], %443 {strides = array<i32>} : memref<64x32xf32, #tpu.memory_space<vmem>>, vector<8x32xf32>,
    %445 = vector.extract_strided_slice %263 {offsets = [48, 0], sizes = [8, 96], strides = [1, 1]} : vector<64x96xf32> to vector<8x96xf32>
    %cst_97 = arith.constant dense<0.000000e+00> : vector<8x96xf32>
    %446 = tpu.matmul %443, %255, %cst_97 {dimension_numbers = #tpu.dot_dimension_numbers<[1], [0], [0], [1], [0, 0, 1, 1], [], []>} : vector<8x32xf32>, vector<32x96xf32>, vector<8x96xf32> -> vector<8x96xf32>
    %447 = arith.addf %446, %260 : vector<8x96xf32>
    %448 = vector.extract_strided_slice %445 {offsets = [0, 0], sizes = [8, 32], strides = [1, 1]} : vector<8x96xf32> to vector<8x32xf32>
    %449 = vector.extract_strided_slice %447 {offsets = [0, 0], sizes = [8, 32], strides = [1, 1]} : vector<8x96xf32> to vector<8x32xf32>
    %450 = arith.addf %448, %449 : vector<8x32xf32>
    %451 = arith.negf %450 : vector<8x32xf32>
    %452 = math.exp %451 : vector<8x32xf32>
    %cst_98 = arith.constant 1.000000e+00 : f32
    %453 = vector.broadcast %cst_98 : f32 to vector<8x32xf32>
    %454 = arith.addf %453, %452 : vector<8x32xf32>
    %455 = arith.divf %453, %454 : vector<8x32xf32>
    %456 = vector.extract_strided_slice %445 {offsets = [0, 32], sizes = [8, 32], strides = [1, 1]} : vector<8x96xf32> to vector<8x32xf32>
    %457 = vector.extract_strided_slice %447 {offsets = [0, 32], sizes = [8, 32], strides = [1, 1]} : vector<8x96xf32> to vector<8x32xf32>
    %458 = arith.addf %456, %457 : vector<8x32xf32>
    %459 = arith.negf %458 : vector<8x32xf32>
    %460 = math.exp %459 : vector<8x32xf32>
    %cst_99 = arith.constant 1.000000e+00 : f32
    %461 = vector.broadcast %cst_99 : f32 to vector<8x32xf32>
    %462 = arith.addf %461, %460 : vector<8x32xf32>
    %463 = arith.divf %461, %462 : vector<8x32xf32>
    %464 = vector.extract_strided_slice %445 {offsets = [0, 64], sizes = [8, 32], strides = [1, 1]} : vector<8x96xf32> to vector<8x32xf32>
    %465 = vector.extract_strided_slice %447 {offsets = [0, 64], sizes = [8, 32], strides = [1, 1]} : vector<8x96xf32> to vector<8x32xf32>
    %466 = arith.mulf %455, %465 : vector<8x32xf32>
    %467 = arith.addf %464, %466 : vector<8x32xf32>
    %468 = math.tanh %467 : vector<8x32xf32>
    %cst_100 = arith.constant 1.000000e+00 : f32
    %469 = vector.broadcast %cst_100 : f32 to vector<8x32xf32>
    %470 = arith.subf %469, %463 : vector<8x32xf32>
    %471 = arith.mulf %470, %468 : vector<8x32xf32>
    %472 = arith.mulf %463, %443 : vector<8x32xf32>
    %473 = arith.addf %471, %472 : vector<8x32xf32>
    %c48_101 = arith.constant 48 : index
    %c0_102 = arith.constant 0 : index
    %474 = vector.load %arg15[%c48_101, %c0_102] : memref<64x32xf32, #tpu.memory_space<vmem>>, vector<8x32xf32>
    tpu.vector_store %arg15[%c48_101, %c0_102], %473 {strides = array<i32>} : memref<64x32xf32, #tpu.memory_space<vmem>>, vector<8x32xf32>,
    %475 = vector.extract_strided_slice %263 {offsets = [56, 0], sizes = [8, 96], strides = [1, 1]} : vector<64x96xf32> to vector<8x96xf32>
    %cst_103 = arith.constant dense<0.000000e+00> : vector<8x96xf32>
    %476 = tpu.matmul %473, %255, %cst_103 {dimension_numbers = #tpu.dot_dimension_numbers<[1], [0], [0], [1], [0, 0, 1, 1], [], []>} : vector<8x32xf32>, vector<32x96xf32>, vector<8x96xf32> -> vector<8x96xf32>
    %477 = arith.addf %476, %260 : vector<8x96xf32>
    %478 = vector.extract_strided_slice %475 {offsets = [0, 0], sizes = [8, 32], strides = [1, 1]} : vector<8x96xf32> to vector<8x32xf32>
    %479 = vector.extract_strided_slice %477 {offsets = [0, 0], sizes = [8, 32], strides = [1, 1]} : vector<8x96xf32> to vector<8x32xf32>
    %480 = arith.addf %478, %479 : vector<8x32xf32>
    %481 = arith.negf %480 : vector<8x32xf32>
    %482 = math.exp %481 : vector<8x32xf32>
    %cst_104 = arith.constant 1.000000e+00 : f32
    %483 = vector.broadcast %cst_104 : f32 to vector<8x32xf32>
    %484 = arith.addf %483, %482 : vector<8x32xf32>
    %485 = arith.divf %483, %484 : vector<8x32xf32>
    %486 = vector.extract_strided_slice %475 {offsets = [0, 32], sizes = [8, 32], strides = [1, 1]} : vector<8x96xf32> to vector<8x32xf32>
    %487 = vector.extract_strided_slice %477 {offsets = [0, 32], sizes = [8, 32], strides = [1, 1]} : vector<8x96xf32> to vector<8x32xf32>
    %488 = arith.addf %486, %487 : vector<8x32xf32>
    %489 = arith.negf %488 : vector<8x32xf32>
    %490 = math.exp %489 : vector<8x32xf32>
    %cst_105 = arith.constant 1.000000e+00 : f32
    %491 = vector.broadcast %cst_105 : f32 to vector<8x32xf32>
    %492 = arith.addf %491, %490 : vector<8x32xf32>
    %493 = arith.divf %491, %492 : vector<8x32xf32>
    %494 = vector.extract_strided_slice %475 {offsets = [0, 64], sizes = [8, 32], strides = [1, 1]} : vector<8x96xf32> to vector<8x32xf32>
    %495 = vector.extract_strided_slice %477 {offsets = [0, 64], sizes = [8, 32], strides = [1, 1]} : vector<8x96xf32> to vector<8x32xf32>
    %496 = arith.mulf %485, %495 : vector<8x32xf32>
    %497 = arith.addf %494, %496 : vector<8x32xf32>
    %498 = math.tanh %497 : vector<8x32xf32>
    %cst_106 = arith.constant 1.000000e+00 : f32
    %499 = vector.broadcast %cst_106 : f32 to vector<8x32xf32>
    %500 = arith.subf %499, %493 : vector<8x32xf32>
    %501 = arith.mulf %500, %498 : vector<8x32xf32>
    %502 = arith.mulf %493, %473 : vector<8x32xf32>
    %503 = arith.addf %501, %502 : vector<8x32xf32>
    %c56_107 = arith.constant 56 : index
    %c0_108 = arith.constant 0 : index
    %504 = vector.load %arg15[%c56_107, %c0_108] : memref<64x32xf32, #tpu.memory_space<vmem>>, vector<8x32xf32>
    tpu.vector_store %arg15[%c56_107, %c0_108], %503 {strides = array<i32>} : memref<64x32xf32, #tpu.memory_space<vmem>>, vector<8x32xf32>,
    %c8_109 = arith.constant 8 : index
    %c0_110 = arith.constant 0 : index
    %505 = vector.load %arg16[%c8_109, %c0_110] : memref<16x32xf32, #tpu.memory_space<vmem>>, vector<8x32xf32>
    tpu.vector_store %arg16[%c8_109, %c0_110], %503 {strides = array<i32>} : memref<16x32xf32, #tpu.memory_space<vmem>>, vector<8x32xf32>,
    %c0_111 = arith.constant 0 : index
    %c0_112 = arith.constant 0 : index
    %506 = vector.load %arg15[%c0_111, %c0_112] : memref<64x32xf32, #tpu.memory_space<vmem>>, vector<64x32xf32>
    %c0_113 = arith.constant 0 : index
    %c0_114 = arith.constant 0 : index
    %507 = vector.load %arg7[%c0_113, %c0_114] : memref<32x16xf32, #tpu.memory_space<vmem>>, vector<32x16xf32>
    %cst_115 = arith.constant dense<0.000000e+00> : vector<64x16xf32>
    %508 = tpu.matmul %506, %507, %cst_115 {dimension_numbers = #tpu.dot_dimension_numbers<[1], [0], [0], [1], [0, 0, 1, 1], [], []>} : vector<64x32xf32>, vector<32x16xf32>, vector<64x16xf32> -> vector<64x16xf32>
    %c0_116 = arith.constant 0 : index
    %c0_117 = arith.constant 0 : index
    %509 = vector.load %arg8[%c0_116, %c0_117] : memref<1x16xf32, #tpu.memory_space<vmem>>, vector<1x16xf32>
    %510 = vector.broadcast %509 : vector<1x16xf32> to vector<64x16xf32>
    %511 = arith.addf %508, %510 : vector<64x16xf32>
    %c0_118 = arith.constant 0 : index
    %c0_119 = arith.constant 0 : index
    %512 = vector.load %arg9[%c0_118, %c0_119] : memref<16x48xf32, #tpu.memory_space<vmem>>, vector<16x48xf32>
    %c0_120 = arith.constant 0 : index
    %c0_121 = arith.constant 0 : index
    %513 = vector.load %arg10[%c0_120, %c0_121] : memref<16x48xf32, #tpu.memory_space<vmem>>, vector<16x48xf32>
    %c0_122 = arith.constant 0 : index
    %c0_123 = arith.constant 0 : index
    %514 = vector.load %arg11[%c0_122, %c0_123] : memref<2x48xf32, #tpu.memory_space<vmem>>, vector<2x48xf32>
    %515 = vector.extract_strided_slice %514 {offsets = [0, 0], sizes = [1, 48], strides = [1, 1]} : vector<2x48xf32> to vector<1x48xf32>
    %516 = vector.extract_strided_slice %514 {offsets = [1, 0], sizes = [1, 48], strides = [1, 1]} : vector<2x48xf32> to vector<1x48xf32>
    %517 = vector.shape_cast %516 : vector<1x48xf32> to vector<1x48xf32>
    %518 = vector.broadcast %517 : vector<1x48xf32> to vector<8x48xf32>
    %cst_124 = arith.constant dense<0.000000e+00> : vector<64x48xf32>
    %519 = tpu.matmul %511, %512, %cst_124 {dimension_numbers = #tpu.dot_dimension_numbers<[1], [0], [0], [1], [0, 0, 1, 1], [], []>} : vector<64x16xf32>, vector<16x48xf32>, vector<64x48xf32> -> vector<64x48xf32>
    %520 = vector.broadcast %515 : vector<1x48xf32> to vector<64x48xf32>
    %521 = arith.addf %519, %520 : vector<64x48xf32>
    %cst_125 = arith.constant 0.000000e+00 : f32
    %522 = vector.broadcast %cst_125 : f32 to vector<8x16xf32>
    %523 = vector.extract_strided_slice %521 {offsets = [0, 0], sizes = [8, 48], strides = [1, 1]} : vector<64x48xf32> to vector<8x48xf32>
    %cst_126 = arith.constant dense<0.000000e+00> : vector<8x48xf32>
    %524 = tpu.matmul %522, %513, %cst_126 {dimension_numbers = #tpu.dot_dimension_numbers<[1], [0], [0], [1], [0, 0, 1, 1], [], []>} : vector<8x16xf32>, vector<16x48xf32>, vector<8x48xf32> -> vector<8x48xf32>
    %525 = arith.addf %524, %518 : vector<8x48xf32>
    %526 = vector.extract_strided_slice %523 {offsets = [0, 0], sizes = [8, 16], strides = [1, 1]} : vector<8x48xf32> to vector<8x16xf32>
    %527 = vector.extract_strided_slice %525 {offsets = [0, 0], sizes = [8, 16], strides = [1, 1]} : vector<8x48xf32> to vector<8x16xf32>
    %528 = arith.addf %526, %527 : vector<8x16xf32>
    %529 = arith.negf %528 : vector<8x16xf32>
    %530 = math.exp %529 : vector<8x16xf32>
    %cst_127 = arith.constant 1.000000e+00 : f32
    %531 = vector.broadcast %cst_127 : f32 to vector<8x16xf32>
    %532 = arith.addf %531, %530 : vector<8x16xf32>
    %533 = arith.divf %531, %532 : vector<8x16xf32>
    %534 = vector.extract_strided_slice %523 {offsets = [0, 16], sizes = [8, 16], strides = [1, 1]} : vector<8x48xf32> to vector<8x16xf32>
    %535 = vector.extract_strided_slice %525 {offsets = [0, 16], sizes = [8, 16], strides = [1, 1]} : vector<8x48xf32> to vector<8x16xf32>
    %536 = arith.addf %534, %535 : vector<8x16xf32>
    %537 = arith.negf %536 : vector<8x16xf32>
    %538 = math.exp %537 : vector<8x16xf32>
    %cst_128 = arith.constant 1.000000e+00 : f32
    %539 = vector.broadcast %cst_128 : f32 to vector<8x16xf32>
    %540 = arith.addf %539, %538 : vector<8x16xf32>
    %541 = arith.divf %539, %540 : vector<8x16xf32>
    %542 = vector.extract_strided_slice %523 {offsets = [0, 32], sizes = [8, 16], strides = [1, 1]} : vector<8x48xf32> to vector<8x16xf32>
    %543 = vector.extract_strided_slice %525 {offsets = [0, 32], sizes = [8, 16], strides = [1, 1]} : vector<8x48xf32> to vector<8x16xf32>
    %544 = arith.mulf %533, %543 : vector<8x16xf32>
    %545 = arith.addf %542, %544 : vector<8x16xf32>
    %546 = math.tanh %545 : vector<8x16xf32>
    %cst_129 = arith.constant 1.000000e+00 : f32
    %547 = vector.broadcast %cst_129 : f32 to vector<8x16xf32>
    %548 = arith.subf %547, %541 : vector<8x16xf32>
    %549 = arith.mulf %548, %546 : vector<8x16xf32>
    %550 = arith.mulf %541, %522 : vector<8x16xf32>
    %551 = arith.addf %549, %550 : vector<8x16xf32>
    %c0_130 = arith.constant 0 : index
    %c0_131 = arith.constant 0 : index
    %552 = vector.load %arg17[%c0_130, %c0_131] : memref<64x16xf32, #tpu.memory_space<vmem>>, vector<8x16xf32>
    tpu.vector_store %arg17[%c0_130, %c0_131], %551 {strides = array<i32>} : memref<64x16xf32, #tpu.memory_space<vmem>>, vector<8x16xf32>,
    %553 = vector.extract_strided_slice %521 {offsets = [8, 0], sizes = [8, 48], strides = [1, 1]} : vector<64x48xf32> to vector<8x48xf32>
    %cst_132 = arith.constant dense<0.000000e+00> : vector<8x48xf32>
    %554 = tpu.matmul %551, %513, %cst_132 {dimension_numbers = #tpu.dot_dimension_numbers<[1], [0], [0], [1], [0, 0, 1, 1], [], []>} : vector<8x16xf32>, vector<16x48xf32>, vector<8x48xf32> -> vector<8x48xf32>
    %555 = arith.addf %554, %518 : vector<8x48xf32>
    %556 = vector.extract_strided_slice %553 {offsets = [0, 0], sizes = [8, 16], strides = [1, 1]} : vector<8x48xf32> to vector<8x16xf32>
    %557 = vector.extract_strided_slice %555 {offsets = [0, 0], sizes = [8, 16], strides = [1, 1]} : vector<8x48xf32> to vector<8x16xf32>
    %558 = arith.addf %556, %557 : vector<8x16xf32>
    %559 = arith.negf %558 : vector<8x16xf32>
    %560 = math.exp %559 : vector<8x16xf32>
    %cst_133 = arith.constant 1.000000e+00 : f32
    %561 = vector.broadcast %cst_133 : f32 to vector<8x16xf32>
    %562 = arith.addf %561, %560 : vector<8x16xf32>
    %563 = arith.divf %561, %562 : vector<8x16xf32>
    %564 = vector.extract_strided_slice %553 {offsets = [0, 16], sizes = [8, 16], strides = [1, 1]} : vector<8x48xf32> to vector<8x16xf32>
    %565 = vector.extract_strided_slice %555 {offsets = [0, 16], sizes = [8, 16], strides = [1, 1]} : vector<8x48xf32> to vector<8x16xf32>
    %566 = arith.addf %564, %565 : vector<8x16xf32>
    %567 = arith.negf %566 : vector<8x16xf32>
    %568 = math.exp %567 : vector<8x16xf32>
    %cst_134 = arith.constant 1.000000e+00 : f32
    %569 = vector.broadcast %cst_134 : f32 to vector<8x16xf32>
    %570 = arith.addf %569, %568 : vector<8x16xf32>
    %571 = arith.divf %569, %570 : vector<8x16xf32>
    %572 = vector.extract_strided_slice %553 {offsets = [0, 32], sizes = [8, 16], strides = [1, 1]} : vector<8x48xf32> to vector<8x16xf32>
    %573 = vector.extract_strided_slice %555 {offsets = [0, 32], sizes = [8, 16], strides = [1, 1]} : vector<8x48xf32> to vector<8x16xf32>
    %574 = arith.mulf %563, %573 : vector<8x16xf32>
    %575 = arith.addf %572, %574 : vector<8x16xf32>
    %576 = math.tanh %575 : vector<8x16xf32>
    %cst_135 = arith.constant 1.000000e+00 : f32
    %577 = vector.broadcast %cst_135 : f32 to vector<8x16xf32>
    %578 = arith.subf %577, %571 : vector<8x16xf32>
    %579 = arith.mulf %578, %576 : vector<8x16xf32>
    %580 = arith.mulf %571, %551 : vector<8x16xf32>
    %581 = arith.addf %579, %580 : vector<8x16xf32>
    %c8_136 = arith.constant 8 : index
    %c0_137 = arith.constant 0 : index
    %582 = vector.load %arg17[%c8_136, %c0_137] : memref<64x16xf32, #tpu.memory_space<vmem>>, vector<8x16xf32>
    tpu.vector_store %arg17[%c8_136, %c0_137], %581 {strides = array<i32>} : memref<64x16xf32, #tpu.memory_space<vmem>>, vector<8x16xf32>,
    %583 = vector.extract_strided_slice %521 {offsets = [16, 0], sizes = [8, 48], strides = [1, 1]} : vector<64x48xf32> to vector<8x48xf32>
    %cst_138 = arith.constant dense<0.000000e+00> : vector<8x48xf32>
    %584 = tpu.matmul %581, %513, %cst_138 {dimension_numbers = #tpu.dot_dimension_numbers<[1], [0], [0], [1], [0, 0, 1, 1], [], []>} : vector<8x16xf32>, vector<16x48xf32>, vector<8x48xf32> -> vector<8x48xf32>
    %585 = arith.addf %584, %518 : vector<8x48xf32>
    %586 = vector.extract_strided_slice %583 {offsets = [0, 0], sizes = [8, 16], strides = [1, 1]} : vector<8x48xf32> to vector<8x16xf32>
    %587 = vector.extract_strided_slice %585 {offsets = [0, 0], sizes = [8, 16], strides = [1, 1]} : vector<8x48xf32> to vector<8x16xf32>
    %588 = arith.addf %586, %587 : vector<8x16xf32>
    %589 = arith.negf %588 : vector<8x16xf32>
    %590 = math.exp %589 : vector<8x16xf32>
    %cst_139 = arith.constant 1.000000e+00 : f32
    %591 = vector.broadcast %cst_139 : f32 to vector<8x16xf32>
    %592 = arith.addf %591, %590 : vector<8x16xf32>
    %593 = arith.divf %591, %592 : vector<8x16xf32>
    %594 = vector.extract_strided_slice %583 {offsets = [0, 16], sizes = [8, 16], strides = [1, 1]} : vector<8x48xf32> to vector<8x16xf32>
    %595 = vector.extract_strided_slice %585 {offsets = [0, 16], sizes = [8, 16], strides = [1, 1]} : vector<8x48xf32> to vector<8x16xf32>
    %596 = arith.addf %594, %595 : vector<8x16xf32>
    %597 = arith.negf %596 : vector<8x16xf32>
    %598 = math.exp %597 : vector<8x16xf32>
    %cst_140 = arith.constant 1.000000e+00 : f32
    %599 = vector.broadcast %cst_140 : f32 to vector<8x16xf32>
    %600 = arith.addf %599, %598 : vector<8x16xf32>
    %601 = arith.divf %599, %600 : vector<8x16xf32>
    %602 = vector.extract_strided_slice %583 {offsets = [0, 32], sizes = [8, 16], strides = [1, 1]} : vector<8x48xf32> to vector<8x16xf32>
    %603 = vector.extract_strided_slice %585 {offsets = [0, 32], sizes = [8, 16], strides = [1, 1]} : vector<8x48xf32> to vector<8x16xf32>
    %604 = arith.mulf %593, %603 : vector<8x16xf32>
    %605 = arith.addf %602, %604 : vector<8x16xf32>
    %606 = math.tanh %605 : vector<8x16xf32>
    %cst_141 = arith.constant 1.000000e+00 : f32
    %607 = vector.broadcast %cst_141 : f32 to vector<8x16xf32>
    %608 = arith.subf %607, %601 : vector<8x16xf32>
    %609 = arith.mulf %608, %606 : vector<8x16xf32>
    %610 = arith.mulf %601, %581 : vector<8x16xf32>
    %611 = arith.addf %609, %610 : vector<8x16xf32>
    %c16_142 = arith.constant 16 : index
    %c0_143 = arith.constant 0 : index
    %612 = vector.load %arg17[%c16_142, %c0_143] : memref<64x16xf32, #tpu.memory_space<vmem>>, vector<8x16xf32>
    tpu.vector_store %arg17[%c16_142, %c0_143], %611 {strides = array<i32>} : memref<64x16xf32, #tpu.memory_space<vmem>>, vector<8x16xf32>,
    %613 = vector.extract_strided_slice %521 {offsets = [24, 0], sizes = [8, 48], strides = [1, 1]} : vector<64x48xf32> to vector<8x48xf32>
    %cst_144 = arith.constant dense<0.000000e+00> : vector<8x48xf32>
    %614 = tpu.matmul %611, %513, %cst_144 {dimension_numbers = #tpu.dot_dimension_numbers<[1], [0], [0], [1], [0, 0, 1, 1], [], []>} : vector<8x16xf32>, vector<16x48xf32>, vector<8x48xf32> -> vector<8x48xf32>
    %615 = arith.addf %614, %518 : vector<8x48xf32>
    %616 = vector.extract_strided_slice %613 {offsets = [0, 0], sizes = [8, 16], strides = [1, 1]} : vector<8x48xf32> to vector<8x16xf32>
    %617 = vector.extract_strided_slice %615 {offsets = [0, 0], sizes = [8, 16], strides = [1, 1]} : vector<8x48xf32> to vector<8x16xf32>
    %618 = arith.addf %616, %617 : vector<8x16xf32>
    %619 = arith.negf %618 : vector<8x16xf32>
    %620 = math.exp %619 : vector<8x16xf32>
    %cst_145 = arith.constant 1.000000e+00 : f32
    %621 = vector.broadcast %cst_145 : f32 to vector<8x16xf32>
    %622 = arith.addf %621, %620 : vector<8x16xf32>
    %623 = arith.divf %621, %622 : vector<8x16xf32>
    %624 = vector.extract_strided_slice %613 {offsets = [0, 16], sizes = [8, 16], strides = [1, 1]} : vector<8x48xf32> to vector<8x16xf32>
    %625 = vector.extract_strided_slice %615 {offsets = [0, 16], sizes = [8, 16], strides = [1, 1]} : vector<8x48xf32> to vector<8x16xf32>
    %626 = arith.addf %624, %625 : vector<8x16xf32>
    %627 = arith.negf %626 : vector<8x16xf32>
    %628 = math.exp %627 : vector<8x16xf32>
    %cst_146 = arith.constant 1.000000e+00 : f32
    %629 = vector.broadcast %cst_146 : f32 to vector<8x16xf32>
    %630 = arith.addf %629, %628 : vector<8x16xf32>
    %631 = arith.divf %629, %630 : vector<8x16xf32>
    %632 = vector.extract_strided_slice %613 {offsets = [0, 32], sizes = [8, 16], strides = [1, 1]} : vector<8x48xf32> to vector<8x16xf32>
    %633 = vector.extract_strided_slice %615 {offsets = [0, 32], sizes = [8, 16], strides = [1, 1]} : vector<8x48xf32> to vector<8x16xf32>
    %634 = arith.mulf %623, %633 : vector<8x16xf32>
    %635 = arith.addf %632, %634 : vector<8x16xf32>
    %636 = math.tanh %635 : vector<8x16xf32>
    %cst_147 = arith.constant 1.000000e+00 : f32
    %637 = vector.broadcast %cst_147 : f32 to vector<8x16xf32>
    %638 = arith.subf %637, %631 : vector<8x16xf32>
    %639 = arith.mulf %638, %636 : vector<8x16xf32>
    %640 = arith.mulf %631, %611 : vector<8x16xf32>
    %641 = arith.addf %639, %640 : vector<8x16xf32>
    %c24_148 = arith.constant 24 : index
    %c0_149 = arith.constant 0 : index
    %642 = vector.load %arg17[%c24_148, %c0_149] : memref<64x16xf32, #tpu.memory_space<vmem>>, vector<8x16xf32>
    tpu.vector_store %arg17[%c24_148, %c0_149], %641 {strides = array<i32>} : memref<64x16xf32, #tpu.memory_space<vmem>>, vector<8x16xf32>,
    %643 = vector.extract_strided_slice %521 {offsets = [32, 0], sizes = [8, 48], strides = [1, 1]} : vector<64x48xf32> to vector<8x48xf32>
    %cst_150 = arith.constant dense<0.000000e+00> : vector<8x48xf32>
    %644 = tpu.matmul %641, %513, %cst_150 {dimension_numbers = #tpu.dot_dimension_numbers<[1], [0], [0], [1], [0, 0, 1, 1], [], []>} : vector<8x16xf32>, vector<16x48xf32>, vector<8x48xf32> -> vector<8x48xf32>
    %645 = arith.addf %644, %518 : vector<8x48xf32>
    %646 = vector.extract_strided_slice %643 {offsets = [0, 0], sizes = [8, 16], strides = [1, 1]} : vector<8x48xf32> to vector<8x16xf32>
    %647 = vector.extract_strided_slice %645 {offsets = [0, 0], sizes = [8, 16], strides = [1, 1]} : vector<8x48xf32> to vector<8x16xf32>
    %648 = arith.addf %646, %647 : vector<8x16xf32>
    %649 = arith.negf %648 : vector<8x16xf32>
    %650 = math.exp %649 : vector<8x16xf32>
    %cst_151 = arith.constant 1.000000e+00 : f32
    %651 = vector.broadcast %cst_151 : f32 to vector<8x16xf32>
    %652 = arith.addf %651, %650 : vector<8x16xf32>
    %653 = arith.divf %651, %652 : vector<8x16xf32>
    %654 = vector.extract_strided_slice %643 {offsets = [0, 16], sizes = [8, 16], strides = [1, 1]} : vector<8x48xf32> to vector<8x16xf32>
    %655 = vector.extract_strided_slice %645 {offsets = [0, 16], sizes = [8, 16], strides = [1, 1]} : vector<8x48xf32> to vector<8x16xf32>
    %656 = arith.addf %654, %655 : vector<8x16xf32>
    %657 = arith.negf %656 : vector<8x16xf32>
    %658 = math.exp %657 : vector<8x16xf32>
    %cst_152 = arith.constant 1.000000e+00 : f32
    %659 = vector.broadcast %cst_152 : f32 to vector<8x16xf32>
    %660 = arith.addf %659, %658 : vector<8x16xf32>
    %661 = arith.divf %659, %660 : vector<8x16xf32>
    %662 = vector.extract_strided_slice %643 {offsets = [0, 32], sizes = [8, 16], strides = [1, 1]} : vector<8x48xf32> to vector<8x16xf32>
    %663 = vector.extract_strided_slice %645 {offsets = [0, 32], sizes = [8, 16], strides = [1, 1]} : vector<8x48xf32> to vector<8x16xf32>
    %664 = arith.mulf %653, %663 : vector<8x16xf32>
    %665 = arith.addf %662, %664 : vector<8x16xf32>
    %666 = math.tanh %665 : vector<8x16xf32>
    %cst_153 = arith.constant 1.000000e+00 : f32
    %667 = vector.broadcast %cst_153 : f32 to vector<8x16xf32>
    %668 = arith.subf %667, %661 : vector<8x16xf32>
    %669 = arith.mulf %668, %666 : vector<8x16xf32>
    %670 = arith.mulf %661, %641 : vector<8x16xf32>
    %671 = arith.addf %669, %670 : vector<8x16xf32>
    %c32_154 = arith.constant 32 : index
    %c0_155 = arith.constant 0 : index
    %672 = vector.load %arg17[%c32_154, %c0_155] : memref<64x16xf32, #tpu.memory_space<vmem>>, vector<8x16xf32>
    tpu.vector_store %arg17[%c32_154, %c0_155], %671 {strides = array<i32>} : memref<64x16xf32, #tpu.memory_space<vmem>>, vector<8x16xf32>,
    %673 = vector.extract_strided_slice %521 {offsets = [40, 0], sizes = [8, 48], strides = [1, 1]} : vector<64x48xf32> to vector<8x48xf32>
    %cst_156 = arith.constant dense<0.000000e+00> : vector<8x48xf32>
    %674 = tpu.matmul %671, %513, %cst_156 {dimension_numbers = #tpu.dot_dimension_numbers<[1], [0], [0], [1], [0, 0, 1, 1], [], []>} : vector<8x16xf32>, vector<16x48xf32>, vector<8x48xf32> -> vector<8x48xf32>
    %675 = arith.addf %674, %518 : vector<8x48xf32>
    %676 = vector.extract_strided_slice %673 {offsets = [0, 0], sizes = [8, 16], strides = [1, 1]} : vector<8x48xf32> to vector<8x16xf32>
    %677 = vector.extract_strided_slice %675 {offsets = [0, 0], sizes = [8, 16], strides = [1, 1]} : vector<8x48xf32> to vector<8x16xf32>
    %678 = arith.addf %676, %677 : vector<8x16xf32>
    %679 = arith.negf %678 : vector<8x16xf32>
    %680 = math.exp %679 : vector<8x16xf32>
    %cst_157 = arith.constant 1.000000e+00 : f32
    %681 = vector.broadcast %cst_157 : f32 to vector<8x16xf32>
    %682 = arith.addf %681, %680 : vector<8x16xf32>
    %683 = arith.divf %681, %682 : vector<8x16xf32>
    %684 = vector.extract_strided_slice %673 {offsets = [0, 16], sizes = [8, 16], strides = [1, 1]} : vector<8x48xf32> to vector<8x16xf32>
    %685 = vector.extract_strided_slice %675 {offsets = [0, 16], sizes = [8, 16], strides = [1, 1]} : vector<8x48xf32> to vector<8x16xf32>
    %686 = arith.addf %684, %685 : vector<8x16xf32>
    %687 = arith.negf %686 : vector<8x16xf32>
    %688 = math.exp %687 : vector<8x16xf32>
    %cst_158 = arith.constant 1.000000e+00 : f32
    %689 = vector.broadcast %cst_158 : f32 to vector<8x16xf32>
    %690 = arith.addf %689, %688 : vector<8x16xf32>
    %691 = arith.divf %689, %690 : vector<8x16xf32>
    %692 = vector.extract_strided_slice %673 {offsets = [0, 32], sizes = [8, 16], strides = [1, 1]} : vector<8x48xf32> to vector<8x16xf32>
    %693 = vector.extract_strided_slice %675 {offsets = [0, 32], sizes = [8, 16], strides = [1, 1]} : vector<8x48xf32> to vector<8x16xf32>
    %694 = arith.mulf %683, %693 : vector<8x16xf32>
    %695 = arith.addf %692, %694 : vector<8x16xf32>
    %696 = math.tanh %695 : vector<8x16xf32>
    %cst_159 = arith.constant 1.000000e+00 : f32
    %697 = vector.broadcast %cst_159 : f32 to vector<8x16xf32>
    %698 = arith.subf %697, %691 : vector<8x16xf32>
    %699 = arith.mulf %698, %696 : vector<8x16xf32>
    %700 = arith.mulf %691, %671 : vector<8x16xf32>
    %701 = arith.addf %699, %700 : vector<8x16xf32>
    %c40_160 = arith.constant 40 : index
    %c0_161 = arith.constant 0 : index
    %702 = vector.load %arg17[%c40_160, %c0_161] : memref<64x16xf32, #tpu.memory_space<vmem>>, vector<8x16xf32>
    tpu.vector_store %arg17[%c40_160, %c0_161], %701 {strides = array<i32>} : memref<64x16xf32, #tpu.memory_space<vmem>>, vector<8x16xf32>,
    %703 = vector.extract_strided_slice %521 {offsets = [48, 0], sizes = [8, 48], strides = [1, 1]} : vector<64x48xf32> to vector<8x48xf32>
    %cst_162 = arith.constant dense<0.000000e+00> : vector<8x48xf32>
    %704 = tpu.matmul %701, %513, %cst_162 {dimension_numbers = #tpu.dot_dimension_numbers<[1], [0], [0], [1], [0, 0, 1, 1], [], []>} : vector<8x16xf32>, vector<16x48xf32>, vector<8x48xf32> -> vector<8x48xf32>
    %705 = arith.addf %704, %518 : vector<8x48xf32>
    %706 = vector.extract_strided_slice %703 {offsets = [0, 0], sizes = [8, 16], strides = [1, 1]} : vector<8x48xf32> to vector<8x16xf32>
    %707 = vector.extract_strided_slice %705 {offsets = [0, 0], sizes = [8, 16], strides = [1, 1]} : vector<8x48xf32> to vector<8x16xf32>
    %708 = arith.addf %706, %707 : vector<8x16xf32>
    %709 = arith.negf %708 : vector<8x16xf32>
    %710 = math.exp %709 : vector<8x16xf32>
    %cst_163 = arith.constant 1.000000e+00 : f32
    %711 = vector.broadcast %cst_163 : f32 to vector<8x16xf32>
    %712 = arith.addf %711, %710 : vector<8x16xf32>
    %713 = arith.divf %711, %712 : vector<8x16xf32>
    %714 = vector.extract_strided_slice %703 {offsets = [0, 16], sizes = [8, 16], strides = [1, 1]} : vector<8x48xf32> to vector<8x16xf32>
    %715 = vector.extract_strided_slice %705 {offsets = [0, 16], sizes = [8, 16], strides = [1, 1]} : vector<8x48xf32> to vector<8x16xf32>
    %716 = arith.addf %714, %715 : vector<8x16xf32>
    %717 = arith.negf %716 : vector<8x16xf32>
    %718 = math.exp %717 : vector<8x16xf32>
    %cst_164 = arith.constant 1.000000e+00 : f32
    %719 = vector.broadcast %cst_164 : f32 to vector<8x16xf32>
    %720 = arith.addf %719, %718 : vector<8x16xf32>
    %721 = arith.divf %719, %720 : vector<8x16xf32>
    %722 = vector.extract_strided_slice %703 {offsets = [0, 32], sizes = [8, 16], strides = [1, 1]} : vector<8x48xf32> to vector<8x16xf32>
    %723 = vector.extract_strided_slice %705 {offsets = [0, 32], sizes = [8, 16], strides = [1, 1]} : vector<8x48xf32> to vector<8x16xf32>
    %724 = arith.mulf %713, %723 : vector<8x16xf32>
    %725 = arith.addf %722, %724 : vector<8x16xf32>
    %726 = math.tanh %725 : vector<8x16xf32>
    %cst_165 = arith.constant 1.000000e+00 : f32
    %727 = vector.broadcast %cst_165 : f32 to vector<8x16xf32>
    %728 = arith.subf %727, %721 : vector<8x16xf32>
    %729 = arith.mulf %728, %726 : vector<8x16xf32>
    %730 = arith.mulf %721, %701 : vector<8x16xf32>
    %731 = arith.addf %729, %730 : vector<8x16xf32>
    %c48_166 = arith.constant 48 : index
    %c0_167 = arith.constant 0 : index
    %732 = vector.load %arg17[%c48_166, %c0_167] : memref<64x16xf32, #tpu.memory_space<vmem>>, vector<8x16xf32>
    tpu.vector_store %arg17[%c48_166, %c0_167], %731 {strides = array<i32>} : memref<64x16xf32, #tpu.memory_space<vmem>>, vector<8x16xf32>,
    %733 = vector.extract_strided_slice %521 {offsets = [56, 0], sizes = [8, 48], strides = [1, 1]} : vector<64x48xf32> to vector<8x48xf32>
    %cst_168 = arith.constant dense<0.000000e+00> : vector<8x48xf32>
    %734 = tpu.matmul %731, %513, %cst_168 {dimension_numbers = #tpu.dot_dimension_numbers<[1], [0], [0], [1], [0, 0, 1, 1], [], []>} : vector<8x16xf32>, vector<16x48xf32>, vector<8x48xf32> -> vector<8x48xf32>
    %735 = arith.addf %734, %518 : vector<8x48xf32>
    %736 = vector.extract_strided_slice %733 {offsets = [0, 0], sizes = [8, 16], strides = [1, 1]} : vector<8x48xf32> to vector<8x16xf32>
    %737 = vector.extract_strided_slice %735 {offsets = [0, 0], sizes = [8, 16], strides = [1, 1]} : vector<8x48xf32> to vector<8x16xf32>
    %738 = arith.addf %736, %737 : vector<8x16xf32>
    %739 = arith.negf %738 : vector<8x16xf32>
    %740 = math.exp %739 : vector<8x16xf32>
    %cst_169 = arith.constant 1.000000e+00 : f32
    %741 = vector.broadcast %cst_169 : f32 to vector<8x16xf32>
    %742 = arith.addf %741, %740 : vector<8x16xf32>
    %743 = arith.divf %741, %742 : vector<8x16xf32>
    %744 = vector.extract_strided_slice %733 {offsets = [0, 16], sizes = [8, 16], strides = [1, 1]} : vector<8x48xf32> to vector<8x16xf32>
    %745 = vector.extract_strided_slice %735 {offsets = [0, 16], sizes = [8, 16], strides = [1, 1]} : vector<8x48xf32> to vector<8x16xf32>
    %746 = arith.addf %744, %745 : vector<8x16xf32>
    %747 = arith.negf %746 : vector<8x16xf32>
    %748 = math.exp %747 : vector<8x16xf32>
    %cst_170 = arith.constant 1.000000e+00 : f32
    %749 = vector.broadcast %cst_170 : f32 to vector<8x16xf32>
    %750 = arith.addf %749, %748 : vector<8x16xf32>
    %751 = arith.divf %749, %750 : vector<8x16xf32>
    %752 = vector.extract_strided_slice %733 {offsets = [0, 32], sizes = [8, 16], strides = [1, 1]} : vector<8x48xf32> to vector<8x16xf32>
    %753 = vector.extract_strided_slice %735 {offsets = [0, 32], sizes = [8, 16], strides = [1, 1]} : vector<8x48xf32> to vector<8x16xf32>
    %754 = arith.mulf %743, %753 : vector<8x16xf32>
    %755 = arith.addf %752, %754 : vector<8x16xf32>
    %756 = math.tanh %755 : vector<8x16xf32>
    %cst_171 = arith.constant 1.000000e+00 : f32
    %757 = vector.broadcast %cst_171 : f32 to vector<8x16xf32>
    %758 = arith.subf %757, %751 : vector<8x16xf32>
    %759 = arith.mulf %758, %756 : vector<8x16xf32>
    %760 = arith.mulf %751, %731 : vector<8x16xf32>
    %761 = arith.addf %759, %760 : vector<8x16xf32>
    %c56_172 = arith.constant 56 : index
    %c0_173 = arith.constant 0 : index
    %762 = vector.load %arg17[%c56_172, %c0_173] : memref<64x16xf32, #tpu.memory_space<vmem>>, vector<8x16xf32>
    tpu.vector_store %arg17[%c56_172, %c0_173], %761 {strides = array<i32>} : memref<64x16xf32, #tpu.memory_space<vmem>>, vector<8x16xf32>,
    %c0_174 = arith.constant 0 : index
    %c0_175 = arith.constant 0 : index
    %763 = vector.load %arg17[%c0_174, %c0_175] : memref<64x16xf32, #tpu.memory_space<vmem>>, vector<64x16xf32>
    %c0_176 = arith.constant 0 : index
    %c0_177 = arith.constant 0 : index
    %764 = vector.load %arg12[%c0_176, %c0_177] : memref<16x48xf32, #tpu.memory_space<vmem>>, vector<16x48xf32>
    %c0_178 = arith.constant 0 : index
    %c0_179 = arith.constant 0 : index
    %765 = vector.load %arg13[%c0_178, %c0_179] : memref<16x48xf32, #tpu.memory_space<vmem>>, vector<16x48xf32>
    %c0_180 = arith.constant 0 : index
    %c0_181 = arith.constant 0 : index
    %766 = vector.load %arg14[%c0_180, %c0_181] : memref<2x48xf32, #tpu.memory_space<vmem>>, vector<2x48xf32>
    %767 = vector.extract_strided_slice %766 {offsets = [0, 0], sizes = [1, 48], strides = [1, 1]} : vector<2x48xf32> to vector<1x48xf32>
    %768 = vector.extract_strided_slice %766 {offsets = [1, 0], sizes = [1, 48], strides = [1, 1]} : vector<2x48xf32> to vector<1x48xf32>
    %769 = vector.shape_cast %768 : vector<1x48xf32> to vector<1x48xf32>
    %770 = vector.broadcast %769 : vector<1x48xf32> to vector<8x48xf32>
    %cst_182 = arith.constant dense<0.000000e+00> : vector<64x48xf32>
    %771 = tpu.matmul %763, %764, %cst_182 {dimension_numbers = #tpu.dot_dimension_numbers<[1], [0], [0], [1], [0, 0, 1, 1], [], []>} : vector<64x16xf32>, vector<16x48xf32>, vector<64x48xf32> -> vector<64x48xf32>
    %772 = vector.broadcast %767 : vector<1x48xf32> to vector<64x48xf32>
    %773 = arith.addf %771, %772 : vector<64x48xf32>
    %cst_183 = arith.constant 0.000000e+00 : f32
    %774 = vector.broadcast %cst_183 : f32 to vector<8x16xf32>
    %775 = vector.extract_strided_slice %773 {offsets = [0, 0], sizes = [8, 48], strides = [1, 1]} : vector<64x48xf32> to vector<8x48xf32>
    %cst_184 = arith.constant dense<0.000000e+00> : vector<8x48xf32>
    %776 = tpu.matmul %774, %765, %cst_184 {dimension_numbers = #tpu.dot_dimension_numbers<[1], [0], [0], [1], [0, 0, 1, 1], [], []>} : vector<8x16xf32>, vector<16x48xf32>, vector<8x48xf32> -> vector<8x48xf32>
    %777 = arith.addf %776, %770 : vector<8x48xf32>
    %778 = vector.extract_strided_slice %775 {offsets = [0, 0], sizes = [8, 16], strides = [1, 1]} : vector<8x48xf32> to vector<8x16xf32>
    %779 = vector.extract_strided_slice %777 {offsets = [0, 0], sizes = [8, 16], strides = [1, 1]} : vector<8x48xf32> to vector<8x16xf32>
    %780 = arith.addf %778, %779 : vector<8x16xf32>
    %781 = arith.negf %780 : vector<8x16xf32>
    %782 = math.exp %781 : vector<8x16xf32>
    %cst_185 = arith.constant 1.000000e+00 : f32
    %783 = vector.broadcast %cst_185 : f32 to vector<8x16xf32>
    %784 = arith.addf %783, %782 : vector<8x16xf32>
    %785 = arith.divf %783, %784 : vector<8x16xf32>
    %786 = vector.extract_strided_slice %775 {offsets = [0, 16], sizes = [8, 16], strides = [1, 1]} : vector<8x48xf32> to vector<8x16xf32>
    %787 = vector.extract_strided_slice %777 {offsets = [0, 16], sizes = [8, 16], strides = [1, 1]} : vector<8x48xf32> to vector<8x16xf32>
    %788 = arith.addf %786, %787 : vector<8x16xf32>
    %789 = arith.negf %788 : vector<8x16xf32>
    %790 = math.exp %789 : vector<8x16xf32>
    %cst_186 = arith.constant 1.000000e+00 : f32
    %791 = vector.broadcast %cst_186 : f32 to vector<8x16xf32>
    %792 = arith.addf %791, %790 : vector<8x16xf32>
    %793 = arith.divf %791, %792 : vector<8x16xf32>
    %794 = vector.extract_strided_slice %775 {offsets = [0, 32], sizes = [8, 16], strides = [1, 1]} : vector<8x48xf32> to vector<8x16xf32>
    %795 = vector.extract_strided_slice %777 {offsets = [0, 32], sizes = [8, 16], strides = [1, 1]} : vector<8x48xf32> to vector<8x16xf32>
    %796 = arith.mulf %785, %795 : vector<8x16xf32>
    %797 = arith.addf %794, %796 : vector<8x16xf32>
    %798 = math.tanh %797 : vector<8x16xf32>
    %cst_187 = arith.constant 1.000000e+00 : f32
    %799 = vector.broadcast %cst_187 : f32 to vector<8x16xf32>
    %800 = arith.subf %799, %793 : vector<8x16xf32>
    %801 = arith.mulf %800, %798 : vector<8x16xf32>
    %802 = arith.mulf %793, %774 : vector<8x16xf32>
    %803 = arith.addf %801, %802 : vector<8x16xf32>
    %c0_188 = arith.constant 0 : index
    %c0_189 = arith.constant 0 : index
    %804 = vector.load %arg17[%c0_188, %c0_189] : memref<64x16xf32, #tpu.memory_space<vmem>>, vector<8x16xf32>
    tpu.vector_store %arg17[%c0_188, %c0_189], %803 {strides = array<i32>} : memref<64x16xf32, #tpu.memory_space<vmem>>, vector<8x16xf32>,
    %805 = vector.extract_strided_slice %773 {offsets = [8, 0], sizes = [8, 48], strides = [1, 1]} : vector<64x48xf32> to vector<8x48xf32>
    %cst_190 = arith.constant dense<0.000000e+00> : vector<8x48xf32>
    %806 = tpu.matmul %803, %765, %cst_190 {dimension_numbers = #tpu.dot_dimension_numbers<[1], [0], [0], [1], [0, 0, 1, 1], [], []>} : vector<8x16xf32>, vector<16x48xf32>, vector<8x48xf32> -> vector<8x48xf32>
    %807 = arith.addf %806, %770 : vector<8x48xf32>
    %808 = vector.extract_strided_slice %805 {offsets = [0, 0], sizes = [8, 16], strides = [1, 1]} : vector<8x48xf32> to vector<8x16xf32>
    %809 = vector.extract_strided_slice %807 {offsets = [0, 0], sizes = [8, 16], strides = [1, 1]} : vector<8x48xf32> to vector<8x16xf32>
    %810 = arith.addf %808, %809 : vector<8x16xf32>
    %811 = arith.negf %810 : vector<8x16xf32>
    %812 = math.exp %811 : vector<8x16xf32>
    %cst_191 = arith.constant 1.000000e+00 : f32
    %813 = vector.broadcast %cst_191 : f32 to vector<8x16xf32>
    %814 = arith.addf %813, %812 : vector<8x16xf32>
    %815 = arith.divf %813, %814 : vector<8x16xf32>
    %816 = vector.extract_strided_slice %805 {offsets = [0, 16], sizes = [8, 16], strides = [1, 1]} : vector<8x48xf32> to vector<8x16xf32>
    %817 = vector.extract_strided_slice %807 {offsets = [0, 16], sizes = [8, 16], strides = [1, 1]} : vector<8x48xf32> to vector<8x16xf32>
    %818 = arith.addf %816, %817 : vector<8x16xf32>
    %819 = arith.negf %818 : vector<8x16xf32>
    %820 = math.exp %819 : vector<8x16xf32>
    %cst_192 = arith.constant 1.000000e+00 : f32
    %821 = vector.broadcast %cst_192 : f32 to vector<8x16xf32>
    %822 = arith.addf %821, %820 : vector<8x16xf32>
    %823 = arith.divf %821, %822 : vector<8x16xf32>
    %824 = vector.extract_strided_slice %805 {offsets = [0, 32], sizes = [8, 16], strides = [1, 1]} : vector<8x48xf32> to vector<8x16xf32>
    %825 = vector.extract_strided_slice %807 {offsets = [0, 32], sizes = [8, 16], strides = [1, 1]} : vector<8x48xf32> to vector<8x16xf32>
    %826 = arith.mulf %815, %825 : vector<8x16xf32>
    %827 = arith.addf %824, %826 : vector<8x16xf32>
    %828 = math.tanh %827 : vector<8x16xf32>
    %cst_193 = arith.constant 1.000000e+00 : f32
    %829 = vector.broadcast %cst_193 : f32 to vector<8x16xf32>
    %830 = arith.subf %829, %823 : vector<8x16xf32>
    %831 = arith.mulf %830, %828 : vector<8x16xf32>
    %832 = arith.mulf %823, %803 : vector<8x16xf32>
    %833 = arith.addf %831, %832 : vector<8x16xf32>
    %c8_194 = arith.constant 8 : index
    %c0_195 = arith.constant 0 : index
    %834 = vector.load %arg17[%c8_194, %c0_195] : memref<64x16xf32, #tpu.memory_space<vmem>>, vector<8x16xf32>
    tpu.vector_store %arg17[%c8_194, %c0_195], %833 {strides = array<i32>} : memref<64x16xf32, #tpu.memory_space<vmem>>, vector<8x16xf32>,
    %835 = vector.extract_strided_slice %773 {offsets = [16, 0], sizes = [8, 48], strides = [1, 1]} : vector<64x48xf32> to vector<8x48xf32>
    %cst_196 = arith.constant dense<0.000000e+00> : vector<8x48xf32>
    %836 = tpu.matmul %833, %765, %cst_196 {dimension_numbers = #tpu.dot_dimension_numbers<[1], [0], [0], [1], [0, 0, 1, 1], [], []>} : vector<8x16xf32>, vector<16x48xf32>, vector<8x48xf32> -> vector<8x48xf32>
    %837 = arith.addf %836, %770 : vector<8x48xf32>
    %838 = vector.extract_strided_slice %835 {offsets = [0, 0], sizes = [8, 16], strides = [1, 1]} : vector<8x48xf32> to vector<8x16xf32>
    %839 = vector.extract_strided_slice %837 {offsets = [0, 0], sizes = [8, 16], strides = [1, 1]} : vector<8x48xf32> to vector<8x16xf32>
    %840 = arith.addf %838, %839 : vector<8x16xf32>
    %841 = arith.negf %840 : vector<8x16xf32>
    %842 = math.exp %841 : vector<8x16xf32>
    %cst_197 = arith.constant 1.000000e+00 : f32
    %843 = vector.broadcast %cst_197 : f32 to vector<8x16xf32>
    %844 = arith.addf %843, %842 : vector<8x16xf32>
    %845 = arith.divf %843, %844 : vector<8x16xf32>
    %846 = vector.extract_strided_slice %835 {offsets = [0, 16], sizes = [8, 16], strides = [1, 1]} : vector<8x48xf32> to vector<8x16xf32>
    %847 = vector.extract_strided_slice %837 {offsets = [0, 16], sizes = [8, 16], strides = [1, 1]} : vector<8x48xf32> to vector<8x16xf32>
    %848 = arith.addf %846, %847 : vector<8x16xf32>
    %849 = arith.negf %848 : vector<8x16xf32>
    %850 = math.exp %849 : vector<8x16xf32>
    %cst_198 = arith.constant 1.000000e+00 : f32
    %851 = vector.broadcast %cst_198 : f32 to vector<8x16xf32>
    %852 = arith.addf %851, %850 : vector<8x16xf32>
    %853 = arith.divf %851, %852 : vector<8x16xf32>
    %854 = vector.extract_strided_slice %835 {offsets = [0, 32], sizes = [8, 16], strides = [1, 1]} : vector<8x48xf32> to vector<8x16xf32>
    %855 = vector.extract_strided_slice %837 {offsets = [0, 32], sizes = [8, 16], strides = [1, 1]} : vector<8x48xf32> to vector<8x16xf32>
    %856 = arith.mulf %845, %855 : vector<8x16xf32>
    %857 = arith.addf %854, %856 : vector<8x16xf32>
    %858 = math.tanh %857 : vector<8x16xf32>
    %cst_199 = arith.constant 1.000000e+00 : f32
    %859 = vector.broadcast %cst_199 : f32 to vector<8x16xf32>
    %860 = arith.subf %859, %853 : vector<8x16xf32>
    %861 = arith.mulf %860, %858 : vector<8x16xf32>
    %862 = arith.mulf %853, %833 : vector<8x16xf32>
    %863 = arith.addf %861, %862 : vector<8x16xf32>
    %c16_200 = arith.constant 16 : index
    %c0_201 = arith.constant 0 : index
    %864 = vector.load %arg17[%c16_200, %c0_201] : memref<64x16xf32, #tpu.memory_space<vmem>>, vector<8x16xf32>
    tpu.vector_store %arg17[%c16_200, %c0_201], %863 {strides = array<i32>} : memref<64x16xf32, #tpu.memory_space<vmem>>, vector<8x16xf32>,
    %865 = vector.extract_strided_slice %773 {offsets = [24, 0], sizes = [8, 48], strides = [1, 1]} : vector<64x48xf32> to vector<8x48xf32>
    %cst_202 = arith.constant dense<0.000000e+00> : vector<8x48xf32>
    %866 = tpu.matmul %863, %765, %cst_202 {dimension_numbers = #tpu.dot_dimension_numbers<[1], [0], [0], [1], [0, 0, 1, 1], [], []>} : vector<8x16xf32>, vector<16x48xf32>, vector<8x48xf32> -> vector<8x48xf32>
    %867 = arith.addf %866, %770 : vector<8x48xf32>
    %868 = vector.extract_strided_slice %865 {offsets = [0, 0], sizes = [8, 16], strides = [1, 1]} : vector<8x48xf32> to vector<8x16xf32>
    %869 = vector.extract_strided_slice %867 {offsets = [0, 0], sizes = [8, 16], strides = [1, 1]} : vector<8x48xf32> to vector<8x16xf32>
    %870 = arith.addf %868, %869 : vector<8x16xf32>
    %871 = arith.negf %870 : vector<8x16xf32>
    %872 = math.exp %871 : vector<8x16xf32>
    %cst_203 = arith.constant 1.000000e+00 : f32
    %873 = vector.broadcast %cst_203 : f32 to vector<8x16xf32>
    %874 = arith.addf %873, %872 : vector<8x16xf32>
    %875 = arith.divf %873, %874 : vector<8x16xf32>
    %876 = vector.extract_strided_slice %865 {offsets = [0, 16], sizes = [8, 16], strides = [1, 1]} : vector<8x48xf32> to vector<8x16xf32>
    %877 = vector.extract_strided_slice %867 {offsets = [0, 16], sizes = [8, 16], strides = [1, 1]} : vector<8x48xf32> to vector<8x16xf32>
    %878 = arith.addf %876, %877 : vector<8x16xf32>
    %879 = arith.negf %878 : vector<8x16xf32>
    %880 = math.exp %879 : vector<8x16xf32>
    %cst_204 = arith.constant 1.000000e+00 : f32
    %881 = vector.broadcast %cst_204 : f32 to vector<8x16xf32>
    %882 = arith.addf %881, %880 : vector<8x16xf32>
    %883 = arith.divf %881, %882 : vector<8x16xf32>
    %884 = vector.extract_strided_slice %865 {offsets = [0, 32], sizes = [8, 16], strides = [1, 1]} : vector<8x48xf32> to vector<8x16xf32>
    %885 = vector.extract_strided_slice %867 {offsets = [0, 32], sizes = [8, 16], strides = [1, 1]} : vector<8x48xf32> to vector<8x16xf32>
    %886 = arith.mulf %875, %885 : vector<8x16xf32>
    %887 = arith.addf %884, %886 : vector<8x16xf32>
    %888 = math.tanh %887 : vector<8x16xf32>
    %cst_205 = arith.constant 1.000000e+00 : f32
    %889 = vector.broadcast %cst_205 : f32 to vector<8x16xf32>
    %890 = arith.subf %889, %883 : vector<8x16xf32>
    %891 = arith.mulf %890, %888 : vector<8x16xf32>
    %892 = arith.mulf %883, %863 : vector<8x16xf32>
    %893 = arith.addf %891, %892 : vector<8x16xf32>
    %c24_206 = arith.constant 24 : index
    %c0_207 = arith.constant 0 : index
    %894 = vector.load %arg17[%c24_206, %c0_207] : memref<64x16xf32, #tpu.memory_space<vmem>>, vector<8x16xf32>
    tpu.vector_store %arg17[%c24_206, %c0_207], %893 {strides = array<i32>} : memref<64x16xf32, #tpu.memory_space<vmem>>, vector<8x16xf32>,
    %895 = vector.extract_strided_slice %773 {offsets = [32, 0], sizes = [8, 48], strides = [1, 1]} : vector<64x48xf32> to vector<8x48xf32>
    %cst_208 = arith.constant dense<0.000000e+00> : vector<8x48xf32>
    %896 = tpu.matmul %893, %765, %cst_208 {dimension_numbers = #tpu.dot_dimension_numbers<[1], [0], [0], [1], [0, 0, 1, 1], [], []>} : vector<8x16xf32>, vector<16x48xf32>, vector<8x48xf32> -> vector<8x48xf32>
    %897 = arith.addf %896, %770 : vector<8x48xf32>
    %898 = vector.extract_strided_slice %895 {offsets = [0, 0], sizes = [8, 16], strides = [1, 1]} : vector<8x48xf32> to vector<8x16xf32>
    %899 = vector.extract_strided_slice %897 {offsets = [0, 0], sizes = [8, 16], strides = [1, 1]} : vector<8x48xf32> to vector<8x16xf32>
    %900 = arith.addf %898, %899 : vector<8x16xf32>
    %901 = arith.negf %900 : vector<8x16xf32>
    %902 = math.exp %901 : vector<8x16xf32>
    %cst_209 = arith.constant 1.000000e+00 : f32
    %903 = vector.broadcast %cst_209 : f32 to vector<8x16xf32>
    %904 = arith.addf %903, %902 : vector<8x16xf32>
    %905 = arith.divf %903, %904 : vector<8x16xf32>
    %906 = vector.extract_strided_slice %895 {offsets = [0, 16], sizes = [8, 16], strides = [1, 1]} : vector<8x48xf32> to vector<8x16xf32>
    %907 = vector.extract_strided_slice %897 {offsets = [0, 16], sizes = [8, 16], strides = [1, 1]} : vector<8x48xf32> to vector<8x16xf32>
    %908 = arith.addf %906, %907 : vector<8x16xf32>
    %909 = arith.negf %908 : vector<8x16xf32>
    %910 = math.exp %909 : vector<8x16xf32>
    %cst_210 = arith.constant 1.000000e+00 : f32
    %911 = vector.broadcast %cst_210 : f32 to vector<8x16xf32>
    %912 = arith.addf %911, %910 : vector<8x16xf32>
    %913 = arith.divf %911, %912 : vector<8x16xf32>
    %914 = vector.extract_strided_slice %895 {offsets = [0, 32], sizes = [8, 16], strides = [1, 1]} : vector<8x48xf32> to vector<8x16xf32>
    %915 = vector.extract_strided_slice %897 {offsets = [0, 32], sizes = [8, 16], strides = [1, 1]} : vector<8x48xf32> to vector<8x16xf32>
    %916 = arith.mulf %905, %915 : vector<8x16xf32>
    %917 = arith.addf %914, %916 : vector<8x16xf32>
    %918 = math.tanh %917 : vector<8x16xf32>
    %cst_211 = arith.constant 1.000000e+00 : f32
    %919 = vector.broadcast %cst_211 : f32 to vector<8x16xf32>
    %920 = arith.subf %919, %913 : vector<8x16xf32>
    %921 = arith.mulf %920, %918 : vector<8x16xf32>
    %922 = arith.mulf %913, %893 : vector<8x16xf32>
    %923 = arith.addf %921, %922 : vector<8x16xf32>
    %c32_212 = arith.constant 32 : index
    %c0_213 = arith.constant 0 : index
    %924 = vector.load %arg17[%c32_212, %c0_213] : memref<64x16xf32, #tpu.memory_space<vmem>>, vector<8x16xf32>
    tpu.vector_store %arg17[%c32_212, %c0_213], %923 {strides = array<i32>} : memref<64x16xf32, #tpu.memory_space<vmem>>, vector<8x16xf32>,
    %925 = vector.extract_strided_slice %773 {offsets = [40, 0], sizes = [8, 48], strides = [1, 1]} : vector<64x48xf32> to vector<8x48xf32>
    %cst_214 = arith.constant dense<0.000000e+00> : vector<8x48xf32>
    %926 = tpu.matmul %923, %765, %cst_214 {dimension_numbers = #tpu.dot_dimension_numbers<[1], [0], [0], [1], [0, 0, 1, 1], [], []>} : vector<8x16xf32>, vector<16x48xf32>, vector<8x48xf32> -> vector<8x48xf32>
    %927 = arith.addf %926, %770 : vector<8x48xf32>
    %928 = vector.extract_strided_slice %925 {offsets = [0, 0], sizes = [8, 16], strides = [1, 1]} : vector<8x48xf32> to vector<8x16xf32>
    %929 = vector.extract_strided_slice %927 {offsets = [0, 0], sizes = [8, 16], strides = [1, 1]} : vector<8x48xf32> to vector<8x16xf32>
    %930 = arith.addf %928, %929 : vector<8x16xf32>
    %931 = arith.negf %930 : vector<8x16xf32>
    %932 = math.exp %931 : vector<8x16xf32>
    %cst_215 = arith.constant 1.000000e+00 : f32
    %933 = vector.broadcast %cst_215 : f32 to vector<8x16xf32>
    %934 = arith.addf %933, %932 : vector<8x16xf32>
    %935 = arith.divf %933, %934 : vector<8x16xf32>
    %936 = vector.extract_strided_slice %925 {offsets = [0, 16], sizes = [8, 16], strides = [1, 1]} : vector<8x48xf32> to vector<8x16xf32>
    %937 = vector.extract_strided_slice %927 {offsets = [0, 16], sizes = [8, 16], strides = [1, 1]} : vector<8x48xf32> to vector<8x16xf32>
    %938 = arith.addf %936, %937 : vector<8x16xf32>
    %939 = arith.negf %938 : vector<8x16xf32>
    %940 = math.exp %939 : vector<8x16xf32>
    %cst_216 = arith.constant 1.000000e+00 : f32
    %941 = vector.broadcast %cst_216 : f32 to vector<8x16xf32>
    %942 = arith.addf %941, %940 : vector<8x16xf32>
    %943 = arith.divf %941, %942 : vector<8x16xf32>
    %944 = vector.extract_strided_slice %925 {offsets = [0, 32], sizes = [8, 16], strides = [1, 1]} : vector<8x48xf32> to vector<8x16xf32>
    %945 = vector.extract_strided_slice %927 {offsets = [0, 32], sizes = [8, 16], strides = [1, 1]} : vector<8x48xf32> to vector<8x16xf32>
    %946 = arith.mulf %935, %945 : vector<8x16xf32>
    %947 = arith.addf %944, %946 : vector<8x16xf32>
    %948 = math.tanh %947 : vector<8x16xf32>
    %cst_217 = arith.constant 1.000000e+00 : f32
    %949 = vector.broadcast %cst_217 : f32 to vector<8x16xf32>
    %950 = arith.subf %949, %943 : vector<8x16xf32>
    %951 = arith.mulf %950, %948 : vector<8x16xf32>
    %952 = arith.mulf %943, %923 : vector<8x16xf32>
    %953 = arith.addf %951, %952 : vector<8x16xf32>
    %c40_218 = arith.constant 40 : index
    %c0_219 = arith.constant 0 : index
    %954 = vector.load %arg17[%c40_218, %c0_219] : memref<64x16xf32, #tpu.memory_space<vmem>>, vector<8x16xf32>
    tpu.vector_store %arg17[%c40_218, %c0_219], %953 {strides = array<i32>} : memref<64x16xf32, #tpu.memory_space<vmem>>, vector<8x16xf32>,
    %955 = vector.extract_strided_slice %773 {offsets = [48, 0], sizes = [8, 48], strides = [1, 1]} : vector<64x48xf32> to vector<8x48xf32>
    %cst_220 = arith.constant dense<0.000000e+00> : vector<8x48xf32>
    %956 = tpu.matmul %953, %765, %cst_220 {dimension_numbers = #tpu.dot_dimension_numbers<[1], [0], [0], [1], [0, 0, 1, 1], [], []>} : vector<8x16xf32>, vector<16x48xf32>, vector<8x48xf32> -> vector<8x48xf32>
    %957 = arith.addf %956, %770 : vector<8x48xf32>
    %958 = vector.extract_strided_slice %955 {offsets = [0, 0], sizes = [8, 16], strides = [1, 1]} : vector<8x48xf32> to vector<8x16xf32>
    %959 = vector.extract_strided_slice %957 {offsets = [0, 0], sizes = [8, 16], strides = [1, 1]} : vector<8x48xf32> to vector<8x16xf32>
    %960 = arith.addf %958, %959 : vector<8x16xf32>
    %961 = arith.negf %960 : vector<8x16xf32>
    %962 = math.exp %961 : vector<8x16xf32>
    %cst_221 = arith.constant 1.000000e+00 : f32
    %963 = vector.broadcast %cst_221 : f32 to vector<8x16xf32>
    %964 = arith.addf %963, %962 : vector<8x16xf32>
    %965 = arith.divf %963, %964 : vector<8x16xf32>
    %966 = vector.extract_strided_slice %955 {offsets = [0, 16], sizes = [8, 16], strides = [1, 1]} : vector<8x48xf32> to vector<8x16xf32>
    %967 = vector.extract_strided_slice %957 {offsets = [0, 16], sizes = [8, 16], strides = [1, 1]} : vector<8x48xf32> to vector<8x16xf32>
    %968 = arith.addf %966, %967 : vector<8x16xf32>
    %969 = arith.negf %968 : vector<8x16xf32>
    %970 = math.exp %969 : vector<8x16xf32>
    %cst_222 = arith.constant 1.000000e+00 : f32
    %971 = vector.broadcast %cst_222 : f32 to vector<8x16xf32>
    %972 = arith.addf %971, %970 : vector<8x16xf32>
    %973 = arith.divf %971, %972 : vector<8x16xf32>
    %974 = vector.extract_strided_slice %955 {offsets = [0, 32], sizes = [8, 16], strides = [1, 1]} : vector<8x48xf32> to vector<8x16xf32>
    %975 = vector.extract_strided_slice %957 {offsets = [0, 32], sizes = [8, 16], strides = [1, 1]} : vector<8x48xf32> to vector<8x16xf32>
    %976 = arith.mulf %965, %975 : vector<8x16xf32>
    %977 = arith.addf %974, %976 : vector<8x16xf32>
    %978 = math.tanh %977 : vector<8x16xf32>
    %cst_223 = arith.constant 1.000000e+00 : f32
    %979 = vector.broadcast %cst_223 : f32 to vector<8x16xf32>
    %980 = arith.subf %979, %973 : vector<8x16xf32>
    %981 = arith.mulf %980, %978 : vector<8x16xf32>
    %982 = arith.mulf %973, %953 : vector<8x16xf32>
    %983 = arith.addf %981, %982 : vector<8x16xf32>
    %c48_224 = arith.constant 48 : index
    %c0_225 = arith.constant 0 : index
    %984 = vector.load %arg17[%c48_224, %c0_225] : memref<64x16xf32, #tpu.memory_space<vmem>>, vector<8x16xf32>
    tpu.vector_store %arg17[%c48_224, %c0_225], %983 {strides = array<i32>} : memref<64x16xf32, #tpu.memory_space<vmem>>, vector<8x16xf32>,
    %985 = vector.extract_strided_slice %773 {offsets = [56, 0], sizes = [8, 48], strides = [1, 1]} : vector<64x48xf32> to vector<8x48xf32>
    %cst_226 = arith.constant dense<0.000000e+00> : vector<8x48xf32>
    %986 = tpu.matmul %983, %765, %cst_226 {dimension_numbers = #tpu.dot_dimension_numbers<[1], [0], [0], [1], [0, 0, 1, 1], [], []>} : vector<8x16xf32>, vector<16x48xf32>, vector<8x48xf32> -> vector<8x48xf32>
    %987 = arith.addf %986, %770 : vector<8x48xf32>
    %988 = vector.extract_strided_slice %985 {offsets = [0, 0], sizes = [8, 16], strides = [1, 1]} : vector<8x48xf32> to vector<8x16xf32>
    %989 = vector.extract_strided_slice %987 {offsets = [0, 0], sizes = [8, 16], strides = [1, 1]} : vector<8x48xf32> to vector<8x16xf32>
    %990 = arith.addf %988, %989 : vector<8x16xf32>
    %991 = arith.negf %990 : vector<8x16xf32>
    %992 = math.exp %991 : vector<8x16xf32>
    %cst_227 = arith.constant 1.000000e+00 : f32
    %993 = vector.broadcast %cst_227 : f32 to vector<8x16xf32>
    %994 = arith.addf %993, %992 : vector<8x16xf32>
    %995 = arith.divf %993, %994 : vector<8x16xf32>
    %996 = vector.extract_strided_slice %985 {offsets = [0, 16], sizes = [8, 16], strides = [1, 1]} : vector<8x48xf32> to vector<8x16xf32>
    %997 = vector.extract_strided_slice %987 {offsets = [0, 16], sizes = [8, 16], strides = [1, 1]} : vector<8x48xf32> to vector<8x16xf32>
    %998 = arith.addf %996, %997 : vector<8x16xf32>
    %999 = arith.negf %998 : vector<8x16xf32>
    %1000 = math.exp %999 : vector<8x16xf32>
    %cst_228 = arith.constant 1.000000e+00 : f32
    %1001 = vector.broadcast %cst_228 : f32 to vector<8x16xf32>
    %1002 = arith.addf %1001, %1000 : vector<8x16xf32>
    %1003 = arith.divf %1001, %1002 : vector<8x16xf32>
    %1004 = vector.extract_strided_slice %985 {offsets = [0, 32], sizes = [8, 16], strides = [1, 1]} : vector<8x48xf32> to vector<8x16xf32>
    %1005 = vector.extract_strided_slice %987 {offsets = [0, 32], sizes = [8, 16], strides = [1, 1]} : vector<8x48xf32> to vector<8x16xf32>
    %1006 = arith.mulf %995, %1005 : vector<8x16xf32>
    %1007 = arith.addf %1004, %1006 : vector<8x16xf32>
    %1008 = math.tanh %1007 : vector<8x16xf32>
    %cst_229 = arith.constant 1.000000e+00 : f32
    %1009 = vector.broadcast %cst_229 : f32 to vector<8x16xf32>
    %1010 = arith.subf %1009, %1003 : vector<8x16xf32>
    %1011 = arith.mulf %1010, %1008 : vector<8x16xf32>
    %1012 = arith.mulf %1003, %983 : vector<8x16xf32>
    %1013 = arith.addf %1011, %1012 : vector<8x16xf32>
    %c56_230 = arith.constant 56 : index
    %c0_231 = arith.constant 0 : index
    %1014 = vector.load %arg17[%c56_230, %c0_231] : memref<64x16xf32, #tpu.memory_space<vmem>>, vector<8x16xf32>
    tpu.vector_store %arg17[%c56_230, %c0_231], %1013 {strides = array<i32>} : memref<64x16xf32, #tpu.memory_space<vmem>>, vector<8x16xf32>,
    return
  }
}

</mosaic_0001>

<bundles_post_ra>
// kernel: ae_forward.1
= control target key start
LH: loop header
LB: loop body
LE: loop exit
PB: predicated region body
PF: predicated region fallthrough
CT: control target
= control target key end

     0   :  { %s4009_s0 = inlined_call_operand.hbm [shape: f32[64,16], index: 0, kind: input, shape index: {}]   ;;  %s4010_s1 = inlined_call_operand.vmem [shape: f32[16,96], index: 1, kind: input, shape index: {}]   ;;  %s4011_s2 = inlined_call_operand.vmem [shape: f32[32,96], index: 2, kind: input, shape index: {}]   ;;  %s4012_s3 = inlined_call_operand.vmem [shape: f32[2,96], index: 3, kind: input, shape index: {}]   ;;  %s4013_s4 = inlined_call_operand.hbm [shape: f32[32,96], index: 4, kind: input, shape index: {}]   ;;  %s4014_s5 = inlined_call_operand.hbm [shape: f32[32,96], index: 5, kind: input, shape index: {}]   ;;  %s4015_s6 = inlined_call_operand.vmem [shape: f32[2,96], index: 6, kind: input, shape index: {}]   ;;  %s4016_s7 = inlined_call_operand.vmem [shape: f32[32,16], index: 7, kind: input, shape index: {}]   ;;  %s4017_s8 = inlined_call_operand.vmem [shape: f32[1,16], index: 8, kind: input, shape index: {}]   ;;  %s4018_s9 = inlined_call_operand.hbm [shape: f32[16,48], index: 9, kind: input, shape index: {}]   ;;  %s4019_s10 = inlined_call_operand.hbm [shape: f32[16,48], index: 10, kind: input, shape index: {}]   ;;  %s4020_s11 = inlined_call_operand.vmem [shape: f32[2,48], index: 11, kind: input, shape index: {}]   ;;  %s4021_s12 = inlined_call_operand.hbm [shape: f32[16,48], index: 12, kind: input, shape index: {}]   ;;  %s4022_s13 = inlined_call_operand.hbm [shape: f32[16,48], index: 13, kind: input, shape index: {}]   ;;  %s4023_s14 = inlined_call_operand.vmem [shape: f32[2,48], index: 14, kind: input, shape index: {}]   ;;  %s4024_s15 = inlined_call_operand.hbm [shape: f32[64,32], index: 15, kind: output, shape index: {0}]   ;;  %s4025_s16 = inlined_call_operand.hbm [shape: f32[16,32], index: 16, kind: output, shape index: {1}]   ;;  %s4026_s17 = inlined_call_operand.hbm [shape: f32[64,16], index: 17, kind: output, shape index: {2}]  }
   0x1   :  { %4028 = sst [smem:[#allocation24_spill]] %s4009_s0 }
   0x2   :  { %4029 = sst [smem:[#allocation25_spill]] %s4010_s1 }
   0x3   :  { %23 = vsyncpa [#allocation3], 0 }
   0x4   :  { %24 = vsyncpa [#allocation6], 0 }
   0x5   :  { %25 = vsyncpa [#allocation9], 0 }
   0x6   :  { %26 = vsyncpa [#allocation12], 0 }
   0x7   :  { %27 = vsyncpa [#allocation4], 0 }
   0x8   :  { %28 = vsyncpa [#allocation16], 0  ;;  %s52_s26 = sshll.u32 %s4013_s4, 4  ;;  %s3299_s27 = smov [#allocation5]   ;;  %s53_s26 = int_to_ptr.hbm [resolvable:$true] %s52_s26 }
   0x9   :  { %s54_s28 = sshll.u32 %s3299_s27, 4  ;;  %s84_s30 = sshll.u32 %s4018_s9, 4  ;;  %s55_s28 = int_to_ptr.vmem [resolvable:$true] %s54_s28  ;;  %s85_s30 = int_to_ptr.hbm [resolvable:$true] %s84_s30 }
   0xa   :  { %s3300_s18 = smov 128   ;;  %s3301_s19 = smov 8  }
   0xb   :  { %60 = dma.hbm_to_vmem [thread:$0]  %s53_s26, 512, %s55_s28, [#allocation6], %s3300_s18, %s3300_s18, %s3301_s19  }
   0xc   :  { %s3302_s1 = smov [#allocation8]   ;;  %s112_s4 = sshll.u32 %s4021_s12, 4  ;;  %s113_s4 = int_to_ptr.hbm [resolvable:$true] %s112_s4 }
   0xd   :  { %s86_s20 = sshll.u32 %s3302_s1, 4  ;;  %s4030_s24 = sld [smem:[#allocation24_spill]]  ;;  %s87_s20 = int_to_ptr.vmem [resolvable:$true] %s86_s20 }
   0xe   :  { %92 = dma.hbm_to_vmem [thread:$0]  %s85_s30, 256, %s87_s20, [#allocation9], %s3300_s18, %s3300_s18, %s3301_s19  }
   0xf   :  { %s3303_s27 = smov [#allocation11]   ;;  %s3304_s26 = smov [#allocation2]  }
  0x10   :  { %s114_s29 = sshll.u32 %s3303_s27, 4  ;;  %s35_s12 = sshll.u32 %s3304_s26, 4  ;;  %s115_s29 = int_to_ptr.vmem [resolvable:$true] %s114_s29  ;;  %s36_s12 = int_to_ptr.vmem [resolvable:$true] %s35_s12 }
  0x11   :  { %120 = dma.hbm_to_vmem [thread:$0]  %s113_s4, 256, %s115_s29, [#allocation12], %s3300_s18, %s3300_s18, %s3301_s19  }
  0x12   :  { %s65_s1 = sshll.u32 %s4014_s5, 4  ;;  %s97_s21 = sshll.u32 %s4019_s10, 4  ;;  %s66_s1 = int_to_ptr.hbm [resolvable:$true] %s65_s1  ;;  %s98_s21 = int_to_ptr.hbm [resolvable:$true] %s97_s21 }
  0x13   :  { %s33_s25 = sshll.u32 %s4030_s24, 4  ;;  %s3305_s22 = smov [#allocation7]   ;;  %s34_s25 = int_to_ptr.hbm [resolvable:$true] %s33_s25 }
  0x14   :  { %41 = dma.hbm_to_vmem [thread:$0]  %s34_s25, 1024, %s36_s12, [#allocation3], %s3300_s18, %s3300_s18, %s3301_s19  }
  0x15   :  { %s67_s9 = sshll.u32 %s3305_s22, 4  ;;  %s3306_s4 = smov [#allocation10]   ;;  %s68_s9 = int_to_ptr.vmem [resolvable:$true] %s67_s9 }
  0x16   :  { %73 = dma.hbm_to_vmem [thread:$0]  %s66_s1, 512, %s68_s9, [#allocation6], %s3300_s18, %s3300_s18, %s3301_s19  }
  0x17   :  { %s99_s5 = sshll.u32 %s3306_s4, 4  ;;  %s125_s27 = sshll.u32 %s4022_s13, 4  ;;  %s100_s5 = int_to_ptr.vmem [resolvable:$true] %s99_s5  ;;  %s126_s27 = int_to_ptr.hbm [resolvable:$true] %s125_s27 }
  0x18   :  { %105 = dma.hbm_to_vmem [thread:$0]  %s98_s21, 256, %s100_s5, [#allocation9], %s3300_s18, %s3300_s18, %s3301_s19  }
  0x19   :  { %s3307_s10 = smov [#allocation13]  }
  0x1a   :  { %s127_s25 = sshll.u32 %s3307_s10, 4  ;;  %s128_s25 = int_to_ptr.vmem [resolvable:$true] %s127_s25 }
  0x1b   :  { %133 = dma.hbm_to_vmem [thread:$0]  %s126_s27, 256, %s128_s25, [#allocation12], %s3300_s18, %s3300_s18, %s3301_s19  }
  0x1c   :  { %3287 = dma.done.wait [#allocation3], 1024  }
  0x1d   :  { %3288 = vsyncadd [#allocation3], 4294966272 }
  0x1e   :  { %3289 = dma.done.wait [#allocation6], 1024  }
  0x1f   :  { %3290 = vsyncadd [#allocation6], 4294966272 }
  0x20   :  { %3291 = dma.done.wait [#allocation9], 512  }
  0x21   :  { %3292 = vsyncadd [#allocation9], 4294966784 }
  0x22   :  { %3293 = dma.done.wait [#allocation12], 512  }
  0x23   :  { %3294 = vsyncadd [#allocation12], 4294966784  ;;  %s4031_s26 = sld [smem:[#allocation25_spill]]  ;;  %v170_v2 = vld [vmem:[#allocation2 + $0x30] sm:$0xff]  ;;  %vm181_vm0 = vcmask 130048   ;;  %v3457_v3 = vld [vmem:[%s4011_s2 + $0x18] sm:$0xff] }
  0x24   :  { %v164_v4 = vld [vmem:[#allocation2] sm:$0xff]  ;;  %329 = vmatpush.msra.mxu2 %v3457_v3  ;;  %v3464_v5 = vld [vmem:[%s4011_s2 + $0x10] sm:$0xff]  ;;  %v3472_v6 = vld [vmem:[%s4011_s2 + $0x8] sm:$0xff]  ;;  %v3308_v8 = vmov 0.0   ;;  %s3309_s23 = smov 64   ;;  %vm247_vm5 = vcmask 261120  }
  0x25   :  { %v3479_v7 = vld [vmem:[%s4011_s2] sm:$0xff]  ;;  %v165_v41 = vld [vmem:[#allocation2 + $0x8] sm:$0xff]  ;;  %s3312_s30 = smov 112   ;;  %s2695_s2 = sshll.u32 %s4025_s16, 4  ;;  %s2696_s2 = int_to_ptr.hbm [resolvable:$true] %s2695_s2 }
  0x26   :  { %330 = vmatpush.msra.mxu2 %v3464_v5  ;;  %v178_v10 = vld [vmem:[%s4012_s3] sm:$0x3]  ;;  %s3310_s3 = smov 96   ;;  %s3314_s24 = smov [#allocation14]  }
  0x27   :  { %v3506_v11 = vperm.slane %v178_v10, 1  ;;  %v3510_v15 = vperm.slane %v178_v10, 0  ;;  %s2680_s27 = sshll.u32 %s3314_s24, 4  ;;  %s3315_s16 = smov [#allocation17]   ;;  %s2681_s27 = int_to_ptr.vmem [resolvable:$true] %s2680_s27 }
  0x28   :  { %331 = vmatpush.msra.mxu2 %v3472_v6 }
  0x29   :  { %v173_v0 = vld [vmem:[%s4031_s26 + $0x8] sm:$0xff]  ;;  %v172_v1 = vld [vmem:[%s4031_s26] sm:$0xff] }
  0x2a   :  { %2833 = vmatpush.msra.mxu1 %v173_v0  ;;  %220 = vmatpush.msra.mxu0 %v173_v0 }
  0x2b   :  { %2834 = vmatpush.msra.mxu3 %v173_v0  ;;  %332 = vmatpush.msra.mxu2 %v3479_v7 }
  0x2c   :  { %2835 = vmatpush.msra.mxu1 %v172_v1  ;;  %221 = vmatpush.msra.mxu0 %v172_v1 }
  0x2d   :  { %2739 = vmatmul.msk.f32.vlgmr.msra.gmra.mxu1 %vm181_vm0, %v170_v2  ;;  %2733 = vmatmul.msk.f32.vlgmr.msra.gmra.mxu0 %vm181_vm0, %v164_v4  ;;  %v171_v2 = vld [vmem:[#allocation2 + $0x38] sm:$0xff] }
  0x2e   :  { %263 = vmatpush.msrb.mxu1 %v3457_v3  ;;  %2836 = vmatpush.msra.mxu3 %v172_v1 }
  0x2f   :  { %527 = vmatpush.msrb.mxu2 %v3457_v3  ;;  %2740 = vmatmul.msk.f32.vlgmr.msra.gmra.mxu3 %vm181_vm0, %v171_v2 }
  0x30   :  { %264 = vmatpush.msrb.mxu1 %v3464_v5  ;;  %395 = vmatpush.msrb.mxu3 %v3457_v3 }
  0x31   :  { %528 = vmatpush.msrb.mxu2 %v3464_v5 }
  0x32   :  { %265 = vmatpush.msrb.mxu1 %v3472_v6  ;;  %396 = vmatpush.msrb.mxu3 %v3464_v5 }
  0x33   :  { %529 = vmatpush.msrb.mxu2 %v3472_v6 }
  0x34   :  { %266 = vmatpush.msrb.mxu1 %v3479_v7  ;;  %397 = vmatpush.msrb.mxu3 %v3472_v6 }
  0x35   :  { %267 = vmatmul.f32.vlgmr.msrb.gmra.mxu1 %v3308_v8  ;;  %530 = vmatpush.msrb.mxu2 %v3479_v7 }
  0x36   :  { %461 = vmatpush.msra.mxu1 %v3457_v3  ;;  %398 = vmatpush.msrb.mxu3 %v3479_v7 }
  0x37   :  { %2734 = vmatmul.msk.f32.gmra.mxu0 %vm181_vm0, %v165_v41 }
  0x38   :  { %462 = vmatpush.msra.mxu1 %v3464_v5  ;;  %593 = vmatpush.msra.mxu3 %v3457_v3 }
  0x3a   :  { %463 = vmatpush.msra.mxu1 %v3472_v6  ;;  %594 = vmatpush.msra.mxu3 %v3464_v5 }
  0x3c   :  { %464 = vmatpush.msra.mxu1 %v3479_v7  ;;  %595 = vmatpush.msra.mxu3 %v3472_v6 }
  0x3e   :  { %659 = vmatpush.msrb.mxu1 %v3457_v3  ;;  %596 = vmatpush.msra.mxu3 %v3479_v7 }
  0x40   :  { %660 = vmatpush.msrb.mxu1 %v3464_v5 }
  0x42   :  { %661 = vmatpush.msrb.mxu1 %v3472_v6 }
  0x44   :  { %662 = vmatpush.msrb.mxu1 %v3479_v7 }
  0xaa   :  { %v3501_v9 = vpop.f32.mrf.mxu1  ;;  %v223_v14 = vpop.f32.mrf.mxu0 }
  0xab   :  { %v224_v16 = vadd.f32 %v223_v14, %v3510_v15 }
  0xb2   :  { %v268_v12 = vpop.f32.mrf.mxu1 }
  0xb3   :  { %v269_v13 = vadd.f32 %v268_v12, %v3506_v11 }
  0xb4   :  { %v226_v45 = vpop.f32.mrf.mxu0 }
  0xb5   :  { %292 = vrot.lane.b32.xlu0 %v269_v13, %s3309_s23  ;;  %v271_v17 = vadd.f32 %v269_v13, %v224_v16  ;;  %v227_v46 = vadd.f32 %v226_v45, %v3510_v15 }
  0xb7   :  { %v2741_v18 = vmul.f32 -1.442695, %v271_v17 }
  0xb9   :  { %2855 = vpow2.f32 %v2741_v18 }
  0xbf   :  { %v2856_v19 = vpop.eup %2855 }
  0xc0   :  { %v275_v20 = vadd.f32 1.0, %v2856_v19 }
  0xc2   :  { %2857 = vrcp.f32 %v275_v20  ;;  %v287_v26 = vand.u32 2147483648, %v275_v20  ;;  %vm281_vm2 = vweird.f32 %v275_v20  ;;  %v285_v27 = vand.u32 2147483647, %v275_v20 }
  0xc4   :  { %v288_v29 = vor.u32 1.1754944e-38, %v287_v26  ;;  %vm286_vm4 = vcmp.eq.f32.partialorder %v285_v27, 8.507059e+37 }
  0xc8   :  { %v2858_v21 = vpop.eup %2857 }
  0xc9   :  { %v277_v22 = vmul.f32 %v2858_v21, %v275_v20  ;;  %vm282_vm1 = vweird.f32 %v2858_v21 }
  0xca   :  { %vm283_vm3 = vmor %vm281_vm2, %vm282_vm1 }
  0xcb   :  { %v278_v23 = vsub.f32 1.0, %v277_v22 }
  0xcd   :  { %v279_v24 = vmul.f32 %v2858_v21, %v278_v23 }
  0xcf   :  { %v280_v25 = vadd.f32 %v2858_v21, %v279_v24 }
  0xd1   :  { %v284_v28 = vsel %vm283_vm3, %v2858_v21, %v280_v25 }
  0xd2   :  { %v289_v31 = vsel %vm286_vm4, %v288_v29, %v284_v28 }
  0xd3   :  { %v302_v36 = vsub.f32 1.0, %v289_v31  ;;  %v308_v38 = vmul.f32 0.0, %v289_v31 }
 0x127   :  { %v293_v30 = vpop.permute.xlu0 %292 }
 0x128   :  { %v295_v32 = vmul.f32 %v293_v30, %v289_v31 }
 0x12a   :  { %297 = vrot.lane.b32.xlu0 %v295_v32, %s3309_s23 }
 0x19c   :  { %v298_v33 = vpop.permute.xlu0 %297 }
 0x19d   :  { %v300_v34 = vadd.f32 %v298_v33, %v224_v16  ;;  %v166_v16 = vld [vmem:[#allocation2 + $0x10] sm:$0xff] }
 0x19e   :  { %2735 = vmatmul.msk.f32.gmra.mxu0 %vm181_vm0, %v166_v16 }
 0x19f   :  { %2859 = vtanh.f32 %v300_v34 }
 0x1a5   :  { %v2860_v35 = vpop.eup %2859 }
 0x1a6   :  { %304 = vrot.lane.b32.xlu1 %v2860_v35, %s3310_s3 }
 0x218   :  { %v305_v37 = vpop.permute.xlu1 %304 }
 0x219   :  { %v307_v39 = vmul.f32 %v305_v37, %v302_v36 }
 0x21b   :  { %v309_v40 = vadd.f32 %v308_v38, %v307_v39 }
 0x21d   :  { %311 = vrot.lane.b32.xlu1 %v309_v40, %s3310_s3 }
 0x28f   :  { %v312_v42 = vpop.permute.xlu1 %311 }
 0x290   :  { %314 = vst.msk [vmem:[#allocation14] sm:$0xff] %vm247_vm5, %v312_v42  ;;  %2742 = vmatmul.msk.f32.vlgmr.msra.gmra.mxu2 %vm247_vm5, %v312_v42 }
 0x291   :  { %725 = vmatpush.msra.mxu2 %v3457_v3  ;;  %v3537_v3 = vpop.f32.mrf.mxu3 }
 0x293   :  { %726 = vmatpush.msra.mxu2 %v3464_v5 }
 0x295   :  { %727 = vmatpush.msra.mxu2 %v3472_v6 }
 0x297   :  { %728 = vmatpush.msra.mxu2 %v3479_v7  ;;  %v229_v7 = vpop.f32.mrf.mxu0 }
 0x298   :  { %v230_v18 = vadd.f32 %v229_v7, %v3510_v15 }
 0x313   :  { %v334_v43 = vpop.f32.mrf.mxu2 }
 0x314   :  { %v335_v44 = vadd.f32 %v334_v43, %v3506_v11  ;;  %v167_v43 = vld [vmem:[#allocation2 + $0x18] sm:$0xff] }
 0x315   :  { %2736 = vmatmul.msk.f32.gmra.mxu0 %vm181_vm0, %v167_v43 }
 0x316   :  { %358 = vrot.lane.b32.xlu2 %v335_v44, %s3309_s23  ;;  %v337_v47 = vadd.f32 %v335_v44, %v227_v46 }
 0x318   :  { %v2743_v48 = vmul.f32 -1.442695, %v337_v47 }
 0x31a   :  { %2861 = vpow2.f32 %v2743_v48 }
 0x320   :  { %v2862_v49 = vpop.eup %2861 }
 0x321   :  { %v341_v50 = vadd.f32 1.0, %v2862_v49 }
 0x323   :  { %2863 = vrcp.f32 %v341_v50  ;;  %v353_v56 = vand.u32 2147483648, %v341_v50  ;;  %vm347_vm7 = vweird.f32 %v341_v50  ;;  %v351_v57 = vand.u32 2147483647, %v341_v50 }
 0x325   :  { %v354_v59 = vor.u32 1.1754944e-38, %v353_v56  ;;  %vm352_vm9 = vcmp.eq.f32.partialorder %v351_v57, 8.507059e+37 }
 0x329   :  { %v2864_v51 = vpop.eup %2863 }
 0x32a   :  { %v343_v52 = vmul.f32 %v2864_v51, %v341_v50  ;;  %vm348_vm6 = vweird.f32 %v2864_v51 }
 0x32b   :  { %vm349_vm8 = vmor %vm347_vm7, %vm348_vm6 }
 0x32c   :  { %v344_v53 = vsub.f32 1.0, %v343_v52 }
 0x32e   :  { %v345_v54 = vmul.f32 %v2864_v51, %v344_v53 }
 0x330   :  { %v346_v55 = vadd.f32 %v2864_v51, %v345_v54 }
 0x332   :  { %v350_v58 = vsel %vm349_vm8, %v2864_v51, %v346_v55 }
 0x333   :  { %v355_v61 = vsel %vm352_vm9, %v354_v59, %v350_v58 }
 0x334   :  { %v368_v4 = vsub.f32 1.0, %v355_v61  ;;  %v374_v12 = vmul.f32 %v355_v61, %v309_v40 }
 0x370   :  { %v359_v60 = vpop.permute.xlu2 %358 }
 0x371   :  { %v361_v62 = vmul.f32 %v359_v60, %v355_v61 }
 0x373   :  { %363 = vrot.lane.b32.xlu2 %v361_v62, %s3309_s23 }
 0x392   :  { %v232_v47 = vpop.f32.mrf.mxu0 }
 0x393   :  { %v233_v48 = vadd.f32 %v232_v47, %v3510_v15  ;;  %v787_v47 = vld [vmem:[#allocation5 + $0x8] sm:$0xff] }
 0x3cd   :  { %v364_v63 = vpop.permute.xlu2 %363 }
 0x3ce   :  { %v366_v0 = vadd.f32 %v364_v63, %v227_v46 }
 0x3d0   :  { %2865 = vtanh.f32 %v366_v0 }
 0x3d6   :  { %v2866_v1 = vpop.eup %2865 }
 0x3d7   :  { %370 = vrot.lane.b32.xlu0 %v2866_v1, %s3310_s3 }
 0x449   :  { %v371_v10 = vpop.permute.xlu0 %370 }
 0x44a   :  { %v373_v13 = vmul.f32 %v371_v10, %v368_v4 }
 0x44c   :  { %v375_v14 = vadd.f32 %v374_v12, %v373_v13 }
 0x44e   :  { %377 = vrot.lane.b32.xlu1 %v375_v14, %s3310_s3 }
 0x4c0   :  { %v378_v17 = vpop.permute.xlu1 %377 }
 0x4c1   :  { %380 = vst.msk [vmem:[#allocation14 + $0x8] sm:$0xff] %vm247_vm5, %v378_v17  ;;  %2744 = vmatmul.msk.f32.vlgmr.msrb.gmra.mxu3 %vm247_vm5, %v378_v17  ;;  %v168_v17 = vld [vmem:[#allocation2 + $0x20] sm:$0xff] }
 0x4c2   :  { %2737 = vmatmul.msk.f32.gmra.mxu0 %vm181_vm0, %v168_v17 }
 0x544   :  { %v400_v5 = vpop.f32.mrf.mxu3 }
 0x545   :  { %v401_v6 = vadd.f32 %v400_v5, %v3506_v11 }
 0x547   :  { %424 = vrot.lane.b32.xlu2 %v401_v6, %s3309_s23  ;;  %v403_v19 = vadd.f32 %v401_v6, %v230_v18 }
 0x549   :  { %v2745_v20 = vmul.f32 -1.442695, %v403_v19 }
 0x54b   :  { %2867 = vpow2.f32 %v2745_v20 }
 0x551   :  { %v2868_v21 = vpop.eup %2867 }
 0x552   :  { %v407_v22 = vadd.f32 1.0, %v2868_v21 }
 0x554   :  { %2869 = vrcp.f32 %v407_v22  ;;  %v419_v28 = vand.u32 2147483648, %v407_v22  ;;  %vm413_vm11 = vweird.f32 %v407_v22  ;;  %v417_v29 = vand.u32 2147483647, %v407_v22 }
 0x556   :  { %v420_v31 = vor.u32 1.1754944e-38, %v419_v28  ;;  %vm418_vm13 = vcmp.eq.f32.partialorder %v417_v29, 8.507059e+37 }
 0x55a   :  { %v2870_v23 = vpop.eup %2869 }
 0x55b   :  { %v409_v24 = vmul.f32 %v2870_v23, %v407_v22  ;;  %vm414_vm10 = vweird.f32 %v2870_v23 }
 0x55c   :  { %vm415_vm12 = vmor %vm413_vm11, %vm414_vm10 }
 0x55d   :  { %v410_v25 = vsub.f32 1.0, %v409_v24 }
 0x55f   :  { %v411_v26 = vmul.f32 %v2870_v23, %v410_v25 }
 0x561   :  { %v412_v27 = vadd.f32 %v2870_v23, %v411_v26 }
 0x563   :  { %v416_v30 = vsel %vm415_vm12, %v2870_v23, %v412_v27 }
 0x564   :  { %v421_v33 = vsel %vm418_vm13, %v420_v31, %v416_v30 }
 0x565   :  { %v434_v38 = vsub.f32 1.0, %v421_v33  ;;  %v440_v40 = vmul.f32 %v421_v33, %v375_v14 }
 0x5a1   :  { %v425_v32 = vpop.permute.xlu2 %424 }
 0x5a2   :  { %v427_v34 = vmul.f32 %v425_v32, %v421_v33 }
 0x5a4   :  { %429 = vrot.lane.b32.xlu0 %v427_v34, %s3309_s23 }
 0x616   :  { %v430_v35 = vpop.permute.xlu0 %429 }
 0x617   :  { %v432_v36 = vadd.f32 %v430_v35, %v230_v18  ;;  %v235_v18 = vpop.f32.mrf.mxu0 }
 0x618   :  { %v236_v19 = vadd.f32 %v235_v18, %v3510_v15 }
 0x619   :  { %2871 = vtanh.f32 %v432_v36 }
 0x61f   :  { %v2872_v37 = vpop.eup %2871 }
 0x620   :  { %436 = vrot.lane.b32.xlu1 %v2872_v37, %s3310_s3 }
 0x692   :  { %v437_v39 = vpop.permute.xlu1 %436 }
 0x693   :  { %v439_v41 = vmul.f32 %v437_v39, %v434_v38 }
 0x695   :  { %v441_v42 = vadd.f32 %v440_v40, %v439_v41 }
 0x697   :  { %443 = vrot.lane.b32.xlu2 %v441_v42, %s3310_s3 }
 0x6f1   :  { %v444_v44 = vpop.permute.xlu2 %443 }
 0x6f2   :  { %446 = vst.msk [vmem:[#allocation14 + $0x10] sm:$0xff] %vm247_vm5, %v444_v44  ;;  %2746 = vmatmul.msk.f32.vlgmr.msra.gmra.mxu1 %vm247_vm5, %v444_v44  ;;  %v789_v44 = vld [vmem:[#allocation5 + $0x18] sm:$0xff] }
 0x6f3   :  { %833 = vmatpush.msrb.mxu3 %v789_v44 }
 0x76f   :  { %v466_v45 = vpop.f32.mrf.mxu1 }
 0x770   :  { %v467_v46 = vadd.f32 %v466_v45, %v3506_v11  ;;  %v788_v45 = vld [vmem:[#allocation5 + $0x10] sm:$0xff] }
 0x771   :  { %834 = vmatpush.msrb.mxu3 %v788_v45 }
 0x772   :  { %490 = vrot.lane.b32.xlu0 %v467_v46, %s3309_s23  ;;  %v469_v49 = vadd.f32 %v467_v46, %v233_v48  ;;  %v169_v46 = vld [vmem:[#allocation2 + $0x28] sm:$0xff] }
 0x773   :  { %2738 = vmatmul.msk.f32.gmra.mxu0 %vm181_vm0, %v169_v46  ;;  %835 = vmatpush.msrb.mxu3 %v787_v47 }
 0x774   :  { %v2747_v50 = vmul.f32 -1.442695, %v469_v49 }
 0x776   :  { %2873 = vpow2.f32 %v2747_v50  ;;  %v778_v50 = vld [vmem:[#allocation14] sm:$0xff] }
 0x77c   :  { %v2874_v51 = vpop.eup %2873 }
 0x77d   :  { %v473_v52 = vadd.f32 1.0, %v2874_v51  ;;  %v779_v51 = vld [vmem:[#allocation14 + $0x8] sm:$0xff] }
 0x77f   :  { %2875 = vrcp.f32 %v473_v52  ;;  %v485_v58 = vand.u32 2147483648, %v473_v52  ;;  %vm479_vm15 = vweird.f32 %v473_v52  ;;  %v483_v59 = vand.u32 2147483647, %v473_v52 }
 0x781   :  { %v486_v61 = vor.u32 1.1754944e-38, %v485_v58  ;;  %vm484_vm2 = vcmp.eq.f32.partialorder %v483_v59, 8.507059e+37 }
 0x785   :  { %v2876_v53 = vpop.eup %2875 }
 0x786   :  { %v475_v54 = vmul.f32 %v2876_v53, %v473_v52  ;;  %vm480_vm14 = vweird.f32 %v2876_v53  ;;  %v780_v52 = vld [vmem:[#allocation14 + $0x10] sm:$0xff] }
 0x787   :  { %vm481_vm1 = vmor %vm479_vm15, %vm480_vm14 }
 0x788   :  { %v476_v55 = vsub.f32 1.0, %v475_v54 }
 0x78a   :  { %v477_v56 = vmul.f32 %v2876_v53, %v476_v55 }
 0x78c   :  { %v478_v57 = vadd.f32 %v2876_v53, %v477_v56 }
 0x78e   :  { %v482_v60 = vsel %vm481_vm1, %v2876_v53, %v478_v57 }
 0x78f   :  { %v487_v63 = vsel %vm484_vm2, %v486_v61, %v482_v60 }
 0x790   :  { %v500_v10 = vsub.f32 1.0, %v487_v63  ;;  %v506_v13 = vmul.f32 %v487_v63, %v441_v42 }
 0x7e4   :  { %v491_v62 = vpop.permute.xlu0 %490 }
 0x7e5   :  { %v493_v0 = vmul.f32 %v491_v62, %v487_v63 }
 0x7e7   :  { %495 = vrot.lane.b32.xlu1 %v493_v0, %s3309_s23 }
 0x7f0   :  { %v238_v57 = vpop.f32.mrf.mxu0 }
 0x7f1   :  { %v239_v58 = vadd.f32 %v238_v57, %v3510_v15 }
 0x859   :  { %v496_v1 = vpop.permute.xlu1 %495 }
 0x85a   :  { %v498_v2 = vadd.f32 %v496_v1, %v233_v48  ;;  %v786_v48 = vld [vmem:[#allocation5] sm:$0xff] }
 0x85b   :  { %836 = vmatpush.msrb.mxu3 %v786_v48 }
 0x85c   :  { %2877 = vtanh.f32 %v498_v2 }
 0x862   :  { %v2878_v4 = vpop.eup %2877 }
 0x863   :  { %502 = vrot.lane.b32.xlu2 %v2878_v4, %s3310_s3 }
 0x8bd   :  { %v503_v12 = vpop.permute.xlu2 %502 }
 0x8be   :  { %v505_v14 = vmul.f32 %v503_v12, %v500_v10 }
 0x8c0   :  { %v507_v16 = vadd.f32 %v506_v13, %v505_v14 }
 0x8c2   :  { %509 = vrot.lane.b32.xlu0 %v507_v16, %s3310_s3 }
 0x934   :  { %v510_v5 = vpop.permute.xlu0 %509 }
 0x935   :  { %512 = vst.msk [vmem:[#allocation14 + $0x18] sm:$0xff] %vm247_vm5, %v510_v5  ;;  %2748 = vmatmul.msk.f32.vlgmr.msrb.gmra.mxu2 %vm247_vm5, %v510_v5 }
 0x93c   :  { %v781_v53 = vld [vmem:[#allocation14 + $0x18] sm:$0xff] }
 0x9b8   :  { %v532_v6 = vpop.f32.mrf.mxu2 }
 0x9b9   :  { %v533_v7 = vadd.f32 %v532_v6, %v3506_v11 }
 0x9bb   :  { %556 = vrot.lane.b32.xlu1 %v533_v7, %s3309_s23  ;;  %v535_v20 = vadd.f32 %v533_v7, %v236_v19 }
 0x9bd   :  { %v2749_v21 = vmul.f32 -1.442695, %v535_v20 }
 0x9bf   :  { %2879 = vpow2.f32 %v2749_v21 }
 0x9c5   :  { %v2880_v22 = vpop.eup %2879 }
 0x9c6   :  { %v539_v23 = vadd.f32 1.0, %v2880_v22 }
 0x9c8   :  { %2881 = vrcp.f32 %v539_v23  ;;  %v551_v29 = vand.u32 2147483648, %v539_v23  ;;  %vm545_vm4 = vweird.f32 %v539_v23  ;;  %v549_v30 = vand.u32 2147483647, %v539_v23 }
 0x9ca   :  { %v552_v32 = vor.u32 1.1754944e-38, %v551_v29  ;;  %vm550_vm7 = vcmp.eq.f32.partialorder %v549_v30, 8.507059e+37 }
 0x9ce   :  { %v2882_v24 = vpop.eup %2881 }
 0x9cf   :  { %v541_v25 = vmul.f32 %v2882_v24, %v539_v23  ;;  %vm546_vm3 = vweird.f32 %v2882_v24 }
 0x9d0   :  { %vm547_vm6 = vmor %vm545_vm4, %vm546_vm3 }
 0x9d1   :  { %v542_v26 = vsub.f32 1.0, %v541_v25  ;;  %v3582_v25 = vld [vmem:[#allocation7 + $0x10] sm:$0xff] }
 0x9d3   :  { %v543_v27 = vmul.f32 %v2882_v24, %v542_v26  ;;  %v3586_v26 = vld [vmem:[#allocation7 + $0x8] sm:$0xff] }
 0x9d5   :  { %v544_v28 = vadd.f32 %v2882_v24, %v543_v27  ;;  %v3590_v27 = vld [vmem:[#allocation7] sm:$0xff] }
 0x9d7   :  { %v548_v31 = vsel %vm547_vm6, %v2882_v24, %v544_v28  ;;  %v3580_v24 = vld [vmem:[#allocation7 + $0x18] sm:$0xff] }
 0x9d8   :  { %v553_v34 = vsel %vm550_vm7, %v552_v32, %v548_v31  ;;  %874 = vmatpush.msra.mxu1 %v3580_v24  ;;  %940 = vmatpush.msrb.mxu2 %v3580_v24  ;;  %v794_v32 = vld [vmem:[%s4015_s6] sm:$0x3]  ;;  %s2706_s6 = sshll.u32 %s3315_s16, 4  ;;  %s2707_s6 = int_to_ptr.vmem [resolvable:$true] %s2706_s6 }
 0x9d9   :  { %v566_v39 = vsub.f32 1.0, %v553_v34  ;;  %v572_v41 = vmul.f32 %v553_v34, %v507_v16 }
 0x9da   :  { %875 = vmatpush.msra.mxu1 %v3582_v25  ;;  %941 = vmatpush.msrb.mxu2 %v3582_v25 }
 0x9dc   :  { %876 = vmatpush.msra.mxu1 %v3586_v26  ;;  %942 = vmatpush.msrb.mxu2 %v3586_v26 }
 0x9de   :  { %877 = vmatpush.msra.mxu1 %v3590_v27  ;;  %943 = vmatpush.msrb.mxu2 %v3590_v27 }
 0xa2d   :  { %v557_v33 = vpop.permute.xlu1 %556 }
 0xa2e   :  { %v559_v35 = vmul.f32 %v557_v33, %v553_v34  ;;  %v3613_v33 = vperm.slane %v794_v32, 1 }
 0xa30   :  { %561 = vrot.lane.b32.xlu2 %v559_v35, %s3309_s23 }
 0xa8a   :  { %v562_v36 = vpop.permute.xlu2 %561 }
 0xa8b   :  { %v564_v37 = vadd.f32 %v562_v36, %v236_v19  ;;  %v242_v36 = vadd.f32 %v3501_v9, %v3510_v15 }
 0xa8d   :  { %2883 = vtanh.f32 %v564_v37 }
 0xa93   :  { %v2884_v38 = vpop.eup %2883 }
 0xa94   :  { %568 = vrot.lane.b32.xlu0 %v2884_v38, %s3310_s3  ;;  %v3619_v38 = vperm.slane %v794_v32, 0 }
 0xb06   :  { %v569_v40 = vpop.permute.xlu0 %568 }
 0xb07   :  { %v571_v42 = vmul.f32 %v569_v40, %v566_v39 }
 0xb09   :  { %v573_v43 = vadd.f32 %v572_v41, %v571_v42 }
 0xb0b   :  { %575 = vrot.lane.b32.xlu1 %v573_v43, %s3310_s3 }
 0xb7d   :  { %v576_v49 = vpop.permute.xlu1 %575 }
 0xb7e   :  { %578 = vst.msk [vmem:[#allocation14 + $0x20] sm:$0xff] %vm247_vm5, %v576_v49  ;;  %2750 = vmatmul.msk.f32.vlgmr.msra.gmra.mxu3 %vm247_vm5, %v576_v49 }
 0xb85   :  { %v782_v54 = vld [vmem:[#allocation14 + $0x20] sm:$0xff] }
 0xb86   :  { %2756 = vmatmul.msk.f32.vlgmr.msrb.gmra.mxu3 %vm247_vm5, %v778_v50 }
 0xb8e   :  { %2757 = vmatmul.msk.f32.gmra.mxu3 %vm247_vm5, %v779_v51 }
 0xb96   :  { %2758 = vmatmul.msk.f32.gmra.mxu3 %vm247_vm5, %v780_v52 }
 0xb9e   :  { %2759 = vmatmul.msk.f32.gmra.mxu3 %vm247_vm5, %v781_v53 }
 0xba6   :  { %2760 = vmatmul.msk.f32.gmra.mxu3 %vm247_vm5, %v782_v54 }
 0xc01   :  { %v598_v55 = vpop.f32.mrf.mxu3 }
 0xc02   :  { %v599_v56 = vadd.f32 %v598_v55, %v3506_v11 }
 0xc04   :  { %622 = vrot.lane.b32.xlu2 %v599_v56, %s3309_s23  ;;  %v601_v59 = vadd.f32 %v599_v56, %v239_v58 }
 0xc06   :  { %v2751_v60 = vmul.f32 -1.442695, %v601_v59 }
 0xc08   :  { %2885 = vpow2.f32 %v2751_v60 }
 0xc09   :  { %v838_v39 = vpop.f32.mrf.mxu3 }
 0xc0a   :  { %v839_v41 = vadd.f32 %v838_v39, %v3619_v38 }
 0xc0e   :  { %v2886_v61 = vpop.eup %2885 }
 0xc0f   :  { %v605_v62 = vadd.f32 1.0, %v2886_v61 }
 0xc11   :  { %2887 = vrcp.f32 %v605_v62  ;;  %v617_v10 = vand.u32 2147483648, %v605_v62  ;;  %vm611_vm9 = vweird.f32 %v605_v62  ;;  %v615_v12 = vand.u32 2147483647, %v605_v62 }
 0xc13   :  { %v618_v14 = vor.u32 1.1754944e-38, %v617_v10  ;;  %vm616_vm11 = vcmp.eq.f32.partialorder %v615_v12, 8.507059e+37 }
 0xc17   :  { %v2888_v63 = vpop.eup %2887 }
 0xc18   :  { %v607_v0 = vmul.f32 %v2888_v63, %v605_v62  ;;  %vm612_vm8 = vweird.f32 %v2888_v63 }
 0xc19   :  { %vm613_vm10 = vmor %vm611_vm9, %vm612_vm8 }
 0xc1a   :  { %v608_v1 = vsub.f32 1.0, %v607_v0 }
 0xc1c   :  { %v609_v2 = vmul.f32 %v2888_v63, %v608_v1 }
 0xc1e   :  { %v610_v4 = vadd.f32 %v2888_v63, %v609_v2 }
 0xc20   :  { %v614_v13 = vsel %vm613_vm10, %v2888_v63, %v610_v4 }
 0xc21   :  { %v619_v17 = vsel %vm616_vm11, %v618_v14, %v614_v13 }
 0xc22   :  { %v632_v19 = vsub.f32 1.0, %v619_v17  ;;  %v638_v21 = vmul.f32 %v619_v17, %v573_v43 }
 0xc5e   :  { %v623_v16 = vpop.permute.xlu2 %622 }
 0xc5f   :  { %v625_v5 = vmul.f32 %v623_v16, %v619_v17 }
 0xc61   :  { %627 = vrot.lane.b32.xlu0 %v625_v5, %s3309_s23 }
 0xcd3   :  { %v628_v6 = vpop.permute.xlu0 %627 }
 0xcd4   :  { %v630_v7 = vadd.f32 %v628_v6, %v239_v58 }
 0xcd6   :  { %2889 = vtanh.f32 %v630_v7 }
 0xcdc   :  { %v2890_v18 = vpop.eup %2889 }
 0xcdd   :  { %634 = vrot.lane.b32.xlu1 %v2890_v18, %s3310_s3 }
 0xd4f   :  { %v635_v20 = vpop.permute.xlu1 %634 }
 0xd50   :  { %v637_v22 = vmul.f32 %v635_v20, %v632_v19 }
 0xd52   :  { %v3576_v23 = vadd.f32 %v638_v21, %v637_v22 }
 0xd54   :  { %641 = vrot.lane.b32.xlu2 %v3576_v23, %s3310_s3 }
 0xdae   :  { %v642_v28 = vpop.permute.xlu2 %641 }
 0xdaf   :  { %644 = vst.msk [vmem:[#allocation14 + $0x28] sm:$0xff] %vm247_vm5, %v642_v28  ;;  %2752 = vmatmul.msk.f32.vlgmr.msrb.gmra.mxu1 %vm247_vm5, %v642_v28 }
 0xdb0   :  { %1006 = vmatpush.msrb.mxu1 %v3580_v24 }
 0xdb2   :  { %1007 = vmatpush.msrb.mxu1 %v3582_v25 }
 0xdb4   :  { %1008 = vmatpush.msrb.mxu1 %v3586_v26 }
 0xdb6   :  { %v783_v29 = vld [vmem:[#allocation14 + $0x28] sm:$0xff]  ;;  %1009 = vmatpush.msrb.mxu1 %v3590_v27 }
 0xdb7   :  { %2761 = vmatmul.msk.f32.gmra.mxu3 %vm247_vm5, %v783_v29  ;;  %878 = vmatmul.f32.vlgmr.msra.gmra.mxu1 %v3308_v8 }
 0xdb8   :  { %1138 = vmatpush.msra.mxu1 %v3580_v24 }
 0xdba   :  { %1139 = vmatpush.msra.mxu1 %v3582_v25 }
 0xdbc   :  { %1140 = vmatpush.msra.mxu1 %v3586_v26 }
 0xdbe   :  { %1141 = vmatpush.msra.mxu1 %v3590_v27 }
 0xe2c   :  { %v664_v30 = vpop.f32.mrf.mxu1 }
 0xe2d   :  { %v665_v31 = vadd.f32 %v664_v30, %v3506_v11 }
 0xe2f   :  { %688 = vrot.lane.b32.xlu0 %v665_v31, %s3309_s23  ;;  %v667_v37 = vadd.f32 %v665_v31, %v242_v36 }
 0xe31   :  { %v2753_v40 = vmul.f32 -1.442695, %v667_v37 }
 0xe33   :  { %2891 = vpow2.f32 %v2753_v40  ;;  %v841_v40 = vpop.f32.mrf.mxu3 }
 0xe34   :  { %v879_v34 = vpop.f32.mrf.mxu1 }
 0xe35   :  { %v880_v35 = vadd.f32 %v879_v34, %v3613_v33 }
 0xe37   :  { %903 = vrot.lane.b32.xlu1 %v880_v35, %s3309_s23  ;;  %v882_v42 = vadd.f32 %v880_v35, %v839_v41 }
 0xe39   :  { %v2764_v43 = vmul.f32 -1.442695, %v882_v42  ;;  %v2892_v44 = vpop.eup %2891 }
 0xe3a   :  { %v671_v45 = vadd.f32 1.0, %v2892_v44 }
 0xe3b   :  { %2893 = vpow2.f32 %v2764_v43 }
 0xe3c   :  { %2895 = vrcp.f32 %v671_v45  ;;  %v683_v55 = vand.u32 2147483648, %v671_v45  ;;  %vm677_vm13 = vweird.f32 %v671_v45  ;;  %v681_v56 = vand.u32 2147483647, %v671_v45 }
 0xe3e   :  { %v684_v59 = vor.u32 1.1754944e-38, %v683_v55  ;;  %vm682_vm15 = vcmp.eq.f32.partialorder %v681_v56, 8.507059e+37 }
 0xe41   :  { %v2894_v46 = vpop.eup %2893 }
 0xe42   :  { %v886_v47 = vadd.f32 1.0, %v2894_v46  ;;  %v2896_v48 = vpop.eup %2895 }
 0xe43   :  { %v673_v49 = vmul.f32 %v2896_v48, %v671_v45  ;;  %vm678_vm12 = vweird.f32 %v2896_v48 }
 0xe44   :  { %2897 = vrcp.f32 %v886_v47  ;;  %vm679_vm14 = vmor %vm677_vm13, %vm678_vm12  ;;  %v898_v0 = vand.u32 2147483648, %v886_v47  ;;  %vm892_vm2 = vweird.f32 %v886_v47  ;;  %v896_v1 = vand.u32 2147483647, %v886_v47 }
 0xe45   :  { %v674_v9 = vsub.f32 1.0, %v673_v49 }
 0xe46   :  { %v899_v4 = vor.u32 1.1754944e-38, %v898_v0  ;;  %vm897_vm4 = vcmp.eq.f32.partialorder %v896_v1, 8.507059e+37 }
 0xe47   :  { %v675_v51 = vmul.f32 %v2896_v48, %v674_v9 }
 0xe49   :  { %v676_v53 = vadd.f32 %v2896_v48, %v675_v51 }
 0xe4a   :  { %v2898_v50 = vpop.eup %2897 }
 0xe4b   :  { %v888_v52 = vmul.f32 %v2898_v50, %v886_v47  ;;  %v680_v57 = vsel %vm679_vm14, %v2896_v48, %v676_v53  ;;  %vm893_vm1 = vweird.f32 %v2898_v50 }
 0xe4c   :  { %v685_v61 = vsel %vm682_vm15, %v684_v59, %v680_v57  ;;  %vm894_vm3 = vmor %vm892_vm2, %vm893_vm1 }
 0xe4d   :  { %v889_v54 = vsub.f32 1.0, %v888_v52  ;;  %v698_v18 = vsub.f32 1.0, %v685_v61  ;;  %v704_v20 = vmul.f32 %v685_v61, %v3576_v23 }
 0xe4f   :  { %v890_v58 = vmul.f32 %v2898_v50, %v889_v54 }
 0xe51   :  { %v891_v63 = vadd.f32 %v2898_v50, %v890_v58 }
 0xe53   :  { %v895_v2 = vsel %vm894_vm3, %v2898_v50, %v891_v63 }
 0xe54   :  { %v900_v12 = vsel %vm897_vm4, %v899_v4, %v895_v2 }
 0xe55   :  { %v913_v28 = vsub.f32 1.0, %v900_v12  ;;  %v919_v30 = vmul.f32 0.0, %v900_v12 }
 0xea1   :  { %v689_v60 = vpop.permute.xlu0 %688 }
 0xea2   :  { %v691_v62 = vmul.f32 %v689_v60, %v685_v61 }
 0xea4   :  { %693 = vrot.lane.b32.xlu2 %v691_v62, %s3309_s23 }
 0xea9   :  { %v904_v10 = vpop.permute.xlu1 %903 }
 0xeaa   :  { %v906_v13 = vmul.f32 %v904_v10, %v900_v12  ;;  %v844_v10 = vpop.f32.mrf.mxu3 }
 0xeab   :  { %v845_v12 = vadd.f32 %v844_v10, %v3619_v38 }
 0xeac   :  { %908 = vrot.lane.b32.xlu0 %v906_v13, %s3309_s23 }
 0xefe   :  { %v694_v14 = vpop.permute.xlu2 %693 }
 0xeff   :  { %v696_v16 = vadd.f32 %v694_v14, %v242_v36 }
 0xf01   :  { %2899 = vtanh.f32 %v696_v16 }
 0xf07   :  { %v2900_v17 = vpop.eup %2899 }
 0xf08   :  { %700 = vrot.lane.b32.xlu1 %v2900_v17, %s3310_s3 }
 0xf1e   :  { %v909_v5 = vpop.permute.xlu0 %908 }
 0xf1f   :  { %v911_v6 = vadd.f32 %v909_v5, %v839_v41  ;;  %v842_v41 = vadd.f32 %v841_v40, %v3619_v38 }
 0xf21   :  { %2901 = vtanh.f32 %v911_v6 }
 0xf27   :  { %v2902_v7 = vpop.eup %2901 }
 0xf28   :  { %915 = vrot.lane.b32.xlu2 %v2902_v7, %s3310_s3 }
 0xf7a   :  { %v701_v19 = vpop.permute.xlu1 %700 }
 0xf7b   :  { %v703_v21 = vmul.f32 %v701_v19, %v698_v18 }
 0xf7d   :  { %v3627_v22 = vadd.f32 %v704_v20, %v703_v21 }
 0xf7f   :  { %707 = vrot.lane.b32.xlu0 %v3627_v22, %s3310_s3 }
 0xf82   :  { %v916_v29 = vpop.permute.xlu2 %915 }
 0xf83   :  { %v918_v31 = vmul.f32 %v916_v29, %v913_v28 }
 0xf85   :  { %v920_v32 = vadd.f32 %v919_v30, %v918_v31 }
 0xf87   :  { %922 = vrot.lane.b32.xlu1 %v920_v32, %s3310_s3 }
 0xff1   :  { %v708_v34 = vpop.permute.xlu0 %707 }
 0xff2   :  { %710 = vst.msk [vmem:[#allocation14 + $0x30] sm:$0xff] %vm247_vm5, %v708_v34  ;;  %2754 = vmatmul.msk.f32.vlgmr.msra.gmra.mxu2 %vm247_vm5, %v708_v34 }
 0xff3   :  { %1072 = vmatpush.msra.mxu2 %v3580_v24 }
 0xff5   :  { %1073 = vmatpush.msra.mxu2 %v3582_v25 }
 0xff7   :  { %1074 = vmatpush.msra.mxu2 %v3586_v26 }
 0xff9   :  { %v923_v23 = vpop.permute.xlu1 %922  ;;  %v784_v35 = vld [vmem:[#allocation14 + $0x30] sm:$0xff]  ;;  %1075 = vmatpush.msra.mxu2 %v3590_v27 }
 0xffa   :  { %925 = vst.msk [vmem:[#allocation14] sm:$0xff] %vm247_vm5, %v923_v23  ;;  %2762 = vmatmul.msk.f32.gmra.mxu3 %vm247_vm5, %v784_v35  ;;  %2765 = vmatmul.msk.f32.vlgmr.msrb.gmra.mxu2 %vm247_vm5, %v923_v23 }
 0xffb   :  { %1204 = vmatpush.msrb.mxu2 %v3580_v24 }
 0xffd   :  { %1205 = vmatpush.msrb.mxu2 %v3582_v25 }
 0xfff   :  { %1206 = vmatpush.msrb.mxu2 %v3586_v26 }
0x1001   :  { %1207 = vmatpush.msrb.mxu2 %v3590_v27 }
0x1075   :  { %v3645_v36 = vpop.f32.mrf.mxu2 }
0x107d   :  { %v945_v37 = vpop.f32.mrf.mxu2 }
0x107e   :  { %v946_v39 = vadd.f32 %v945_v37, %v3613_v33 }
0x1080   :  { %969 = vrot.lane.b32.xlu2 %v946_v39, %s3309_s23  ;;  %v948_v42 = vadd.f32 %v946_v39, %v842_v41 }
0x1082   :  { %v2766_v43 = vmul.f32 -1.442695, %v948_v42 }
0x1084   :  { %2903 = vpow2.f32 %v2766_v43 }
0x108a   :  { %v2904_v44 = vpop.eup %2903 }
0x108b   :  { %v952_v45 = vadd.f32 1.0, %v2904_v44 }
0x108d   :  { %2905 = vrcp.f32 %v952_v45  ;;  %v964_v50 = vand.u32 2147483648, %v952_v45  ;;  %vm958_vm7 = vweird.f32 %v952_v45  ;;  %v962_v51 = vand.u32 2147483647, %v952_v45 }
0x108f   :  { %v965_v53 = vor.u32 1.1754944e-38, %v964_v50  ;;  %vm963_vm9 = vcmp.eq.f32.partialorder %v962_v51, 8.507059e+37 }
0x1093   :  { %v2906_v46 = vpop.eup %2905 }
0x1094   :  { %v954_v47 = vmul.f32 %v2906_v46, %v952_v45  ;;  %vm959_vm6 = vweird.f32 %v2906_v46 }
0x1095   :  { %vm960_vm8 = vmor %vm958_vm7, %vm959_vm6 }
0x1096   :  { %v955_v48 = vsub.f32 1.0, %v954_v47 }
0x1098   :  { %v956_v49 = vmul.f32 %v2906_v46, %v955_v48 }
0x109a   :  { %v957_v9 = vadd.f32 %v2906_v46, %v956_v49 }
0x109c   :  { %v961_v52 = vsel %vm960_vm8, %v2906_v46, %v957_v9  ;;  %v847_v46 = vpop.f32.mrf.mxu3 }
0x109d   :  { %v966_v55 = vsel %vm963_vm9, %v965_v53, %v961_v52  ;;  %v848_v47 = vadd.f32 %v847_v46, %v3619_v38 }
0x109e   :  { %v979_v60 = vsub.f32 1.0, %v966_v55  ;;  %v985_v62 = vmul.f32 %v966_v55, %v920_v32 }
0x10da   :  { %v970_v54 = vpop.permute.xlu2 %969 }
0x10db   :  { %v972_v56 = vmul.f32 %v970_v54, %v966_v55 }
0x10dd   :  { %974 = vrot.lane.b32.xlu0 %v972_v56, %s3309_s23 }
0x114f   :  { %v975_v57 = vpop.permute.xlu0 %974 }
0x1150   :  { %v977_v58 = vadd.f32 %v975_v57, %v842_v41 }
0x1152   :  { %2907 = vtanh.f32 %v977_v58 }
0x1158   :  { %v2908_v59 = vpop.eup %2907 }
0x1159   :  { %981 = vrot.lane.b32.xlu1 %v2908_v59, %s3310_s3 }
0x11cb   :  { %v982_v61 = vpop.permute.xlu1 %981 }
0x11cc   :  { %v984_v63 = vmul.f32 %v982_v61, %v979_v60 }
0x11ce   :  { %v986_v0 = vadd.f32 %v985_v62, %v984_v63 }
0x11d0   :  { %988 = vrot.lane.b32.xlu2 %v986_v0, %s3310_s3 }
0x122a   :  { %v989_v1 = vpop.permute.xlu2 %988 }
0x122b   :  { %991 = vst.msk [vmem:[#allocation14 + $0x8] sm:$0xff] %vm247_vm5, %v989_v1  ;;  %2767 = vmatmul.msk.f32.vlgmr.msrb.gmra.mxu1 %vm247_vm5, %v989_v1 }
0x122c   :  { %1270 = vmatpush.msrb.mxu1 %v3580_v24 }
0x122e   :  { %1271 = vmatpush.msrb.mxu1 %v3582_v25 }
0x1230   :  { %1272 = vmatpush.msrb.mxu1 %v3586_v26 }
0x1232   :  { %1273 = vmatpush.msrb.mxu1 %v3590_v27 }
0x12a8   :  { %v1011_v2 = vpop.f32.mrf.mxu1 }
0x12a9   :  { %v1012_v4 = vadd.f32 %v1011_v2, %v3613_v33 }
0x12ab   :  { %1035 = vrot.lane.b32.xlu0 %v1012_v4, %s3309_s23  ;;  %v1014_v13 = vadd.f32 %v1012_v4, %v845_v12 }
0x12ad   :  { %v2768_v14 = vmul.f32 -1.442695, %v1014_v13  ;;  %v850_v13 = vpop.f32.mrf.mxu3 }
0x12af   :  { %2909 = vpow2.f32 %v2768_v14  ;;  %v851_v14 = vadd.f32 %v850_v13, %v3619_v38  ;;  %v1400_v13 = vld [vmem:[%s4016_s7 + $0x18] sm:$0xff] }
0x12b5   :  { %v2910_v16 = vpop.eup %2909 }
0x12b6   :  { %v1018_v17 = vadd.f32 1.0, %v2910_v16 }
0x12b8   :  { %2911 = vrcp.f32 %v1018_v17  ;;  %v1030_v20 = vand.u32 2147483648, %v1018_v17  ;;  %vm1024_vm11 = vweird.f32 %v1018_v17  ;;  %v1028_v21 = vand.u32 2147483647, %v1018_v17 }
0x12ba   :  { %v1031_v29 = vor.u32 1.1754944e-38, %v1030_v20  ;;  %vm1029_vm13 = vcmp.eq.f32.partialorder %v1028_v21, 8.507059e+37 }
0x12be   :  { %v2912_v5 = vpop.eup %2911 }
0x12bf   :  { %v1020_v6 = vmul.f32 %v2912_v5, %v1018_v17  ;;  %vm1025_vm10 = vweird.f32 %v2912_v5 }
0x12c0   :  { %vm1026_vm12 = vmor %vm1024_vm11, %vm1025_vm10 }
0x12c1   :  { %v1021_v7 = vsub.f32 1.0, %v1020_v6 }
0x12c3   :  { %v1022_v18 = vmul.f32 %v2912_v5, %v1021_v7 }
0x12c5   :  { %v1023_v19 = vadd.f32 %v2912_v5, %v1022_v18 }
0x12c7   :  { %v1027_v28 = vsel %vm1026_vm12, %v2912_v5, %v1023_v19 }
0x12c8   :  { %v1032_v31 = vsel %vm1029_vm13, %v1031_v29, %v1027_v28 }
0x12c9   :  { %v1045_v37 = vsub.f32 1.0, %v1032_v31  ;;  %v1051_v40 = vmul.f32 %v1032_v31, %v986_v0 }
0x131d   :  { %v1036_v30 = vpop.permute.xlu0 %1035 }
0x131e   :  { %v1038_v32 = vmul.f32 %v1036_v30, %v1032_v31 }
0x1320   :  { %1040 = vrot.lane.b32.xlu1 %v1038_v32, %s3309_s23 }
0x1392   :  { %v1041_v34 = vpop.permute.xlu1 %1040 }
0x1393   :  { %v1043_v23 = vadd.f32 %v1041_v34, %v845_v12 }
0x1395   :  { %2913 = vtanh.f32 %v1043_v23 }
0x139b   :  { %v2914_v35 = vpop.eup %2913 }
0x139c   :  { %1047 = vrot.lane.b32.xlu2 %v2914_v35, %s3310_s3 }
0x13f6   :  { %v1048_v39 = vpop.permute.xlu2 %1047 }
0x13f7   :  { %v1050_v41 = vmul.f32 %v1048_v39, %v1045_v37 }
0x13f9   :  { %v1052_v42 = vadd.f32 %v1051_v40, %v1050_v41 }
0x13fb   :  { %1054 = vrot.lane.b32.xlu0 %v1052_v42, %s3310_s3 }
0x146d   :  { %v1055_v43 = vpop.permute.xlu0 %1054 }
0x146e   :  { %1057 = vst.msk [vmem:[#allocation14 + $0x10] sm:$0xff] %vm247_vm5, %v1055_v43  ;;  %2769 = vmatmul.msk.f32.vlgmr.msra.gmra.mxu2 %vm247_vm5, %v1055_v43 }
0x146f   :  { %1336 = vmatpush.msra.mxu2 %v3580_v24 }
0x1471   :  { %1337 = vmatpush.msra.mxu2 %v3582_v25 }
0x1473   :  { %1338 = vmatpush.msra.mxu2 %v3586_v26 }
0x1475   :  { %1339 = vmatpush.msra.mxu2 %v3590_v27 }
0x14f1   :  { %v1077_v44 = vpop.f32.mrf.mxu2 }
0x14f2   :  { %v1078_v45 = vadd.f32 %v1077_v44, %v3613_v33 }
0x14f4   :  { %1101 = vrot.lane.b32.xlu1 %v1078_v45, %s3309_s23  ;;  %v1080_v48 = vadd.f32 %v1078_v45, %v848_v47 }
0x14f6   :  { %v2770_v49 = vmul.f32 -1.442695, %v1080_v48  ;;  %v853_v48 = vpop.f32.mrf.mxu3 }
0x14f8   :  { %2915 = vpow2.f32 %v2770_v49  ;;  %v854_v49 = vadd.f32 %v853_v48, %v3619_v38 }
0x14fe   :  { %v2916_v9 = vpop.eup %2915 }
0x14ff   :  { %v1084_v50 = vadd.f32 1.0, %v2916_v9 }
0x1501   :  { %2917 = vrcp.f32 %v1084_v50  ;;  %v1096_v27 = vand.u32 2147483648, %v1084_v50  ;;  %vm1090_vm15 = vweird.f32 %v1084_v50  ;;  %v1094_v53 = vand.u32 2147483647, %v1084_v50 }
0x1503   :  { %v1097_v55 = vor.u32 1.1754944e-38, %v1096_v27  ;;  %vm1095_vm2 = vcmp.eq.f32.partialorder %v1094_v53, 8.507059e+37 }
0x1507   :  { %v2918_v24 = vpop.eup %2917 }
0x1508   :  { %v1086_v25 = vmul.f32 %v2918_v24, %v1084_v50  ;;  %vm1091_vm14 = vweird.f32 %v2918_v24 }
0x1509   :  { %vm1092_vm1 = vmor %vm1090_vm15, %vm1091_vm14 }
0x150a   :  { %v1087_v51 = vsub.f32 1.0, %v1086_v25 }
0x150c   :  { %v1088_v26 = vmul.f32 %v2918_v24, %v1087_v51 }
0x150e   :  { %v1089_v52 = vadd.f32 %v2918_v24, %v1088_v26 }
0x1510   :  { %v1093_v54 = vsel %vm1092_vm1, %v2918_v24, %v1089_v52 }
0x1511   :  { %v1098_v57 = vsel %vm1095_vm2, %v1097_v55, %v1093_v54 }
0x1512   :  { %v1111_v62 = vsub.f32 1.0, %v1098_v57  ;;  %v1117_v0 = vmul.f32 %v1098_v57, %v1052_v42 }
0x1566   :  { %v1102_v56 = vpop.permute.xlu1 %1101 }
0x1567   :  { %v1104_v58 = vmul.f32 %v1102_v56, %v1098_v57 }
0x1569   :  { %1106 = vrot.lane.b32.xlu2 %v1104_v58, %s3309_s23 }
0x15c3   :  { %v1107_v59 = vpop.permute.xlu2 %1106 }
0x15c4   :  { %v1109_v60 = vadd.f32 %v1107_v59, %v848_v47 }
0x15c6   :  { %2919 = vtanh.f32 %v1109_v60 }
0x15cc   :  { %v2920_v61 = vpop.eup %2919 }
0x15cd   :  { %1113 = vrot.lane.b32.xlu0 %v2920_v61, %s3310_s3 }
0x163f   :  { %v1114_v63 = vpop.permute.xlu0 %1113 }
0x1640   :  { %v1116_v1 = vmul.f32 %v1114_v63, %v1111_v62 }
0x1642   :  { %v1118_v2 = vadd.f32 %v1117_v0, %v1116_v1  ;;  %v731_v0 = vadd.f32 %v3645_v36, %v3506_v11  ;;  %v1398_v11 = vld [vmem:[%s4016_s7 + $0x8] sm:$0xff]  ;;  %v1397_v36 = vld [vmem:[%s4016_s7] sm:$0xff] }
0x1644   :  { %1120 = vrot.lane.b32.xlu1 %v1118_v2, %s3310_s3 }
0x16b6   :  { %v1121_v4 = vpop.permute.xlu1 %1120 }
0x16b7   :  { %1123 = vst.msk [vmem:[#allocation14 + $0x18] sm:$0xff] %vm247_vm5, %v1121_v4  ;;  %2771 = vmatmul.msk.f32.vlgmr.msra.gmra.mxu1 %vm247_vm5, %v1121_v4 }
0x16b8   :  { %1441 = vmatpush.msra.mxu1 %v1400_v13 }
0x1734   :  { %v1143_v10 = vpop.f32.mrf.mxu1 }
0x1735   :  { %v1144_v12 = vadd.f32 %v1143_v10, %v3613_v33 }
0x1737   :  { %1167 = vrot.lane.b32.xlu2 %v1144_v12, %s3309_s23  ;;  %v1146_v16 = vadd.f32 %v1144_v12, %v851_v14 }
0x1739   :  { %v2772_v17 = vmul.f32 -1.442695, %v1146_v16 }
0x173b   :  { %2921 = vpow2.f32 %v2772_v17  ;;  %v1389_v17 = vld [vmem:[#allocation14] sm:$0xff] }
0x1741   :  { %v2922_v5 = vpop.eup %2921 }
0x1742   :  { %v1150_v6 = vadd.f32 1.0, %v2922_v5  ;;  %v1390_v5 = vld [vmem:[#allocation14 + $0x8] sm:$0xff] }
0x1744   :  { %2923 = vrcp.f32 %v1150_v6  ;;  %v1162_v28 = vand.u32 2147483648, %v1150_v6  ;;  %vm1156_vm4 = vweird.f32 %v1150_v6  ;;  %v1160_v29 = vand.u32 2147483647, %v1150_v6 }
0x1746   :  { %v1163_v31 = vor.u32 1.1754944e-38, %v1162_v28  ;;  %vm1161_vm7 = vcmp.eq.f32.partialorder %v1160_v29, 8.507059e+37 }
0x174a   :  { %v2924_v7 = vpop.eup %2923 }
0x174b   :  { %v1152_v18 = vmul.f32 %v2924_v7, %v1150_v6  ;;  %vm1157_vm3 = vweird.f32 %v2924_v7  ;;  %v1391_v6 = vld [vmem:[#allocation14 + $0x10] sm:$0xff] }
0x174c   :  { %vm1158_vm6 = vmor %vm1156_vm4, %vm1157_vm3 }
0x174d   :  { %v1153_v19 = vsub.f32 1.0, %v1152_v18 }
0x174f   :  { %v1154_v20 = vmul.f32 %v2924_v7, %v1153_v19 }
0x1751   :  { %v1155_v21 = vadd.f32 %v2924_v7, %v1154_v20  ;;  %v245_v20 = vadd.f32 %v3537_v3, %v3510_v15 }
0x1753   :  { %v1159_v30 = vsel %vm1158_vm6, %v2924_v7, %v1155_v21  ;;  %v1392_v7 = vld [vmem:[#allocation14 + $0x18] sm:$0xff]  ;;  %v733_v21 = vadd.f32 %v731_v0, %v245_v20 }
0x1754   :  { %v1164_v34 = vsel %vm1161_vm7, %v1163_v31, %v1159_v30 }
0x1755   :  { %v1177_v40 = vsub.f32 1.0, %v1164_v34  ;;  %v1183_v42 = vmul.f32 %v1164_v34, %v1118_v2  ;;  %v2755_v28 = vmul.f32 -1.442695, %v733_v21 }
0x1791   :  { %v1168_v32 = vpop.permute.xlu2 %1167 }
0x1792   :  { %v1170_v23 = vmul.f32 %v1168_v32, %v1164_v34 }
0x1794   :  { %1172 = vrot.lane.b32.xlu0 %v1170_v23, %s3309_s23 }
0x1806   :  { %v1173_v35 = vpop.permute.xlu0 %1172 }
0x1807   :  { %v1175_v37 = vadd.f32 %v1173_v35, %v851_v14  ;;  %v1399_v14 = vld [vmem:[%s4016_s7 + $0x10] sm:$0xff] }
0x1808   :  { %1442 = vmatpush.msra.mxu1 %v1399_v14 }
0x1809   :  { %2925 = vtanh.f32 %v1175_v37 }
0x180a   :  { %1443 = vmatpush.msra.mxu1 %v1398_v11 }
0x180c   :  { %1444 = vmatpush.msra.mxu1 %v1397_v36 }
0x180f   :  { %v2926_v39 = vpop.eup %2925 }
0x1810   :  { %1179 = vrot.lane.b32.xlu1 %v2926_v39, %s3310_s3 }
0x1882   :  { %v1180_v41 = vpop.permute.xlu1 %1179 }
0x1883   :  { %v1182_v43 = vmul.f32 %v1180_v41, %v1177_v40 }
0x1885   :  { %v1184_v44 = vadd.f32 %v1183_v42, %v1182_v43 }
0x1887   :  { %1186 = vrot.lane.b32.xlu2 %v1184_v44, %s3310_s3 }
0x18e1   :  { %v1187_v45 = vpop.permute.xlu2 %1186 }
0x18e2   :  { %1189 = vst.msk [vmem:[#allocation14 + $0x20] sm:$0xff] %vm247_vm5, %v1187_v45  ;;  %2773 = vmatmul.msk.f32.vlgmr.msrb.gmra.mxu2 %vm247_vm5, %v1187_v45  ;;  %v856_v45 = vpop.f32.mrf.mxu3 }
0x18e9   :  { %v1393_v18 = vld [vmem:[#allocation14 + $0x20] sm:$0xff] }
0x1965   :  { %v1209_v46 = vpop.f32.mrf.mxu2 }
0x1966   :  { %v1210_v47 = vadd.f32 %v1209_v46, %v3613_v33  ;;  %v857_v46 = vadd.f32 %v856_v45, %v3619_v38 }
0x1968   :  { %1233 = vrot.lane.b32.xlu0 %v1210_v47, %s3309_s23  ;;  %v1212_v9 = vadd.f32 %v1210_v47, %v854_v49 }
0x196a   :  { %v2774_v50 = vmul.f32 -1.442695, %v1212_v9 }
0x196c   :  { %2927 = vpow2.f32 %v2774_v50 }
0x1972   :  { %v2928_v24 = vpop.eup %2927 }
0x1973   :  { %v1216_v25 = vadd.f32 1.0, %v2928_v24 }
0x1975   :  { %2929 = vrcp.f32 %v1216_v25  ;;  %v1228_v54 = vand.u32 2147483648, %v1216_v25  ;;  %vm1222_vm9 = vweird.f32 %v1216_v25  ;;  %v1226_v55 = vand.u32 2147483647, %v1216_v25 }
0x1977   :  { %v1229_v57 = vor.u32 1.1754944e-38, %v1228_v54  ;;  %vm1227_vm11 = vcmp.eq.f32.partialorder %v1226_v55, 8.507059e+37 }
0x197b   :  { %v2930_v51 = vpop.eup %2929 }
0x197c   :  { %v1218_v26 = vmul.f32 %v2930_v51, %v1216_v25  ;;  %vm1223_vm8 = vweird.f32 %v2930_v51 }
0x197d   :  { %vm1224_vm10 = vmor %vm1222_vm9, %vm1223_vm8 }
0x197e   :  { %v1219_v52 = vsub.f32 1.0, %v1218_v26 }
0x1980   :  { %v1220_v27 = vmul.f32 %v2930_v51, %v1219_v52 }
0x1982   :  { %v1221_v53 = vadd.f32 %v2930_v51, %v1220_v27 }
0x1984   :  { %v1225_v56 = vsel %vm1224_vm10, %v2930_v51, %v1221_v53 }
0x1985   :  { %v1230_v59 = vsel %vm1227_vm11, %v1229_v57, %v1225_v56 }
0x1986   :  { %v1243_v1 = vsub.f32 1.0, %v1230_v59  ;;  %v1249_v4 = vmul.f32 %v1230_v59, %v1184_v44 }
0x19da   :  { %v1234_v58 = vpop.permute.xlu0 %1233 }
0x19db   :  { %v1236_v60 = vmul.f32 %v1234_v58, %v1230_v59 }
0x19dd   :  { %1238 = vrot.lane.b32.xlu1 %v1236_v60, %s3309_s23 }
0x1a4f   :  { %v1239_v61 = vpop.permute.xlu1 %1238 }
0x1a50   :  { %v1241_v62 = vadd.f32 %v1239_v61, %v854_v49 }
0x1a52   :  { %2931 = vtanh.f32 %v1241_v62 }
0x1a53   :  { %2933 = vpow2.f32 %v2755_v28 }
0x1a58   :  { %v2932_v63 = vpop.eup %2931 }
0x1a59   :  { %1245 = vrot.lane.b32.xlu2 %v2932_v63, %s3310_s3  ;;  %v2934_v29 = vpop.eup %2933 }
0x1a5a   :  { %v737_v30 = vadd.f32 1.0, %v2934_v29 }
0x1a5c   :  { %2935 = vrcp.f32 %v737_v30  ;;  %v749_v40 = vand.u32 2147483648, %v737_v30  ;;  %vm743_vm13 = vweird.f32 %v737_v30  ;;  %v747_v41 = vand.u32 2147483647, %v737_v30 }
0x1a5e   :  { %v750_v42 = vor.u32 1.1754944e-38, %v749_v40  ;;  %vm748_vm15 = vcmp.eq.f32.partialorder %v747_v41, 8.507059e+37 }
0x1a61   :  { %754 = vrot.lane.b32.xlu2 %v731_v0, %s3309_s23 }
0x1a62   :  { %v2936_v31 = vpop.eup %2935 }
0x1a63   :  { %v739_v32 = vmul.f32 %v2936_v31, %v737_v30  ;;  %vm744_vm12 = vweird.f32 %v2936_v31 }
0x1a64   :  { %vm745_vm14 = vmor %vm743_vm13, %vm744_vm12 }
0x1a65   :  { %v740_v34 = vsub.f32 1.0, %v739_v32 }
0x1a67   :  { %v741_v23 = vmul.f32 %v2936_v31, %v740_v34 }
0x1a69   :  { %v742_v37 = vadd.f32 %v2936_v31, %v741_v23 }
0x1a6b   :  { %v746_v15 = vsel %vm745_vm14, %v2936_v31, %v742_v37 }
0x1a6c   :  { %v751_v43 = vsel %vm748_vm15, %v750_v42, %v746_v15 }
0x1a6d   :  { %v764_v0 = vsub.f32 1.0, %v751_v43 }
0x1ab3   :  { %v1246_v2 = vpop.permute.xlu2 %1245 }
0x1ab4   :  { %v1248_v10 = vmul.f32 %v1246_v2, %v1243_v1  ;;  %v770_v2 = vmul.f32 %v751_v43, %v3627_v22 }
0x1ab6   :  { %v3695_v12 = vadd.f32 %v1249_v4, %v1248_v10 }
0x1ab8   :  { %1252 = vrot.lane.b32.xlu0 %v3695_v12, %s3310_s3 }
0x1abb   :  { %v755_v3 = vpop.permute.xlu2 %754 }
0x1abc   :  { %v757_v44 = vmul.f32 %v755_v3, %v751_v43 }
0x1b2a   :  { %v1253_v16 = vpop.permute.xlu0 %1252 }
0x1b2b   :  { %1255 = vst.msk [vmem:[#allocation14 + $0x28] sm:$0xff] %vm247_vm5, %v1253_v16  ;;  %2775 = vmatmul.msk.f32.vlgmr.msrb.gmra.mxu1 %vm247_vm5, %v1253_v16 }
0x1b32   :  { %v1394_v19 = vld [vmem:[#allocation14 + $0x28] sm:$0xff] }
0x1b33   :  { %2779 = vmatmul.msk.f32.vlgmr.msra.gmra.mxu1 %vm247_vm5, %v1389_v17 }
0x1b3b   :  { %2780 = vmatmul.msk.f32.gmra.mxu1 %vm247_vm5, %v1390_v5  ;;  %v1471_v5 = vld [vmem:[#allocation8 + $0x8] sm:$0xff] }
0x1b3c   :  { %1515 = vmatpush.msrb.mxu2 %v1471_v5 }
0x1b43   :  { %2781 = vmatmul.msk.f32.gmra.mxu1 %vm247_vm5, %v1391_v6  ;;  %v1470_v6 = vld [vmem:[#allocation8] sm:$0xff] }
0x1b44   :  { %1516 = vmatpush.msrb.mxu2 %v1470_v6 }
0x1b4b   :  { %2782 = vmatmul.msk.f32.gmra.mxu1 %vm247_vm5, %v1392_v7 }
0x1b53   :  { %2783 = vmatmul.msk.f32.gmra.mxu1 %vm247_vm5, %v1393_v18  ;;  %v3743_v18 = vld [vmem:[%s4017_s8] ss:$0 sm:$0xff] }
0x1b5b   :  { %2784 = vmatmul.msk.f32.gmra.mxu1 %vm247_vm5, %v1394_v19 }
0x1ba8   :  { %v1275_v35 = vpop.f32.mrf.mxu1 }
0x1ba9   :  { %v1276_v39 = vadd.f32 %v1275_v35, %v3613_v33 }
0x1bab   :  { %1299 = vrot.lane.b32.xlu1 %v1276_v39, %s3309_s23  ;;  %v1278_v47 = vadd.f32 %v1276_v39, %v857_v46 }
0x1bad   :  { %v2776_v48 = vmul.f32 -1.442695, %v1278_v47 }
0x1baf   :  { %2937 = vpow2.f32 %v2776_v48 }
0x1bb0   :  { %v1446_v7 = vpop.f32.mrf.mxu1 }
0x1bb3   :  { %759 = vrot.lane.b32.xlu1 %v757_v44, %s3309_s23 }
0x1bb5   :  { %v2938_v49 = vpop.eup %2937 }
0x1bb6   :  { %v1282_v9 = vadd.f32 1.0, %v2938_v49 }
0x1bb8   :  { %2939 = vrcp.f32 %v1282_v9  ;;  %v1294_v52 = vand.u32 2147483648, %v1282_v9  ;;  %vm1288_vm2 = vweird.f32 %v1282_v9  ;;  %v1292_v27 = vand.u32 2147483647, %v1282_v9  ;;  %v1449_v19 = vpop.f32.mrf.mxu1 }
0x1bb9   :  { %v1450_v29 = vadd.f32 %v3743_v18, %v1449_v19 }
0x1bba   :  { %v1295_v54 = vor.u32 1.1754944e-38, %v1294_v52  ;;  %vm1293_vm4 = vcmp.eq.f32.partialorder %v1292_v27, 8.507059e+37 }
0x1bbe   :  { %v2940_v50 = vpop.eup %2939 }
0x1bbf   :  { %v1284_v24 = vmul.f32 %v2940_v50, %v1282_v9  ;;  %vm1289_vm1 = vweird.f32 %v2940_v50 }
0x1bc0   :  { %vm1290_vm3 = vmor %vm1288_vm2, %vm1289_vm1  ;;  %v1452_v28 = vpop.f32.mrf.mxu1 }
0x1bc1   :  { %v1285_v25 = vsub.f32 1.0, %v1284_v24  ;;  %v1453_v30 = vadd.f32 %v3743_v18, %v1452_v28 }
0x1bc3   :  { %v1286_v51 = vmul.f32 %v2940_v50, %v1285_v25 }
0x1bc5   :  { %v1287_v26 = vadd.f32 %v2940_v50, %v1286_v51 }
0x1bc7   :  { %v1291_v53 = vsel %vm1290_vm3, %v2940_v50, %v1287_v26 }
0x1bc8   :  { %v1296_v56 = vsel %vm1293_vm4, %v1295_v54, %v1291_v53  ;;  %v1455_v31 = vpop.f32.mrf.mxu1 }
0x1bc9   :  { %v1309_v13 = vsub.f32 1.0, %v1296_v56  ;;  %v1315_v11 = vmul.f32 %v1296_v56, %v3695_v12  ;;  %v1456_v32 = vadd.f32 %v3743_v18, %v1455_v31 }
0x1bd0   :  { %v1458_v34 = vpop.f32.mrf.mxu1 }
0x1bd1   :  { %v1459_v23 = vadd.f32 %v3743_v18, %v1458_v34 }
0x1bd8   :  { %v1461_v35 = vpop.f32.mrf.mxu1 }
0x1bd9   :  { %v1462_v37 = vadd.f32 %v3743_v18, %v1461_v35 }
0x1c1d   :  { %v1300_v55 = vpop.permute.xlu1 %1299 }
0x1c1e   :  { %v1302_v57 = vmul.f32 %v1300_v55, %v1296_v56 }
0x1c20   :  { %1304 = vrot.lane.b32.xlu0 %v1302_v57, %s3309_s23 }
0x1c25   :  { %v760_v58 = vpop.permute.xlu1 %759 }
0x1c26   :  { %v762_v59 = vadd.f32 %v760_v58, %v245_v20  ;;  %v1447_v20 = vadd.f32 %v3743_v18, %v1446_v7 }
0x1c28   :  { %2941 = vtanh.f32 %v762_v59 }
0x1c2e   :  { %v2942_v60 = vpop.eup %2941 }
0x1c2f   :  { %766 = vrot.lane.b32.xlu0 %v2942_v60, %s3310_s3  ;;  %v3767_v60 = vld [vmem:[#allocation10 + $0x8] sm:$0xff] }
0x1c30   :  { %1624 = vmatpush.msrb.mxu0 %v3767_v60  ;;  %1756 = vmatpush.msra.mxu3 %v3767_v60 }
0x1c92   :  { %v1305_v61 = vpop.permute.xlu0 %1304 }
0x1c93   :  { %v1307_v62 = vadd.f32 %v1305_v61, %v857_v46  ;;  %v3769_v61 = vld [vmem:[#allocation10] sm:$0xff] }
0x1c94   :  { %1625 = vmatpush.msrb.mxu0 %v3769_v61  ;;  %1757 = vmatpush.msra.mxu3 %v3769_v61 }
0x1c95   :  { %2943 = vtanh.f32 %v1307_v62 }
0x1c96   :  { %1690 = vmatpush.msra.mxu0 %v3767_v60  ;;  %1888 = vmatpush.msrb.mxu3 %v3767_v60 }
0x1c98   :  { %1691 = vmatpush.msra.mxu0 %v3769_v61  ;;  %1889 = vmatpush.msrb.mxu3 %v3769_v61 }
0x1c9b   :  { %v2944_v63 = vpop.eup %2943 }
0x1c9c   :  { %1311 = vrot.lane.b32.xlu2 %v2944_v63, %s3310_s3 }
0x1ca1   :  { %v767_v1 = vpop.permute.xlu0 %766 }
0x1ca2   :  { %v769_v4 = vmul.f32 %v767_v1, %v764_v0 }
0x1ca4   :  { %v771_v10 = vadd.f32 %v770_v2, %v769_v4 }
0x1ca6   :  { %773 = vrot.lane.b32.xlu2 %v771_v10, %s3310_s3 }
0x1cf6   :  { %v1312_v14 = vpop.permute.xlu2 %1311 }
0x1cf7   :  { %v1314_v36 = vmul.f32 %v1312_v14, %v1309_v13 }
0x1cf9   :  { %v3731_v16 = vadd.f32 %v1315_v11, %v1314_v36 }
0x1cfb   :  { %1318 = vrot.lane.b32.xlu1 %v3731_v16, %s3310_s3 }
0x1d00   :  { %v774_v17 = vpop.permute.xlu2 %773 }
0x1d01   :  { %776 = vst.msk [vmem:[#allocation14 + $0x38] sm:$0xff] %vm247_vm5, %v774_v17 }
0x1d02   :  { %777 = vst.msk [vmem:[#allocation15] sm:$0xff] %vm247_vm5, %v774_v17  ;;  %v1474_v17 = vld [vmem:[%s4020_s11] sm:$0x3]  ;;  %s3311_s11 = smov 32  }
0x1d03   :  { %v3806_v7 = vperm.slane %v1474_v17, 0 }
0x1d08   :  { %v785_v22 = vld [vmem:[#allocation14 + $0x38] sm:$0xff] }
0x1d09   :  { %2763 = vmatmul.msk.f32.gmra.mxu3 %vm247_vm5, %v785_v22  ;;  %v3802_v22 = vperm.slane %v1474_v17, 1 }
0x1d6d   :  { %v1319_v12 = vpop.permute.xlu1 %1318 }
0x1d6e   :  { %1321 = vst.msk [vmem:[#allocation14 + $0x30] sm:$0xff] %vm247_vm5, %v1319_v12  ;;  %2777 = vmatmul.msk.f32.vlgmr.msra.gmra.mxu2 %vm247_vm5, %v1319_v12 }
0x1d6f   :  { %1558 = vmatpush.msra.mxu2 %v3767_v60 }
0x1d71   :  { %1559 = vmatpush.msra.mxu2 %v3769_v61 }
0x1d75   :  { %v1395_v21 = vld [vmem:[#allocation14 + $0x30] sm:$0xff] }
0x1d76   :  { %2785 = vmatmul.msk.f32.gmra.mxu1 %vm247_vm5, %v1395_v21  ;;  %2787 = vmatmul.msk.f32.vlgmr.msrb.gmra.mxu2 %vm181_vm0, %v1447_v20 }
0x1d7e   :  { %2788 = vmatmul.msk.f32.gmra.mxu2 %vm181_vm0, %v1450_v29 }
0x1d86   :  { %2789 = vmatmul.msk.f32.gmra.mxu2 %vm181_vm0, %v1453_v30 }
0x1d8c   :  { %v859_v3 = vpop.f32.mrf.mxu3 }
0x1d8d   :  { %v860_v42 = vadd.f32 %v859_v3, %v3619_v38 }
0x1d8e   :  { %2790 = vmatmul.msk.f32.gmra.mxu2 %vm181_vm0, %v1456_v32 }
0x1d96   :  { %2791 = vmatmul.msk.f32.gmra.mxu2 %vm181_vm0, %v1459_v23 }
0x1d9e   :  { %2792 = vmatmul.msk.f32.gmra.mxu2 %vm181_vm0, %v1462_v37 }
0x1df1   :  { %v1341_v39 = vpop.f32.mrf.mxu2 }
0x1df2   :  { %v1342_v40 = vadd.f32 %v1341_v39, %v3613_v33 }
0x1df3   :  { %v1464_v41 = vpop.f32.mrf.mxu1 }
0x1df4   :  { %v1465_v15 = vadd.f32 %v3743_v18, %v1464_v41  ;;  %1365 = vrot.lane.b32.xlu0 %v1342_v40, %s3309_s23  ;;  %v1344_v43 = vadd.f32 %v1342_v40, %v860_v42 }
0x1df6   :  { %2793 = vmatmul.msk.f32.gmra.mxu2 %vm181_vm0, %v1465_v15  ;;  %v2778_v44 = vmul.f32 -1.442695, %v1344_v43 }
0x1df8   :  { %2945 = vpow2.f32 %v2778_v44 }
0x1df9   :  { %v1518_v2 = vpop.f32.mrf.mxu2 }
0x1dfa   :  { %v1519_v12 = vadd.f32 %v1518_v2, %v3806_v7 }
0x1dfe   :  { %v2946_v45 = vpop.eup %2945 }
0x1dff   :  { %v1348_v46 = vadd.f32 1.0, %v2946_v45 }
0x1e01   :  { %2947 = vrcp.f32 %v1348_v46  ;;  %v1360_v50 = vand.u32 2147483648, %v1348_v46  ;;  %vm1354_vm7 = vweird.f32 %v1348_v46  ;;  %v1358_v24 = vand.u32 2147483647, %v1348_v46  ;;  %v1521_v4 = vpop.f32.mrf.mxu2 }
0x1e03   :  { %v1361_v51 = vor.u32 1.1754944e-38, %v1360_v50  ;;  %vm1359_vm9 = vcmp.eq.f32.partialorder %v1358_v24, 8.507059e+37 }
0x1e07   :  { %v2948_v47 = vpop.eup %2947 }
0x1e08   :  { %v1350_v48 = vmul.f32 %v2948_v47, %v1348_v46  ;;  %vm1355_vm6 = vweird.f32 %v2948_v47 }
0x1e09   :  { %vm1356_vm8 = vmor %vm1354_vm7, %vm1355_vm6  ;;  %v3787_v10 = vpop.f32.mrf.mxu2 }
0x1e0a   :  { %v1351_v49 = vsub.f32 1.0, %v1350_v48 }
0x1e0c   :  { %v1352_v33 = vmul.f32 %v2948_v47, %v1351_v49 }
0x1e0e   :  { %v1353_v9 = vadd.f32 %v2948_v47, %v1352_v33 }
0x1e10   :  { %v1357_v25 = vsel %vm1356_vm8, %v2948_v47, %v1353_v9  ;;  %v1522_v9 = vadd.f32 %v1521_v4, %v3806_v7 }
0x1e11   :  { %v1362_v38 = vsel %vm1359_vm9, %v1361_v51, %v1357_v25  ;;  %v3789_v13 = vpop.f32.mrf.mxu2 }
0x1e12   :  { %v1375_v55 = vsub.f32 1.0, %v1362_v38  ;;  %v1381_v57 = vmul.f32 %v1362_v38, %v3731_v16 }
0x1e19   :  { %v3791_v14 = vpop.f32.mrf.mxu2 }
0x1e21   :  { %v3793_v11 = vpop.f32.mrf.mxu2 }
0x1e66   :  { %v1366_v26 = vpop.permute.xlu0 %1365 }
0x1e67   :  { %v1368_v52 = vmul.f32 %v1366_v26, %v1362_v38 }
0x1e69   :  { %1370 = vrot.lane.b32.xlu1 %v1368_v52, %s3309_s23 }
0x1e79   :  { %v3795_v36 = vpop.f32.mrf.mxu2 }
0x1edb   :  { %v1371_v27 = vpop.permute.xlu1 %1370 }
0x1edc   :  { %v1373_v53 = vadd.f32 %v1371_v27, %v860_v42 }
0x1ede   :  { %2949 = vtanh.f32 %v1373_v53 }
0x1ee4   :  { %v2950_v54 = vpop.eup %2949 }
0x1ee5   :  { %1377 = vrot.lane.b32.xlu2 %v2950_v54, %s3310_s3 }
0x1f3f   :  { %v1378_v56 = vpop.permute.xlu2 %1377 }
0x1f40   :  { %v1380_v58 = vmul.f32 %v1378_v56, %v1375_v55 }
0x1f42   :  { %v1382_v59 = vadd.f32 %v1381_v57, %v1380_v58 }
0x1f44   :  { %1384 = vrot.lane.b32.xlu0 %v1382_v59, %s3310_s3 }
0x1fb6   :  { %v1385_v62 = vpop.permute.xlu0 %1384 }
0x1fb7   :  { %1387 = vst.msk [vmem:[#allocation14 + $0x38] sm:$0xff] %vm247_vm5, %v1385_v62 }
0x1fb8   :  { %1388 = vst.msk [vmem:[#allocation15 + $0x8] sm:$0xff] %vm247_vm5, %v1385_v62 }
0x1fbe   :  { %v1396_v63 = vld [vmem:[#allocation14 + $0x38] sm:$0xff] }
0x1fbf   :  { %2786 = vmatmul.msk.f32.gmra.mxu1 %vm247_vm5, %v1396_v63 }
0x203c   :  { %v1467_v0 = vpop.f32.mrf.mxu1 }
0x203d   :  { %v1468_v1 = vadd.f32 %v3743_v18, %v1467_v0 }
0x203f   :  { %2794 = vmatmul.msk.f32.gmra.mxu2 %vm181_vm0, %v1468_v1 }
0x2047   :  { %1560 = vmatmul.f32.vlgmr.msra.gmra.mxu2 %v3308_v8 }
0x20c2   :  { %v3797_v16 = vpop.f32.mrf.mxu2 }
0x20ca   :  { %v1561_v5 = vpop.f32.mrf.mxu2 }
0x20cb   :  { %v1562_v6 = vadd.f32 %v1561_v5, %v3802_v22 }
0x20cd   :  { %1585 = vrot.lane.b32.xlu1 %v1562_v6, %s3310_s3  ;;  %v1564_v18 = vadd.f32 %v1562_v6, %v1519_v12 }
0x20cf   :  { %v2795_v19 = vmul.f32 -1.442695, %v1564_v18 }
0x20d1   :  { %2951 = vpow2.f32 %v2795_v19 }
0x20d7   :  { %v2952_v20 = vpop.eup %2951 }
0x20d8   :  { %v1568_v21 = vadd.f32 1.0, %v2952_v20  ;;  %v1525_v20 = vadd.f32 %v3787_v10, %v3806_v7 }
0x20da   :  { %2953 = vrcp.f32 %v1568_v21  ;;  %v1580_v34 = vand.u32 2147483648, %v1568_v21  ;;  %vm1574_vm10 = vweird.f32 %v1568_v21  ;;  %v1578_v23 = vand.u32 2147483647, %v1568_v21 }
0x20dc   :  { %v1581_v37 = vor.u32 1.1754944e-38, %v1580_v34  ;;  %vm1579_vm12 = vcmp.eq.f32.partialorder %v1578_v23, 8.507059e+37 }
0x20e0   :  { %v2954_v28 = vpop.eup %2953 }
0x20e1   :  { %v1570_v29 = vmul.f32 %v2954_v28, %v1568_v21  ;;  %vm1575_vm5 = vweird.f32 %v2954_v28 }
0x20e2   :  { %vm1576_vm11 = vmor %vm1574_vm10, %vm1575_vm5 }
0x20e3   :  { %v1571_v30 = vsub.f32 1.0, %v1570_v29 }
0x20e5   :  { %v1572_v31 = vmul.f32 %v2954_v28, %v1571_v30 }
0x20e7   :  { %v1573_v32 = vadd.f32 %v2954_v28, %v1572_v31 }
0x20e9   :  { %v1577_v35 = vsel %vm1576_vm11, %v2954_v28, %v1573_v32 }
0x20ea   :  { %v1582_v40 = vsel %vm1579_vm12, %v1581_v37, %v1577_v35 }
0x20eb   :  { %v1595_v43 = vsub.f32 1.0, %v1582_v40  ;;  %v1601_v45 = vmul.f32 0.0, %v1582_v40 }
0x213f   :  { %v1586_v39 = vpop.permute.xlu1 %1585 }
0x2140   :  { %v1588_v41 = vmul.f32 %v1586_v39, %v1582_v40 }
0x2142   :  { %1590 = vrot.lane.b32.xlu2 %v1588_v41, %s3311_s11 }
0x219c   :  { %v1591_v15 = vpop.permute.xlu2 %1590 }
0x219d   :  { %v1593_v3 = vadd.f32 %v1591_v15, %v1519_v12 }
0x219f   :  { %2955 = vtanh.f32 %v1593_v3 }
0x21a5   :  { %v2956_v42 = vpop.eup %2955 }
0x21a6   :  { %1597 = vrot.lane.b32.xlu0 %v2956_v42, %s3312_s30 }
0x2218   :  { %v1598_v44 = vpop.permute.xlu0 %1597 }
0x2219   :  { %v1600_v46 = vmul.f32 %v1598_v44, %v1595_v43 }
0x221b   :  { %v1602_v47 = vadd.f32 %v1601_v45, %v1600_v46 }
0x221d   :  { %1604 = vrot.lane.b32.xlu1 %v1602_v47, %s3312_s30 }
0x228f   :  { %v1605_v48 = vpop.permute.xlu1 %1604 }
0x2290   :  { %1607 = vst.msk [vmem:[#allocation17] sm:$0xff] %vm181_vm0, %v1605_v48  ;;  %2796 = vmatmul.msk.f32.vlgmr.msrb.gmra.mxu0 %vm181_vm0, %v1605_v48 }
0x2291   :  { %1822 = vmatpush.msrb.mxu0 %v3767_v60 }
0x2293   :  { %1823 = vmatpush.msrb.mxu0 %v3769_v61 }
0x230d   :  { %v1627_v49 = vpop.f32.mrf.mxu0 }
0x230e   :  { %v1628_v33 = vadd.f32 %v1627_v49, %v3802_v22 }
0x2310   :  { %1651 = vrot.lane.b32.xlu2 %v1628_v33, %s3310_s3  ;;  %v1630_v50 = vadd.f32 %v1628_v33, %v1522_v9 }
0x2312   :  { %v2797_v24 = vmul.f32 -1.442695, %v1630_v50 }
0x2314   :  { %2957 = vpow2.f32 %v2797_v24  ;;  %v1528_v24 = vadd.f32 %v3789_v13, %v3806_v7 }
0x231a   :  { %v2958_v25 = vpop.eup %2957 }
0x231b   :  { %v1634_v51 = vadd.f32 1.0, %v2958_v25 }
0x231d   :  { %2959 = vrcp.f32 %v1634_v51  ;;  %v1646_v54 = vand.u32 2147483648, %v1634_v51  ;;  %vm1640_vm14 = vweird.f32 %v1634_v51  ;;  %v1644_v55 = vand.u32 2147483647, %v1634_v51 }
0x231f   :  { %v1647_v57 = vor.u32 1.1754944e-38, %v1646_v54  ;;  %vm1645_vm1 = vcmp.eq.f32.partialorder %v1644_v55, 8.507059e+37 }
0x2323   :  { %v2960_v38 = vpop.eup %2959 }
0x2324   :  { %v1636_v26 = vmul.f32 %v2960_v38, %v1634_v51  ;;  %vm1641_vm13 = vweird.f32 %v2960_v38 }
0x2325   :  { %vm1642_vm15 = vmor %vm1640_vm14, %vm1641_vm13 }
0x2326   :  { %v1637_v52 = vsub.f32 1.0, %v1636_v26 }
0x2328   :  { %v1638_v27 = vmul.f32 %v2960_v38, %v1637_v52 }
0x232a   :  { %v1639_v53 = vadd.f32 %v2960_v38, %v1638_v27 }
0x232c   :  { %v1643_v56 = vsel %vm1642_vm15, %v2960_v38, %v1639_v53 }
0x232d   :  { %v1648_v59 = vsel %vm1645_vm1, %v1647_v57, %v1643_v56 }
0x232e   :  { %v1661_v2 = vsub.f32 1.0, %v1648_v59  ;;  %v1667_v17 = vmul.f32 %v1648_v59, %v1602_v47 }
0x236a   :  { %v1652_v58 = vpop.permute.xlu2 %1651 }
0x236b   :  { %v1654_v62 = vmul.f32 %v1652_v58, %v1648_v59 }
0x236d   :  { %1656 = vrot.lane.b32.xlu0 %v1654_v62, %s3311_s11 }
0x23df   :  { %v1657_v63 = vpop.permute.xlu0 %1656 }
0x23e0   :  { %v1659_v0 = vadd.f32 %v1657_v63, %v1522_v9 }
0x23e2   :  { %2961 = vtanh.f32 %v1659_v0 }
0x23e8   :  { %v2962_v1 = vpop.eup %2961 }
0x23e9   :  { %1663 = vrot.lane.b32.xlu1 %v2962_v1, %s3312_s30 }
0x245b   :  { %v1664_v4 = vpop.permute.xlu1 %1663 }
0x245c   :  { %v1666_v5 = vmul.f32 %v1664_v4, %v1661_v2 }
0x245e   :  { %v1668_v6 = vadd.f32 %v1667_v17, %v1666_v5 }
0x2460   :  { %1670 = vrot.lane.b32.xlu2 %v1668_v6, %s3312_s30 }
0x24ba   :  { %v1671_v12 = vpop.permute.xlu2 %1670 }
0x24bb   :  { %1673 = vst.msk [vmem:[#allocation17 + $0x8] sm:$0xff] %vm181_vm0, %v1671_v12  ;;  %2798 = vmatmul.msk.f32.vlgmr.msra.gmra.mxu0 %vm181_vm0, %v1671_v12 }
0x24bc   :  { %1954 = vmatpush.msra.mxu0 %v3767_v60 }
0x24be   :  { %1955 = vmatpush.msra.mxu0 %v3769_v61 }
0x2538   :  { %v1693_v18 = vpop.f32.mrf.mxu0 }
0x2539   :  { %v1694_v19 = vadd.f32 %v1693_v18, %v3802_v22 }
0x253b   :  { %1717 = vrot.lane.b32.xlu0 %v1694_v19, %s3310_s3  ;;  %v1696_v21 = vadd.f32 %v1694_v19, %v1525_v20  ;;  %v1531_v19 = vadd.f32 %v3791_v14, %v3806_v7 }
0x253d   :  { %v2799_v28 = vmul.f32 -1.442695, %v1696_v21 }
0x253f   :  { %2963 = vpow2.f32 %v2799_v28 }
0x2545   :  { %v2964_v29 = vpop.eup %2963 }
0x2546   :  { %v1700_v30 = vadd.f32 1.0, %v2964_v29 }
0x2548   :  { %2965 = vrcp.f32 %v1700_v30  ;;  %v1712_v37 = vand.u32 2147483648, %v1700_v30  ;;  %vm1706_vm3 = vweird.f32 %v1700_v30  ;;  %v1710_v39 = vand.u32 2147483647, %v1700_v30 }
0x254a   :  { %v1713_v41 = vor.u32 1.1754944e-38, %v1712_v37  ;;  %vm1711_vm6 = vcmp.eq.f32.partialorder %v1710_v39, 8.507059e+37 }
0x254e   :  { %v2966_v31 = vpop.eup %2965 }
0x254f   :  { %v1702_v32 = vmul.f32 %v2966_v31, %v1700_v30  ;;  %vm1707_vm2 = vweird.f32 %v2966_v31 }
0x2550   :  { %vm1708_vm4 = vmor %vm1706_vm3, %vm1707_vm2 }
0x2551   :  { %v1703_v34 = vsub.f32 1.0, %v1702_v32 }
0x2553   :  { %v1704_v23 = vmul.f32 %v2966_v31, %v1703_v34 }
0x2555   :  { %v1705_v35 = vadd.f32 %v2966_v31, %v1704_v23 }
0x2557   :  { %v1709_v40 = vsel %vm1708_vm4, %v2966_v31, %v1705_v35 }
0x2558   :  { %v1714_v15 = vsel %vm1711_vm6, %v1713_v41, %v1709_v40 }
0x2559   :  { %v1727_v45 = vsub.f32 1.0, %v1714_v15  ;;  %v1733_v47 = vmul.f32 %v1714_v15, %v1668_v6 }
0x25ad   :  { %v1718_v10 = vpop.permute.xlu0 %1717 }
0x25ae   :  { %v1720_v3 = vmul.f32 %v1718_v10, %v1714_v15 }
0x25b0   :  { %1722 = vrot.lane.b32.xlu1 %v1720_v3, %s3311_s11 }
0x2622   :  { %v1723_v42 = vpop.permute.xlu1 %1722 }
0x2623   :  { %v1725_v43 = vadd.f32 %v1723_v42, %v1525_v20 }
0x2625   :  { %2967 = vtanh.f32 %v1725_v43 }
0x262b   :  { %v2968_v44 = vpop.eup %2967 }
0x262c   :  { %1729 = vrot.lane.b32.xlu2 %v2968_v44, %s3312_s30 }
0x2686   :  { %v1730_v46 = vpop.permute.xlu2 %1729 }
0x2687   :  { %v1732_v48 = vmul.f32 %v1730_v46, %v1727_v45 }
0x2689   :  { %v1734_v49 = vadd.f32 %v1733_v47, %v1732_v48 }
0x268b   :  { %1736 = vrot.lane.b32.xlu0 %v1734_v49, %s3312_s30 }
0x26fd   :  { %v1737_v33 = vpop.permute.xlu0 %1736 }
0x26fe   :  { %1739 = vst.msk [vmem:[#allocation17 + $0x10] sm:$0xff] %vm181_vm0, %v1737_v33  ;;  %2800 = vmatmul.msk.f32.vlgmr.msra.gmra.mxu3 %vm181_vm0, %v1737_v33 }
0x26ff   :  { %2020 = vmatpush.msra.mxu3 %v3767_v60 }
0x2701   :  { %2021 = vmatpush.msra.mxu3 %v3769_v61 }
0x2781   :  { %v1759_v9 = vpop.f32.mrf.mxu3 }
0x2782   :  { %v1760_v50 = vadd.f32 %v1759_v9, %v3802_v22  ;;  %v1534_v9 = vadd.f32 %v3793_v11, %v3806_v7 }
0x2784   :  { %1783 = vrot.lane.b32.xlu1 %v1760_v50, %s3310_s3  ;;  %v1762_v25 = vadd.f32 %v1760_v50, %v1528_v24 }
0x2786   :  { %v2801_v51 = vmul.f32 -1.442695, %v1762_v25 }
0x2788   :  { %2969 = vpow2.f32 %v2801_v51 }
0x278e   :  { %v2970_v38 = vpop.eup %2969 }
0x278f   :  { %v1766_v26 = vadd.f32 1.0, %v2970_v38 }
0x2791   :  { %2971 = vrcp.f32 %v1766_v26  ;;  %v1778_v61 = vand.u32 2147483648, %v1766_v26  ;;  %vm1772_vm8 = vweird.f32 %v1766_v26  ;;  %v1776_v55 = vand.u32 2147483647, %v1766_v26 }
0x2793   :  { %v1779_v57 = vor.u32 1.1754944e-38, %v1778_v61  ;;  %vm1777_vm5 = vcmp.eq.f32.partialorder %v1776_v55, 8.507059e+37 }
0x2797   :  { %v2972_v52 = vpop.eup %2971 }
0x2798   :  { %v1768_v27 = vmul.f32 %v2972_v52, %v1766_v26  ;;  %vm1773_vm7 = vweird.f32 %v2972_v52 }
0x2799   :  { %vm1774_vm9 = vmor %vm1772_vm8, %vm1773_vm7 }
0x279a   :  { %v1769_v53 = vsub.f32 1.0, %v1768_v27 }
0x279c   :  { %v1770_v60 = vmul.f32 %v2972_v52, %v1769_v53 }
0x279e   :  { %v1771_v54 = vadd.f32 %v2972_v52, %v1770_v60 }
0x27a0   :  { %v1775_v56 = vsel %vm1774_vm9, %v2972_v52, %v1771_v54 }
0x27a1   :  { %v1780_v58 = vsel %vm1777_vm5, %v1779_v57, %v1775_v56 }
0x27a2   :  { %v1793_v1 = vsub.f32 1.0, %v1780_v58  ;;  %v1799_v4 = vmul.f32 %v1780_v58, %v1734_v49 }
0x27f6   :  { %v1784_v13 = vpop.permute.xlu1 %1783 }
0x27f7   :  { %v1786_v59 = vmul.f32 %v1784_v13, %v1780_v58 }
0x27f9   :  { %1788 = vrot.lane.b32.xlu2 %v1786_v59, %s3311_s11 }
0x2853   :  { %v1789_v62 = vpop.permute.xlu2 %1788 }
0x2854   :  { %v1791_v63 = vadd.f32 %v1789_v62, %v1528_v24 }
0x2856   :  { %2973 = vtanh.f32 %v1791_v63 }
0x285c   :  { %v2974_v0 = vpop.eup %2973 }
0x285d   :  { %1795 = vrot.lane.b32.xlu0 %v2974_v0, %s3312_s30 }
0x28cf   :  { %v1796_v2 = vpop.permute.xlu0 %1795 }
0x28d0   :  { %v1798_v17 = vmul.f32 %v1796_v2, %v1793_v1 }
0x28d2   :  { %v1800_v5 = vadd.f32 %v1799_v4, %v1798_v17  ;;  %v2079_v4 = vld [vmem:[#allocation11 + $0x8] sm:$0xff]  ;;  %v2078_v17 = vld [vmem:[#allocation11] sm:$0xff] }
0x28d4   :  { %1802 = vrot.lane.b32.xlu1 %v1800_v5, %s3312_s30 }
0x2946   :  { %v1803_v6 = vpop.permute.xlu1 %1802 }
0x2947   :  { %1805 = vst.msk [vmem:[#allocation17 + $0x18] sm:$0xff] %vm181_vm0, %v1803_v6  ;;  %2802 = vmatmul.msk.f32.vlgmr.msrb.gmra.mxu0 %vm181_vm0, %v1803_v6  ;;  %v2070_v6 = vld [vmem:[#allocation17] sm:$0xff] }
0x2948   :  { %2123 = vmatpush.msrb.mxu0 %v2079_v4 }
0x294a   :  { %2124 = vmatpush.msrb.mxu0 %v2078_v17 }
0x29c4   :  { %v1825_v12 = vpop.f32.mrf.mxu0 }
0x29c5   :  { %v1826_v18 = vadd.f32 %v1825_v12, %v3802_v22  ;;  %v2071_v12 = vld [vmem:[#allocation17 + $0x8] sm:$0xff] }
0x29c7   :  { %1849 = vrot.lane.b32.xlu2 %v1826_v18, %s3310_s3  ;;  %v1828_v20 = vadd.f32 %v1826_v18, %v1531_v19  ;;  %v2072_v18 = vld [vmem:[#allocation17 + $0x10] sm:$0xff] }
0x29c9   :  { %v2803_v21 = vmul.f32 -1.442695, %v1828_v20 }
0x29cb   :  { %2975 = vpow2.f32 %v2803_v21 }
0x29d1   :  { %v2976_v28 = vpop.eup %2975 }
0x29d2   :  { %v1832_v29 = vadd.f32 1.0, %v2976_v28 }
0x29d4   :  { %2977 = vrcp.f32 %v1832_v29  ;;  %v1844_v35 = vand.u32 2147483648, %v1832_v29  ;;  %vm1838_vm11 = vweird.f32 %v1832_v29  ;;  %v1842_v37 = vand.u32 2147483647, %v1832_v29 }
0x29d6   :  { %v1845_v40 = vor.u32 1.1754944e-38, %v1844_v35  ;;  %vm1843_vm13 = vcmp.eq.f32.partialorder %v1842_v37, 8.507059e+37 }
0x29da   :  { %v2978_v30 = vpop.eup %2977 }
0x29db   :  { %v1834_v31 = vmul.f32 %v2978_v30, %v1832_v29  ;;  %vm1839_vm10 = vweird.f32 %v2978_v30 }
0x29dc   :  { %vm1840_vm12 = vmor %vm1838_vm11, %vm1839_vm10 }
0x29dd   :  { %v1835_v32 = vsub.f32 1.0, %v1834_v31 }
0x29df   :  { %v1836_v34 = vmul.f32 %v2978_v30, %v1835_v32 }
0x29e1   :  { %v1837_v23 = vadd.f32 %v2978_v30, %v1836_v34 }
0x29e3   :  { %v1841_v39 = vsel %vm1840_vm12, %v2978_v30, %v1837_v23  ;;  %v1537_v30 = vadd.f32 %v3795_v36, %v3806_v7 }
0x29e4   :  { %v1846_v41 = vsel %vm1843_vm13, %v1845_v40, %v1841_v39 }
0x29e5   :  { %v1859_v43 = vsub.f32 1.0, %v1846_v41  ;;  %v1865_v45 = vmul.f32 %v1846_v41, %v1800_v5 }
0x2a21   :  { %v1850_v14 = vpop.permute.xlu2 %1849 }
0x2a22   :  { %v1852_v10 = vmul.f32 %v1850_v14, %v1846_v41 }
0x2a24   :  { %1854 = vrot.lane.b32.xlu0 %v1852_v10, %s3311_s11 }
0x2a96   :  { %v1855_v15 = vpop.permute.xlu0 %1854 }
0x2a97   :  { %v1857_v3 = vadd.f32 %v1855_v15, %v1531_v19  ;;  %v2073_v19 = vld [vmem:[#allocation17 + $0x18] sm:$0xff] }
0x2a99   :  { %2979 = vtanh.f32 %v1857_v3 }
0x2a9f   :  { %v2980_v42 = vpop.eup %2979 }
0x2aa0   :  { %1861 = vrot.lane.b32.xlu1 %v2980_v42, %s3312_s30 }
0x2b12   :  { %v1862_v44 = vpop.permute.xlu1 %1861 }
0x2b13   :  { %v1864_v46 = vmul.f32 %v1862_v44, %v1859_v43 }
0x2b15   :  { %v1866_v47 = vadd.f32 %v1865_v45, %v1864_v46 }
0x2b17   :  { %1868 = vrot.lane.b32.xlu2 %v1866_v47, %s3312_s30 }
0x2b71   :  { %v1869_v48 = vpop.permute.xlu2 %1868 }
0x2b72   :  { %1871 = vst.msk [vmem:[#allocation17 + $0x20] sm:$0xff] %vm181_vm0, %v1869_v48  ;;  %2804 = vmatmul.msk.f32.vlgmr.msrb.gmra.mxu3 %vm181_vm0, %v1869_v48 }
0x2b79   :  { %v2074_v20 = vld [vmem:[#allocation17 + $0x20] sm:$0xff] }
0x2bf5   :  { %v1891_v49 = vpop.f32.mrf.mxu3 }
0x2bf6   :  { %v1892_v33 = vadd.f32 %v1891_v49, %v3802_v22 }
0x2bf8   :  { %1915 = vrot.lane.b32.xlu0 %v1892_v33, %s3310_s3  ;;  %v1894_v50 = vadd.f32 %v1892_v33, %v1534_v9 }
0x2bfa   :  { %v2805_v24 = vmul.f32 -1.442695, %v1894_v50  ;;  %v3880_v50 = vld [vmem:[#allocation13 + $0x8] sm:$0xff] }
0x2bfb   :  { %2164 = vmatpush.msrb.mxu3 %v3880_v50  ;;  %2296 = vmatpush.msrb.mxu1 %v3880_v50 }
0x2bfc   :  { %2981 = vpow2.f32 %v2805_v24  ;;  %v3882_v24 = vld [vmem:[#allocation13] sm:$0xff]  ;;  %2362 = vmatpush.msrb.mxu2 %v3880_v50 }
0x2bfd   :  { %2165 = vmatpush.msrb.mxu3 %v3882_v24  ;;  %2297 = vmatpush.msrb.mxu1 %v3882_v24 }
0x2bfe   :  { %2363 = vmatpush.msrb.mxu2 %v3882_v24 }
0x2bff   :  { %2494 = vmatpush.msra.mxu1 %v3880_v50 }
0x2c00   :  { %2560 = vmatpush.msra.mxu2 %v3880_v50 }
0x2c01   :  { %2495 = vmatpush.msra.mxu1 %v3882_v24 }
0x2c02   :  { %v2982_v25 = vpop.eup %2981  ;;  %2561 = vmatpush.msra.mxu2 %v3882_v24 }
0x2c03   :  { %v1898_v51 = vadd.f32 1.0, %v2982_v25 }
0x2c05   :  { %2983 = vrcp.f32 %v1898_v51  ;;  %v1910_v60 = vand.u32 2147483648, %v1898_v51  ;;  %vm1904_vm15 = vweird.f32 %v1898_v51  ;;  %v1908_v54 = vand.u32 2147483647, %v1898_v51 }
0x2c07   :  { %v1911_v55 = vor.u32 1.1754944e-38, %v1910_v60  ;;  %vm1909_vm2 = vcmp.eq.f32.partialorder %v1908_v54, 8.507059e+37 }
0x2c0b   :  { %v2984_v38 = vpop.eup %2983 }
0x2c0c   :  { %v1900_v26 = vmul.f32 %v2984_v38, %v1898_v51  ;;  %vm1905_vm14 = vweird.f32 %v2984_v38 }
0x2c0d   :  { %vm1906_vm1 = vmor %vm1904_vm15, %vm1905_vm14 }
0x2c0e   :  { %v1901_v52 = vsub.f32 1.0, %v1900_v26  ;;  %v2082_v26 = vld [vmem:[%s4023_s14] sm:$0x3]  ;;  %s3313_s14 = smov [#allocation15]  }
0x2c0f   :  { %v3911_v60 = vperm.slane %v2082_v26, 0  ;;  %s2693_s22 = sshll.u32 %s3313_s14, 4  ;;  %s2694_s22 = int_to_ptr.vmem [resolvable:$true] %s2693_s22 }
0x2c10   :  { %v1902_v27 = vmul.f32 %v2984_v38, %v1901_v52  ;;  %v3907_v52 = vperm.slane %v2082_v26, 1  ;;  %2701 = dma.vmem_to_hbm [thread:$0]  %s2694_s22, 256, %s2696_s2, [#allocation16], %s3300_s18, %s3300_s18, %s3301_s19  }
0x2c12   :  { %v1903_v53 = vadd.f32 %v2984_v38, %v1902_v27 }
0x2c14   :  { %v1907_v61 = vsel %vm1906_vm1, %v2984_v38, %v1903_v53 }
0x2c15   :  { %v1912_v56 = vsel %vm1909_vm2, %v1911_v55, %v1907_v61 }
0x2c16   :  { %v1925_v62 = vsub.f32 1.0, %v1912_v56  ;;  %v1931_v0 = vmul.f32 %v1912_v56, %v1866_v47 }
0x2c6a   :  { %v1916_v11 = vpop.permute.xlu0 %1915 }
0x2c6b   :  { %v1918_v57 = vmul.f32 %v1916_v11, %v1912_v56 }
0x2c6d   :  { %1920 = vrot.lane.b32.xlu1 %v1918_v57, %s3311_s11 }
0x2cdf   :  { %v1921_v13 = vpop.permute.xlu1 %1920 }
0x2ce0   :  { %v1923_v58 = vadd.f32 %v1921_v13, %v1534_v9 }
0x2ce2   :  { %2985 = vtanh.f32 %v1923_v58 }
0x2ce8   :  { %v2986_v59 = vpop.eup %2985 }
0x2ce9   :  { %1927 = vrot.lane.b32.xlu2 %v2986_v59, %s3312_s30 }
0x2d43   :  { %v1928_v63 = vpop.permute.xlu2 %1927 }
0x2d44   :  { %v1930_v1 = vmul.f32 %v1928_v63, %v1925_v62 }
0x2d46   :  { %v1932_v2 = vadd.f32 %v1931_v0, %v1930_v1 }
0x2d48   :  { %1934 = vrot.lane.b32.xlu0 %v1932_v2, %s3312_s30 }
0x2dba   :  { %v1935_v5 = vpop.permute.xlu0 %1934 }
0x2dbb   :  { %1937 = vst.msk [vmem:[#allocation17 + $0x28] sm:$0xff] %vm181_vm0, %v1935_v5  ;;  %2806 = vmatmul.msk.f32.vlgmr.msra.gmra.mxu0 %vm181_vm0, %v1935_v5 }
0x2dc2   :  { %v2075_v21 = vld [vmem:[#allocation17 + $0x28] sm:$0xff] }
0x2dc3   :  { %2810 = vmatmul.msk.f32.vlgmr.msrb.gmra.mxu0 %vm181_vm0, %v2070_v6 }
0x2dcb   :  { %2811 = vmatmul.msk.f32.gmra.mxu0 %vm181_vm0, %v2071_v12 }
0x2dd3   :  { %2812 = vmatmul.msk.f32.gmra.mxu0 %vm181_vm0, %v2072_v18 }
0x2ddb   :  { %2813 = vmatmul.msk.f32.gmra.mxu0 %vm181_vm0, %v2073_v19 }
0x2de3   :  { %2814 = vmatmul.msk.f32.gmra.mxu0 %vm181_vm0, %v2074_v20 }
0x2deb   :  { %2815 = vmatmul.msk.f32.gmra.mxu0 %vm181_vm0, %v2075_v21 }
0x2e38   :  { %v1957_v28 = vpop.f32.mrf.mxu0 }
0x2e39   :  { %v1958_v29 = vadd.f32 %v1957_v28, %v3802_v22 }
0x2e3b   :  { %1981 = vrot.lane.b32.xlu1 %v1958_v29, %s3310_s3  ;;  %v1960_v31 = vadd.f32 %v1958_v29, %v1537_v30 }
0x2e3d   :  { %v2807_v32 = vmul.f32 -1.442695, %v1960_v31 }
0x2e3f   :  { %2987 = vpow2.f32 %v2807_v32 }
0x2e45   :  { %v2988_v34 = vpop.eup %2987 }
0x2e46   :  { %v1964_v23 = vadd.f32 1.0, %v2988_v34 }
0x2e48   :  { %2989 = vrcp.f32 %v1964_v23  ;;  %v1976_v41 = vand.u32 2147483648, %v1964_v23  ;;  %vm1970_vm4 = vweird.f32 %v1964_v23  ;;  %v1974_v10 = vand.u32 2147483647, %v1964_v23 }
0x2e4a   :  { %v1977_v3 = vor.u32 1.1754944e-38, %v1976_v41  ;;  %vm1975_vm7 = vcmp.eq.f32.partialorder %v1974_v10, 8.507059e+37 }
0x2e4e   :  { %v2990_v35 = vpop.eup %2989 }
0x2e4f   :  { %v1966_v37 = vmul.f32 %v2990_v35, %v1964_v23  ;;  %vm1971_vm3 = vweird.f32 %v2990_v35 }
0x2e50   :  { %vm1972_vm6 = vmor %vm1970_vm4, %vm1971_vm3 }
0x2e51   :  { %v1967_v39 = vsub.f32 1.0, %v1966_v37 }
0x2e53   :  { %v1968_v40 = vmul.f32 %v2990_v35, %v1967_v39 }
0x2e55   :  { %v1969_v14 = vadd.f32 %v2990_v35, %v1968_v40 }
0x2e57   :  { %v1973_v15 = vsel %vm1972_vm6, %v2990_v35, %v1969_v14 }
0x2e58   :  { %v1978_v42 = vsel %vm1975_vm7, %v1977_v3, %v1973_v15 }
0x2e59   :  { %v1991_v47 = vsub.f32 1.0, %v1978_v42  ;;  %v1997_v49 = vmul.f32 %v1978_v42, %v1932_v2 }
0x2ead   :  { %v1982_v36 = vpop.permute.xlu1 %1981 }
0x2eae   :  { %v1984_v43 = vmul.f32 %v1982_v36, %v1978_v42 }
0x2eb0   :  { %1986 = vrot.lane.b32.xlu2 %v1984_v43, %s3311_s11 }
0x2f0a   :  { %v1987_v44 = vpop.permute.xlu2 %1986 }
0x2f0b   :  { %v1989_v45 = vadd.f32 %v1987_v44, %v1537_v30 }
0x2f0d   :  { %2991 = vtanh.f32 %v1989_v45 }
0x2f13   :  { %v2992_v46 = vpop.eup %2991 }
0x2f14   :  { %1993 = vrot.lane.b32.xlu0 %v2992_v46, %s3312_s30 }
0x2f86   :  { %v1994_v48 = vpop.permute.xlu0 %1993 }
0x2f87   :  { %v1996_v33 = vmul.f32 %v1994_v48, %v1991_v47 }
0x2f89   :  { %v3876_v9 = vadd.f32 %v1997_v49, %v1996_v33 }
0x2f8b   :  { %2000 = vrot.lane.b32.xlu1 %v3876_v9, %s3312_s30 }
0x2ffd   :  { %v2001_v25 = vpop.permute.xlu1 %2000 }
0x2ffe   :  { %2003 = vst.msk [vmem:[#allocation17 + $0x30] sm:$0xff] %vm181_vm0, %v2001_v25  ;;  %2808 = vmatmul.msk.f32.vlgmr.msra.gmra.mxu3 %vm181_vm0, %v2001_v25 }
0x2fff   :  { %2230 = vmatpush.msra.mxu3 %v3880_v50 }
0x3001   :  { %2231 = vmatpush.msra.mxu3 %v3882_v24 }
0x3005   :  { %v2076_v51 = vld [vmem:[#allocation17 + $0x30] sm:$0xff] }
0x3006   :  { %2816 = vmatmul.msk.f32.gmra.mxu0 %vm181_vm0, %v2076_v51  ;;  %2166 = vmatmul.f32.vlgmr.msrb.gmra.mxu3 %v3308_v8  ;;  %v2126_v8 = vpop.f32.mrf.mxu0 }
0x3007   :  { %2428 = vmatpush.msrb.mxu3 %v3880_v50  ;;  %v2127_v54 = vadd.f32 %v2126_v8, %v3911_v60 }
0x3009   :  { %2429 = vmatpush.msrb.mxu3 %v3882_v24 }
0x300e   :  { %v2129_v34 = vpop.f32.mrf.mxu0 }
0x300f   :  { %v2130_v23 = vadd.f32 %v2129_v34, %v3911_v60 }
0x3081   :  { %v3902_v38 = vpop.f32.mrf.mxu3 }
0x3089   :  { %v2167_v27 = vpop.f32.mrf.mxu3 }
0x308a   :  { %v2168_v53 = vadd.f32 %v2167_v27, %v3907_v52 }
0x308c   :  { %2191 = vrot.lane.b32.xlu2 %v2168_v53, %s3310_s3  ;;  %v2170_v61 = vadd.f32 %v2168_v53, %v2127_v54 }
0x308e   :  { %v2818_v55 = vmul.f32 -1.442695, %v2170_v61 }
0x3090   :  { %2993 = vpow2.f32 %v2818_v55 }
0x3096   :  { %v2994_v11 = vpop.eup %2993 }
0x3097   :  { %v2174_v56 = vadd.f32 1.0, %v2994_v11 }
0x3099   :  { %2995 = vrcp.f32 %v2174_v56  ;;  %v2186_v63 = vand.u32 2147483648, %v2174_v56  ;;  %vm2180_vm9 = vweird.f32 %v2174_v56  ;;  %v2184_v0 = vand.u32 2147483647, %v2174_v56 }
0x309b   :  { %v2187_v2 = vor.u32 1.1754944e-38, %v2186_v63  ;;  %vm2185_vm10 = vcmp.eq.f32.partialorder %v2184_v0, 8.507059e+37 }
0x309f   :  { %v2996_v57 = vpop.eup %2995 }
0x30a0   :  { %v2176_v13 = vmul.f32 %v2996_v57, %v2174_v56  ;;  %vm2181_vm8 = vweird.f32 %v2996_v57 }
0x30a1   :  { %vm2182_vm5 = vmor %vm2180_vm9, %vm2181_vm8 }
0x30a2   :  { %v2177_v58 = vsub.f32 1.0, %v2176_v13 }
0x30a4   :  { %v2178_v59 = vmul.f32 %v2996_v57, %v2177_v58 }
0x30a6   :  { %v2179_v62 = vadd.f32 %v2996_v57, %v2178_v59 }
0x30a8   :  { %v2183_v1 = vsel %vm2182_vm5, %v2996_v57, %v2179_v62 }
0x30a9   :  { %v2188_v17 = vsel %vm2185_vm10, %v2187_v2, %v2183_v1 }
0x30aa   :  { %v2201_v19 = vsub.f32 1.0, %v2188_v17  ;;  %v2207_v21 = vmul.f32 0.0, %v2188_v17 }
0x30e6   :  { %v2192_v4 = vpop.permute.xlu2 %2191 }
0x30e7   :  { %v2194_v5 = vmul.f32 %v2192_v4, %v2188_v17 }
0x30e9   :  { %2196 = vrot.lane.b32.xlu0 %v2194_v5, %s3311_s11 }
0x315b   :  { %v2197_v6 = vpop.permute.xlu0 %2196 }
0x315c   :  { %v2199_v12 = vadd.f32 %v2197_v6, %v2127_v54  ;;  %v2132_v54 = vpop.f32.mrf.mxu0 }
0x315d   :  { %v2133_v61 = vadd.f32 %v2132_v54, %v3911_v60 }
0x315e   :  { %2997 = vtanh.f32 %v2199_v12 }
0x3164   :  { %v2998_v18 = vpop.eup %2997 }
0x3165   :  { %2203 = vrot.lane.b32.xlu1 %v2998_v18, %s3312_s30 }
0x31d7   :  { %v2204_v20 = vpop.permute.xlu1 %2203 }
0x31d8   :  { %v2206_v28 = vmul.f32 %v2204_v20, %v2201_v19 }
0x31da   :  { %v2208_v29 = vadd.f32 %v2207_v21, %v2206_v28 }
0x31dc   :  { %2210 = vrot.lane.b32.xlu2 %v2208_v29, %s3312_s30 }
0x3236   :  { %v2211_v30 = vpop.permute.xlu2 %2210 }
0x3237   :  { %2213 = vst.msk [vmem:[#allocation17] sm:$0xff] %vm181_vm0, %v2211_v30  ;;  %2819 = vmatmul.msk.f32.vlgmr.msra.gmra.mxu3 %vm181_vm0, %v2211_v30 }
0x3238   :  { %2626 = vmatpush.msra.mxu3 %v3880_v50 }
0x323a   :  { %2627 = vmatpush.msra.mxu3 %v3882_v24 }
0x32ba   :  { %v2233_v31 = vpop.f32.mrf.mxu3 }
0x32bb   :  { %v2234_v32 = vadd.f32 %v2233_v31, %v3907_v52 }
0x32bd   :  { %2257 = vrot.lane.b32.xlu0 %v2234_v32, %s3310_s3  ;;  %v2236_v35 = vadd.f32 %v2234_v32, %v2130_v23 }
0x32bf   :  { %v2820_v37 = vmul.f32 -1.442695, %v2236_v35 }
0x32c1   :  { %2999 = vpow2.f32 %v2820_v37 }
0x32c7   :  { %v3000_v39 = vpop.eup %2999 }
0x32c8   :  { %v2240_v40 = vadd.f32 1.0, %v3000_v39 }
0x32ca   :  { %3001 = vrcp.f32 %v2240_v40  ;;  %v2252_v36 = vand.u32 2147483648, %v2240_v40  ;;  %vm2246_vm12 = vweird.f32 %v2240_v40  ;;  %v2250_v42 = vand.u32 2147483647, %v2240_v40 }
0x32cc   :  { %v2253_v44 = vor.u32 1.1754944e-38, %v2252_v36  ;;  %vm2251_vm14 = vcmp.eq.f32.partialorder %v2250_v42, 8.507059e+37 }
0x32d0   :  { %v3002_v14 = vpop.eup %3001 }
0x32d1   :  { %v2242_v41 = vmul.f32 %v3002_v14, %v2240_v40  ;;  %vm2247_vm11 = vweird.f32 %v3002_v14 }
0x32d2   :  { %vm2248_vm13 = vmor %vm2246_vm12, %vm2247_vm11 }
0x32d3   :  { %v2243_v10 = vsub.f32 1.0, %v2242_v41 }
0x32d5   :  { %v2244_v15 = vmul.f32 %v3002_v14, %v2243_v10 }
0x32d7   :  { %v2245_v3 = vadd.f32 %v3002_v14, %v2244_v15 }
0x32d9   :  { %v2249_v43 = vsel %vm2248_vm13, %v3002_v14, %v2245_v3 }
0x32da   :  { %v2254_v46 = vsel %vm2251_vm14, %v2253_v44, %v2249_v43 }
0x32db   :  { %v2267_v50 = vsub.f32 1.0, %v2254_v46  ;;  %v2273_v25 = vmul.f32 %v2254_v46, %v2208_v29 }
0x332f   :  { %v2258_v45 = vpop.permute.xlu0 %2257 }
0x3330   :  { %v2260_v47 = vmul.f32 %v2258_v45, %v2254_v46 }
0x3332   :  { %2262 = vrot.lane.b32.xlu1 %v2260_v47, %s3311_s11 }
0x33a4   :  { %v2263_v48 = vpop.permute.xlu1 %2262 }
0x33a5   :  { %v2265_v49 = vadd.f32 %v2263_v48, %v2130_v23  ;;  %v2135_v23 = vpop.f32.mrf.mxu0 }
0x33a6   :  { %v2136_v35 = vadd.f32 %v2135_v23, %v3911_v60 }
0x33a7   :  { %3003 = vtanh.f32 %v2265_v49 }
0x33ad   :  { %v3004_v33 = vpop.eup %3003 }
0x33ae   :  { %2269 = vrot.lane.b32.xlu2 %v3004_v33, %s3312_s30 }
0x3408   :  { %v2270_v24 = vpop.permute.xlu2 %2269 }
0x3409   :  { %v2272_v51 = vmul.f32 %v2270_v24, %v2267_v50 }
0x340b   :  { %v2274_v26 = vadd.f32 %v2273_v25, %v2272_v51 }
0x340d   :  { %2276 = vrot.lane.b32.xlu0 %v2274_v26, %s3312_s30 }
0x347f   :  { %v2277_v27 = vpop.permute.xlu0 %2276 }
0x3480   :  { %2279 = vst.msk [vmem:[#allocation17 + $0x8] sm:$0xff] %vm181_vm0, %v2277_v27  ;;  %2821 = vmatmul.msk.f32.vlgmr.msrb.gmra.mxu1 %vm181_vm0, %v2277_v27 }
0x34fd   :  { %v2299_v53 = vpop.f32.mrf.mxu1 }
0x34fe   :  { %v2300_v8 = vadd.f32 %v2299_v53, %v3907_v52 }
0x3500   :  { %2323 = vrot.lane.b32.xlu1 %v2300_v8, %s3310_s3  ;;  %v2302_v55 = vadd.f32 %v2300_v8, %v2133_v61 }
0x3502   :  { %v2822_v11 = vmul.f32 -1.442695, %v2302_v55 }
0x3504   :  { %3005 = vpow2.f32 %v2822_v11 }
0x350a   :  { %v3006_v56 = vpop.eup %3005 }
0x350b   :  { %v2306_v57 = vadd.f32 1.0, %v3006_v56 }
0x350d   :  { %3007 = vrcp.f32 %v2306_v57  ;;  %v2318_v0 = vand.u32 2147483648, %v2306_v57  ;;  %vm2312_vm1 = vweird.f32 %v2306_v57  ;;  %v2316_v1 = vand.u32 2147483647, %v2306_v57 }
0x350f   :  { %v2319_v4 = vor.u32 1.1754944e-38, %v2318_v0  ;;  %vm2317_vm3 = vcmp.eq.f32.partialorder %v2316_v1, 8.507059e+37 }
0x3513   :  { %v3008_v13 = vpop.eup %3007 }
0x3514   :  { %v2308_v58 = vmul.f32 %v3008_v13, %v2306_v57  ;;  %vm2313_vm15 = vweird.f32 %v3008_v13 }
0x3515   :  { %vm2314_vm2 = vmor %vm2312_vm1, %vm2313_vm15 }
0x3516   :  { %v2309_v59 = vsub.f32 1.0, %v2308_v58 }
0x3518   :  { %v2310_v62 = vmul.f32 %v3008_v13, %v2309_v59 }
0x351a   :  { %v2311_v63 = vadd.f32 %v3008_v13, %v2310_v62 }
0x351c   :  { %v2315_v2 = vsel %vm2314_vm2, %v3008_v13, %v2311_v63 }
0x351d   :  { %v2320_v5 = vsel %vm2317_vm3, %v2319_v4, %v2315_v2 }
0x351e   :  { %v2333_v20 = vsub.f32 1.0, %v2320_v5  ;;  %v2339_v28 = vmul.f32 %v2320_v5, %v2274_v26 }
0x3572   :  { %v2324_v17 = vpop.permute.xlu1 %2323 }
0x3573   :  { %v2326_v6 = vmul.f32 %v2324_v17, %v2320_v5 }
0x3575   :  { %2328 = vrot.lane.b32.xlu2 %v2326_v6, %s3311_s11 }
0x35cf   :  { %v2329_v12 = vpop.permute.xlu2 %2328 }
0x35d0   :  { %v2331_v18 = vadd.f32 %v2329_v12, %v2133_v61  ;;  %v2138_v61 = vpop.f32.mrf.mxu0 }
0x35d1   :  { %v2139_v55 = vadd.f32 %v2138_v61, %v3911_v60  ;;  %v1540_v61 = vadd.f32 %v3797_v16, %v3806_v7 }
0x35d2   :  { %3009 = vtanh.f32 %v2331_v18 }
0x35d8   :  { %v3010_v19 = vpop.eup %3009 }
0x35d9   :  { %2335 = vrot.lane.b32.xlu0 %v3010_v19, %s3312_s30 }
0x364b   :  { %v2336_v21 = vpop.permute.xlu0 %2335 }
0x364c   :  { %v2338_v29 = vmul.f32 %v2336_v21, %v2333_v20 }
0x364e   :  { %v2340_v30 = vadd.f32 %v2339_v28, %v2338_v29 }
0x3650   :  { %2342 = vrot.lane.b32.xlu1 %v2340_v30, %s3312_s30 }
0x36c2   :  { %v2343_v31 = vpop.permute.xlu1 %2342 }
0x36c3   :  { %2345 = vst.msk [vmem:[#allocation17 + $0x10] sm:$0xff] %vm181_vm0, %v2343_v31  ;;  %2823 = vmatmul.msk.f32.vlgmr.msrb.gmra.mxu2 %vm181_vm0, %v2343_v31 }
0x3746   :  { %v2365_v32 = vpop.f32.mrf.mxu2 }
0x3747   :  { %v2366_v34 = vadd.f32 %v2365_v32, %v3907_v52 }
0x3749   :  { %2389 = vrot.lane.b32.xlu2 %v2366_v34, %s3310_s3  ;;  %v2368_v37 = vadd.f32 %v2366_v34, %v2136_v35 }
0x374b   :  { %v2824_v39 = vmul.f32 -1.442695, %v2368_v37 }
0x374d   :  { %3011 = vpow2.f32 %v2824_v39 }
0x3753   :  { %v3012_v40 = vpop.eup %3011 }
0x3754   :  { %v2372_v14 = vadd.f32 1.0, %v3012_v40 }
0x3756   :  { %3013 = vrcp.f32 %v2372_v14  ;;  %v2384_v42 = vand.u32 2147483648, %v2372_v14  ;;  %vm2378_vm6 = vweird.f32 %v2372_v14  ;;  %v2382_v43 = vand.u32 2147483647, %v2372_v14 }
0x3758   :  { %v2385_v45 = vor.u32 1.1754944e-38, %v2384_v42  ;;  %vm2383_vm8 = vcmp.eq.f32.partialorder %v2382_v43, 8.507059e+37 }
0x375c   :  { %v3014_v41 = vpop.eup %3013 }
0x375d   :  { %v2374_v10 = vmul.f32 %v3014_v41, %v2372_v14  ;;  %vm2379_vm4 = vweird.f32 %v3014_v41 }
0x375e   :  { %vm2380_vm7 = vmor %vm2378_vm6, %vm2379_vm4 }
0x375f   :  { %v2375_v15 = vsub.f32 1.0, %v2374_v10 }
0x3761   :  { %v2376_v3 = vmul.f32 %v3014_v41, %v2375_v15 }
0x3763   :  { %v2377_v36 = vadd.f32 %v3014_v41, %v2376_v3 }
0x3765   :  { %v2381_v44 = vsel %vm2380_vm7, %v3014_v41, %v2377_v36 }
0x3766   :  { %v2386_v47 = vsel %vm2383_vm8, %v2385_v45, %v2381_v44 }
0x3767   :  { %v2399_v24 = vsub.f32 1.0, %v2386_v47  ;;  %v2405_v51 = vmul.f32 %v2386_v47, %v2340_v30 }
0x37a3   :  { %v2390_v46 = vpop.permute.xlu2 %2389 }
0x37a4   :  { %v2392_v48 = vmul.f32 %v2390_v46, %v2386_v47 }
0x37a6   :  { %2394 = vrot.lane.b32.xlu0 %v2392_v48, %s3311_s11 }
0x3818   :  { %v2395_v49 = vpop.permute.xlu0 %2394 }
0x3819   :  { %v2397_v33 = vadd.f32 %v2395_v49, %v2136_v35  ;;  %v2141_v35 = vpop.f32.mrf.mxu0 }
0x381a   :  { %v2142_v37 = vadd.f32 %v2141_v35, %v3911_v60 }
0x381b   :  { %3015 = vtanh.f32 %v2397_v33 }
0x3821   :  { %v3016_v50 = vpop.eup %3015 }
0x3822   :  { %2401 = vrot.lane.b32.xlu1 %v3016_v50, %s3312_s30 }
0x3894   :  { %v2402_v25 = vpop.permute.xlu1 %2401 }
0x3895   :  { %v2404_v26 = vmul.f32 %v2402_v25, %v2399_v24  ;;  %v2024_v25 = vadd.f32 %v3902_v38, %v3802_v22 }
0x3897   :  { %v2406_v27 = vadd.f32 %v2405_v51, %v2404_v26  ;;  %v2026_v22 = vadd.f32 %v2024_v25, %v1540_v61 }
0x3899   :  { %2408 = vrot.lane.b32.xlu2 %v2406_v27, %s3312_s30  ;;  %v2809_v38 = vmul.f32 -1.442695, %v2026_v22 }
0x38f3   :  { %v2409_v53 = vpop.permute.xlu2 %2408 }
0x38f4   :  { %2411 = vst.msk [vmem:[#allocation17 + $0x18] sm:$0xff] %vm181_vm0, %v2409_v53  ;;  %2825 = vmatmul.msk.f32.vlgmr.msrb.gmra.mxu3 %vm181_vm0, %v2409_v53 }
0x3977   :  { %v2431_v8 = vpop.f32.mrf.mxu3 }
0x3978   :  { %v2432_v54 = vadd.f32 %v2431_v8, %v3907_v52 }
0x397a   :  { %2455 = vrot.lane.b32.xlu0 %v2432_v54, %s3310_s3  ;;  %v2434_v11 = vadd.f32 %v2432_v54, %v2139_v55 }
0x397c   :  { %v2826_v56 = vmul.f32 -1.442695, %v2434_v11 }
0x397e   :  { %3017 = vpow2.f32 %v2826_v56 }
0x3984   :  { %v3018_v57 = vpop.eup %3017 }
0x3985   :  { %v2438_v13 = vadd.f32 1.0, %v3018_v57 }
0x3987   :  { %3019 = vrcp.f32 %v2438_v13  ;;  %v2450_v1 = vand.u32 2147483648, %v2438_v13  ;;  %vm2444_vm5 = vweird.f32 %v2438_v13  ;;  %v2448_v2 = vand.u32 2147483647, %v2438_v13 }
0x3989   :  { %v2451_v17 = vor.u32 1.1754944e-38, %v2450_v1  ;;  %vm2449_vm11 = vcmp.eq.f32.partialorder %v2448_v2, 8.507059e+37 }
0x398d   :  { %v3020_v58 = vpop.eup %3019 }
0x398e   :  { %v2440_v59 = vmul.f32 %v3020_v58, %v2438_v13  ;;  %vm2445_vm9 = vweird.f32 %v3020_v58 }
0x398f   :  { %vm2446_vm10 = vmor %vm2444_vm5, %vm2445_vm9 }
0x3990   :  { %v2441_v62 = vsub.f32 1.0, %v2440_v59 }
0x3992   :  { %v2442_v63 = vmul.f32 %v3020_v58, %v2441_v62 }
0x3994   :  { %v2443_v0 = vadd.f32 %v3020_v58, %v2442_v63 }
0x3996   :  { %v2447_v4 = vsel %vm2446_vm10, %v3020_v58, %v2443_v0 }
0x3997   :  { %v2452_v6 = vsel %vm2449_vm11, %v2451_v17, %v2447_v4 }
0x3998   :  { %v2465_v21 = vsub.f32 1.0, %v2452_v6  ;;  %v2471_v29 = vmul.f32 %v2452_v6, %v2406_v27 }
0x39ec   :  { %v2456_v5 = vpop.permute.xlu0 %2455 }
0x39ed   :  { %v2458_v12 = vmul.f32 %v2456_v5, %v2452_v6  ;;  %v2144_v5 = vpop.f32.mrf.mxu0 }
0x39ee   :  { %v2145_v6 = vadd.f32 %v2144_v5, %v3911_v60 }
0x39ef   :  { %2460 = vrot.lane.b32.xlu1 %v2458_v12, %s3311_s11 }
0x3a61   :  { %v2461_v18 = vpop.permute.xlu1 %2460 }
0x3a62   :  { %v2463_v19 = vadd.f32 %v2461_v18, %v2139_v55 }
0x3a64   :  { %3021 = vtanh.f32 %v2463_v19 }
0x3a6a   :  { %v3022_v20 = vpop.eup %3021 }
0x3a6b   :  { %2467 = vrot.lane.b32.xlu2 %v3022_v20, %s3312_s30 }
0x3ac5   :  { %v2468_v28 = vpop.permute.xlu2 %2467 }
0x3ac6   :  { %v2470_v30 = vmul.f32 %v2468_v28, %v2465_v21 }
0x3ac8   :  { %v2472_v31 = vadd.f32 %v2471_v29, %v2470_v30 }
0x3aca   :  { %2474 = vrot.lane.b32.xlu0 %v2472_v31, %s3312_s30 }
0x3b3c   :  { %v2475_v32 = vpop.permute.xlu0 %2474 }
0x3b3d   :  { %2477 = vst.msk [vmem:[#allocation17 + $0x20] sm:$0xff] %vm181_vm0, %v2475_v32  ;;  %2827 = vmatmul.msk.f32.vlgmr.msra.gmra.mxu1 %vm181_vm0, %v2475_v32 }
0x3bba   :  { %v2497_v34 = vpop.f32.mrf.mxu1 }
0x3bbb   :  { %v2498_v23 = vadd.f32 %v2497_v34, %v3907_v52 }
0x3bbd   :  { %2521 = vrot.lane.b32.xlu1 %v2498_v23, %s3310_s3  ;;  %v2500_v39 = vadd.f32 %v2498_v23, %v2142_v37 }
0x3bbf   :  { %v2828_v40 = vmul.f32 -1.442695, %v2500_v39 }
0x3bc1   :  { %3023 = vpow2.f32 %v2828_v40 }
0x3bc7   :  { %v3024_v14 = vpop.eup %3023 }
0x3bc8   :  { %v2504_v41 = vadd.f32 1.0, %v3024_v14 }
0x3bca   :  { %3025 = vrcp.f32 %v2504_v41  ;;  %v2516_v43 = vand.u32 2147483648, %v2504_v41  ;;  %vm2510_vm13 = vweird.f32 %v2504_v41  ;;  %v2514_v44 = vand.u32 2147483647, %v2504_v41 }
0x3bcc   :  { %v2517_v46 = vor.u32 1.1754944e-38, %v2516_v43  ;;  %vm2515_vm15 = vcmp.eq.f32.partialorder %v2514_v44, 8.507059e+37 }
0x3bd0   :  { %v3026_v10 = vpop.eup %3025 }
0x3bd1   :  { %v2506_v15 = vmul.f32 %v3026_v10, %v2504_v41  ;;  %vm2511_vm12 = vweird.f32 %v3026_v10 }
0x3bd2   :  { %vm2512_vm14 = vmor %vm2510_vm13, %vm2511_vm12 }
0x3bd3   :  { %v2507_v3 = vsub.f32 1.0, %v2506_v15 }
0x3bd5   :  { %v2508_v36 = vmul.f32 %v3026_v10, %v2507_v3 }
0x3bd7   :  { %v2509_v42 = vadd.f32 %v3026_v10, %v2508_v36 }
0x3bd9   :  { %v2513_v45 = vsel %vm2512_vm14, %v3026_v10, %v2509_v42 }
0x3bda   :  { %v2518_v48 = vsel %vm2515_vm15, %v2517_v46, %v2513_v45 }
0x3bdb   :  { %v2531_v51 = vsub.f32 1.0, %v2518_v48  ;;  %v2537_v27 = vmul.f32 %v2518_v48, %v2472_v31 }
0x3c2f   :  { %v2522_v47 = vpop.permute.xlu1 %2521 }
0x3c30   :  { %v2524_v49 = vmul.f32 %v2522_v47, %v2518_v48 }
0x3c32   :  { %2526 = vrot.lane.b32.xlu2 %v2524_v49, %s3311_s11 }
0x3c8c   :  { %v2527_v33 = vpop.permute.xlu2 %2526 }
0x3c8d   :  { %v2529_v50 = vadd.f32 %v2527_v33, %v2142_v37 }
0x3c8f   :  { %3027 = vtanh.f32 %v2529_v50 }
0x3c90   :  { %3029 = vpow2.f32 %v2809_v38 }
0x3c95   :  { %v3028_v24 = vpop.eup %3027 }
0x3c96   :  { %2533 = vrot.lane.b32.xlu0 %v3028_v24, %s3312_s30  ;;  %v3030_v55 = vpop.eup %3029 }
0x3c97   :  { %v2030_v11 = vadd.f32 1.0, %v3030_v55 }
0x3c99   :  { %3031 = vrcp.f32 %v2030_v11  ;;  %v2042_v0 = vand.u32 2147483648, %v2030_v11  ;;  %vm2036_vm2 = vweird.f32 %v2030_v11  ;;  %v2040_v1 = vand.u32 2147483647, %v2030_v11 }
0x3c9b   :  { %v2043_v2 = vor.u32 1.1754944e-38, %v2042_v0  ;;  %vm2041_vm4 = vcmp.eq.f32.partialorder %v2040_v1, 8.507059e+37 }
0x3c9e   :  { %2047 = vrot.lane.b32.xlu0 %v2024_v25, %s3310_s3 }
0x3c9f   :  { %v3032_v56 = vpop.eup %3031 }
0x3ca0   :  { %v2032_v57 = vmul.f32 %v3032_v56, %v2030_v11  ;;  %vm2037_vm1 = vweird.f32 %v3032_v56 }
0x3ca1   :  { %vm2038_vm3 = vmor %vm2036_vm2, %vm2037_vm1 }
0x3ca2   :  { %v2033_v13 = vsub.f32 1.0, %v2032_v57 }
0x3ca4   :  { %v2034_v58 = vmul.f32 %v3032_v56, %v2033_v13 }
0x3ca6   :  { %v2035_v62 = vadd.f32 %v3032_v56, %v2034_v58 }
0x3ca8   :  { %v2039_v16 = vsel %vm2038_vm3, %v3032_v56, %v2035_v62 }
0x3ca9   :  { %v2044_v4 = vsel %vm2041_vm4, %v2043_v2, %v2039_v16 }
0x3caa   :  { %v2057_v42 = vsub.f32 1.0, %v2044_v4  ;;  %v2063_v44 = vmul.f32 %v2044_v4, %v3876_v9 }
0x3d08   :  { %v2534_v26 = vpop.permute.xlu0 %2533 }
0x3d09   :  { %v2536_v53 = vmul.f32 %v2534_v26, %v2531_v51 }
0x3d0b   :  { %v3961_v8 = vadd.f32 %v2537_v27, %v2536_v53 }
0x3d0d   :  { %2540 = vrot.lane.b32.xlu1 %v3961_v8, %s3312_s30 }
0x3d10   :  { %v2048_v7 = vpop.permute.xlu0 %2047 }
0x3d11   :  { %v2050_v17 = vmul.f32 %v2048_v7, %v2044_v4 }
0x3d7f   :  { %v2541_v54 = vpop.permute.xlu1 %2540 }
0x3d80   :  { %2543 = vst.msk [vmem:[#allocation17 + $0x28] sm:$0xff] %vm181_vm0, %v2541_v54  ;;  %2829 = vmatmul.msk.f32.vlgmr.msra.gmra.mxu2 %vm181_vm0, %v2541_v54 }
0x3e03   :  { %v2563_v59 = vpop.f32.mrf.mxu2 }
0x3e04   :  { %v2564_v63 = vadd.f32 %v2563_v59, %v3907_v52 }
0x3e06   :  { %2587 = vrot.lane.b32.xlu2 %v2564_v63, %s3310_s3  ;;  %v2566_v12 = vadd.f32 %v2564_v63, %v2145_v6 }
0x3e08   :  { %v2830_v18 = vmul.f32 -1.442695, %v2566_v12 }
0x3e0a   :  { %3033 = vpow2.f32 %v2830_v18 }
0x3e0e   :  { %2052 = vrot.lane.b32.xlu2 %v2050_v17, %s3311_s11 }
0x3e10   :  { %v3034_v19 = vpop.eup %3033 }
0x3e11   :  { %v2570_v20 = vadd.f32 1.0, %v3034_v19 }
0x3e13   :  { %3035 = vrcp.f32 %v2570_v20  ;;  %v2582_v32 = vand.u32 2147483648, %v2570_v20  ;;  %vm2576_vm7 = vweird.f32 %v2570_v20  ;;  %v2580_v34 = vand.u32 2147483647, %v2570_v20 }
0x3e15   :  { %v2583_v35 = vor.u32 1.1754944e-38, %v2582_v32  ;;  %vm2581_vm9 = vcmp.eq.f32.partialorder %v2580_v34, 8.507059e+37 }
0x3e19   :  { %v3036_v21 = vpop.eup %3035 }
0x3e1a   :  { %v2572_v28 = vmul.f32 %v3036_v21, %v2570_v20  ;;  %vm2577_vm6 = vweird.f32 %v3036_v21 }
0x3e1b   :  { %vm2578_vm8 = vmor %vm2576_vm7, %vm2577_vm6 }
0x3e1c   :  { %v2573_v29 = vsub.f32 1.0, %v2572_v28 }
0x3e1e   :  { %v2574_v30 = vmul.f32 %v3036_v21, %v2573_v29 }
0x3e20   :  { %v2575_v31 = vadd.f32 %v3036_v21, %v2574_v30 }
0x3e22   :  { %v2579_v23 = vsel %vm2578_vm8, %v3036_v21, %v2575_v31 }
0x3e23   :  { %v2584_v39 = vsel %vm2581_vm9, %v2583_v35, %v2579_v23 }
0x3e24   :  { %v2597_v47 = vsub.f32 1.0, %v2584_v39  ;;  %v2603_v49 = vmul.f32 %v2584_v39, %v3961_v8 }
0x3e60   :  { %v2588_v37 = vpop.permute.xlu2 %2587 }
0x3e61   :  { %v2590_v40 = vmul.f32 %v2588_v37, %v2584_v39 }
0x3e63   :  { %2592 = vrot.lane.b32.xlu1 %v2590_v40, %s3311_s11 }
0x3e68   :  { %v2053_v14 = vpop.permute.xlu2 %2052 }
0x3e69   :  { %v2055_v41 = vadd.f32 %v2053_v14, %v1540_v61 }
0x3e6b   :  { %3037 = vtanh.f32 %v2055_v41 }
0x3e71   :  { %v3038_v10 = vpop.eup %3037 }
0x3e72   :  { %2059 = vrot.lane.b32.xlu1 %v3038_v10, %s3312_s30 }
0x3ed5   :  { %v2593_v15 = vpop.permute.xlu1 %2592 }
0x3ed6   :  { %v2595_v3 = vadd.f32 %v2593_v15, %v2145_v6 }
0x3ed8   :  { %3039 = vtanh.f32 %v2595_v3 }
0x3ede   :  { %v3040_v36 = vpop.eup %3039 }
0x3edf   :  { %2599 = vrot.lane.b32.xlu0 %v3040_v36, %s3312_s30 }
0x3ee4   :  { %v2060_v43 = vpop.permute.xlu1 %2059 }
0x3ee5   :  { %v2062_v45 = vmul.f32 %v2060_v43, %v2057_v42 }
0x3ee7   :  { %v2064_v46 = vadd.f32 %v2063_v44, %v2062_v45 }
0x3ee9   :  { %2066 = vrot.lane.b32.xlu0 %v2064_v46, %s3312_s30 }
0x3f51   :  { %v2600_v48 = vpop.permute.xlu0 %2599 }
0x3f52   :  { %v2602_v33 = vmul.f32 %v2600_v48, %v2597_v47 }
0x3f54   :  { %v2604_v50 = vadd.f32 %v2603_v49, %v2602_v33 }
0x3f56   :  { %2606 = vrot.lane.b32.xlu2 %v2604_v50, %s3312_s30 }
0x3f5b   :  { %v2067_v24 = vpop.permute.xlu0 %2066 }
0x3f5c   :  { %2069 = vst.msk [vmem:[#allocation17 + $0x38] sm:$0xff] %vm181_vm0, %v2067_v24 }
0x3f63   :  { %v2077_v25 = vld [vmem:[#allocation17 + $0x38] sm:$0xff] }
0x3f64   :  { %2817 = vmatmul.msk.f32.gmra.mxu0 %vm181_vm0, %v2077_v25 }
0x3fb0   :  { %v2607_v51 = vpop.permute.xlu2 %2606 }
0x3fb1   :  { %2609 = vst.msk [vmem:[#allocation17 + $0x30] sm:$0xff] %vm181_vm0, %v2607_v51  ;;  %2831 = vmatmul.msk.f32.vlgmr.msra.gmra.mxu3 %vm181_vm0, %v2607_v51 }
0x3fe1   :  { %v2147_v27 = vpop.f32.mrf.mxu0 }
0x3fe2   :  { %v2148_v53 = vadd.f32 %v2147_v27, %v3911_v60 }
0x4034   :  { %v2629_v9 = vpop.f32.mrf.mxu3 }
0x4035   :  { %v2630_v26 = vadd.f32 %v2629_v9, %v3907_v52 }
0x4037   :  { %2653 = vrot.lane.b32.xlu1 %v2630_v26, %s3310_s3  ;;  %v2632_v8 = vadd.f32 %v2630_v26, %v2148_v53  ;;  %s2682_s3 = sshll.u32 %s4024_s15, 4  ;;  %s2708_s15 = sshll.u32 %s4026_s17, 4  ;;  %s2683_s3 = int_to_ptr.hbm [resolvable:$true] %s2682_s3  ;;  %s2709_s15 = int_to_ptr.hbm [resolvable:$true] %s2708_s15 }
0x4038   :  { %2688 = dma.vmem_to_hbm [thread:$0]  %s2681_s27, 1024, %s2683_s3, [#allocation4], %s3300_s18, %s3300_s18, %s3301_s19  }
0x4039   :  { %v2832_v54 = vmul.f32 -1.442695, %v2632_v8 }
0x403b   :  { %3041 = vpow2.f32 %v2832_v54 }
0x4041   :  { %v3042_v61 = vpop.eup %3041 }
0x4042   :  { %v2636_v22 = vadd.f32 1.0, %v3042_v61 }
0x4044   :  { %3043 = vrcp.f32 %v2636_v22  ;;  %v2648_v13 = vand.u32 2147483648, %v2636_v22  ;;  %vm2642_vm10 = vweird.f32 %v2636_v22  ;;  %v2646_v52 = vand.u32 2147483647, %v2636_v22 }
0x4046   :  { %v2649_v59 = vor.u32 1.1754944e-38, %v2648_v13  ;;  %vm2647_vm12 = vcmp.eq.f32.partialorder %v2646_v52, 8.507059e+37 }
0x404a   :  { %v3044_v38 = vpop.eup %3043 }
0x404b   :  { %v2638_v55 = vmul.f32 %v3044_v38, %v2636_v22  ;;  %vm2643_vm5 = vweird.f32 %v3044_v38 }
0x404c   :  { %vm2644_vm11 = vmor %vm2642_vm10, %vm2643_vm5 }
0x404d   :  { %v2639_v11 = vsub.f32 1.0, %v2638_v55 }
0x404f   :  { %v2640_v56 = vmul.f32 %v3044_v38, %v2639_v11 }
0x4051   :  { %v2641_v57 = vadd.f32 %v3044_v38, %v2640_v56 }
0x4053   :  { %v2645_v58 = vsel %vm2644_vm11, %v3044_v38, %v2641_v57 }
0x4054   :  { %v2650_v62 = vsel %vm2647_vm12, %v2649_v59, %v2645_v58 }
0x4055   :  { %v2663_v7 = vsub.f32 1.0, %v2650_v62  ;;  %v2669_v4 = vmul.f32 %v2650_v62, %v2604_v50 }
0x40a9   :  { %v2654_v60 = vpop.permute.xlu1 %2653 }
0x40aa   :  { %v2656_v63 = vmul.f32 %v2654_v60, %v2650_v62 }
0x40ac   :  { %2658 = vrot.lane.b32.xlu2 %v2656_v63, %s3311_s11 }
0x4106   :  { %v2659_v0 = vpop.permute.xlu2 %2658 }
0x4107   :  { %v2661_v1 = vadd.f32 %v2659_v0, %v2148_v53 }
0x4109   :  { %3045 = vtanh.f32 %v2661_v1 }
0x410f   :  { %v3046_v16 = vpop.eup %3045 }
0x4110   :  { %2665 = vrot.lane.b32.xlu0 %v3046_v16, %s3312_s30 }
0x4182   :  { %v2666_v2 = vpop.permute.xlu0 %2665 }
0x4183   :  { %v2668_v17 = vmul.f32 %v2666_v2, %v2663_v7 }
0x4185   :  { %v2670_v5 = vadd.f32 %v2669_v4, %v2668_v17 }
0x4187   :  { %2672 = vrot.lane.b32.xlu1 %v2670_v5, %s3312_s30 }
0x41f9   :  { %v2673_v6 = vpop.permute.xlu1 %2672 }
0x41fa   :  { %2675 = vst.msk [vmem:[#allocation17 + $0x38] sm:$0xff] %vm181_vm0, %v2673_v6 }
0x41fb   :  { %2714 = dma.vmem_to_hbm [thread:$0]  %s2707_s6, 1024, %s2709_s15, [#allocation16], %s3300_s18, %s3300_s18, %s3301_s19  }
0x41fc   :  { %3295 = dma.done.wait [#allocation4], 1024  }
0x41fd   :  { %3296 = vsyncadd [#allocation4], 4294966272 }
0x41fe   :  { %3297 = dma.done.wait [#allocation16], 1280  }
0x41ff   :  { %3298 = vsyncadd [#allocation16], 4294966016 }
0x4200   :  { %2727 = vsyncpa [#allocation3], 1 }
0x4201   :  { %2728 = vsyncpa [#allocation6], 1 }
0x4202   :  { %2729 = vsyncpa [#allocation9], 1 }
0x4203   :  { %2730 = vsyncpa [#allocation12], 1 }
0x4204   :  { %2731 = vsyncpa [#allocation4], 1 }
0x4205   :  { %2732 = vsyncpa [#allocation16], 1 }

</bundles_post_ra>
